<compile_context>
chip_gen: v7x
topology: tpu7x:2x2x1
jax: 0.10.0
libtpu: 0.0.40
codegen_flags: <defaults>
</compile_context>

<pallas_src>
import functools

import jax
import jax.numpy as jnp
from jax.experimental import pallas as pl
from jax.experimental.pallas import tpu as pltpu


def _vmem_limit_bytes(default_capacity=64 * 1024 * 1024):
    """~70% of this generation's per-core VMEM (v5e/v6e: 128 MiB, v7x: 64 MiB)."""
    cap = default_capacity
    try:
        info = pltpu.get_tpu_info()
        cap = int(getattr(info, "vmem_capacity_bytes", cap) or cap)
    except Exception:
        pass
    return int(min(max(0.7 * cap, 32 * 1024 * 1024), 100 * 1024 * 1024))


def _fused_self_attention_kernel(x_ref, wqvk_ref, bqvk_ref, wy_ref, by_ref,
                                 o_ref, fqvk_scr, z3_scr, *, C, H, W):
    """One batch image per grid step; everything after the x load stays in VMEM.

    x_ref / o_ref  : [C, H*W]   (lane-dense HBM-facing blocks)
    wqvk_ref       : [3C, C]    stacked q/v/k 1x1-conv weights
    bqvk_ref       : [3C, 1]    stacked q/v/k biases
    wy_ref, by_ref : [C, C], [C, 1]
    fqvk_scr       : [3C, H, W] VMEM scratch (f1 | f2 | g1)
    z3_scr         : [C, H, W]  VMEM scratch (attention output)
    """
    wqvk = wqvk_ref[...]
    bqvk = bqvk_ref[...]

    # ---- Stage 1: stacked q/v/k 1x1 convs (+bias). Row-wise 2D dots write
    # straight into the [3C, H, W] scratch, sidestepping any lane-dim reshape
    # of the flattened slab (H is static, so this unrolls).
    # TODO(synk): switch to lax.fori_loop for very large H to bound trace size.
    for h in range(H):
        x_row = x_ref[:, h * W:(h + 1) * W]                       # [C, W]
        fqvk_scr[:, h, :] = (
            jnp.dot(wqvk, x_row, preferred_element_type=jnp.float32) + bqvk)

    f1 = fqvk_scr[0:C, :, :]                                      # [C, H, W]
    f2 = fqvk_scr[C:2 * C, :, :]
    g1 = fqvk_scr[2 * C:3 * C, :, :]

    # ---- Stage 2: per-channel HxH scores, Softmax2d (softmax over channels),
    # attention apply -- all on the in-VMEM slabs (f32 accumulation).
    z = jnp.einsum("ciw,cjw->cij", f1, f2, preferred_element_type=jnp.float32)
    z_max = jnp.max(z, axis=0, keepdims=True)
    z_exp = jnp.exp(z - z_max)
    inv_den = pl.reciprocal(jnp.sum(z_exp, axis=0, keepdims=True), approx=True)
    z_sm = z_exp * inv_den
    z3_scr[...] = jnp.einsum("cij,cjw->ciw", z_sm, g1,
                             preferred_element_type=jnp.float32)

    # ---- Stage 3: output 1x1 conv (+bias) + residual, written row by row into
    # the lane-dense output block.
    wy = wy_ref[...]
    by = by_ref[...]
    for h in range(H):
        x_row = x_ref[:, h * W:(h + 1) * W]
        y_row = (jnp.dot(wy, z3_scr[:, h, :],
                         preferred_element_type=jnp.float32) + by)
        o_ref[:, h * W:(h + 1) * W] = (
            y_row + x_row.astype(jnp.float32)).astype(o_ref.dtype)


def self_attention_forward(x, wq, bq, wv, bv, wk, bk, wy, by):
    """x: [B, C, H, W]; conv weights: [C, C, 1, 1]; biases: [C]. Returns [B, C, H, W]."""
    B, C, H, W = x.shape
    HW = H * W

    # Free contiguous views + one-off tiny weight packing (no HxW transposes).
    xf = x.reshape(B, C, HW)
    wqvk = jnp.concatenate([w.reshape(C, C) for w in (wq, wv, wk)], axis=0)   # [3C, C]
    bqvk = jnp.concatenate([b.reshape(C, 1) for b in (bq, bv, bk)], axis=0)   # [3C, 1]
    wy2 = wy.reshape(C, C)
    by2 = by.reshape(C, 1)

    # TODO(synk): for very large C*H*W (per-image slab + [C,H,H] scores no
    # longer fitting ~70% of VMEM, esp. on v7x's 64 MiB), add a query-row grid
    # axis that keeps f2/g1 resident in scratch and tiles f1/scores/z3 over H.

    kernel = functools.partial(_fused_self_attention_kernel, C=C, H=H, W=W)

    out = pl.pallas_call(
        kernel,
        out_shape=jax.ShapeDtypeStruct((B, C, HW), x.dtype),
        grid_spec=pltpu.PrefetchScalarGridSpec(
            num_scalar_prefetch=0,
            grid=(B,),
            in_specs=[
                pl.BlockSpec((None, C, HW), lambda b: (b, 0, 0)),   # x (lane-dense)
                pl.BlockSpec((3 * C, C), lambda b: (0, 0)),         # stacked q/v/k W
                pl.BlockSpec((3 * C, 1), lambda b: (0, 0)),         # stacked q/v/k b
                pl.BlockSpec((C, C), lambda b: (0, 0)),             # y weight
                pl.BlockSpec((C, 1), lambda b: (0, 0)),             # y bias
            ],
            out_specs=pl.BlockSpec((None, C, HW), lambda b: (b, 0, 0)),
            scratch_shapes=[
                pltpu.VMEM((3 * C, H, W), jnp.float32),              # f1|f2|g1
                pltpu.VMEM((C, H, W), jnp.float32),                  # z3
            ],
        ),
        compiler_params=pltpu.CompilerParams(
            dimension_semantics=("parallel",),
            vmem_limit_bytes=_vmem_limit_bytes()),
    )(xf, wqvk, bqvk, wy2, by2)

    return out.reshape(B, C, H, W)


if __name__ == "__main__":
    key = jax.random.PRNGKey(0)
    ks = jax.random.split(key, 9)

    B, C, H, W = 2, 4, 16, 16
    x = jax.random.normal(ks[0], (B, C, H, W), dtype=jnp.float32)

    def mk_w(k):  # torch Conv2d(C, C, 1) weight layout
        return jax.random.normal(k, (C, C, 1, 1), dtype=jnp.float32) * 0.1

    def mk_b(k):  # torch Conv2d bias
        return jax.random.normal(k, (C,), dtype=jnp.float32) * 0.1

    wq, wv, wk, wy = mk_w(ks[1]), mk_w(ks[2]), mk_w(ks[3]), mk_w(ks[4])
    bq, bv, bk, by = mk_b(ks[5]), mk_b(ks[6]), mk_b(ks[7]), mk_b(ks[8])

    out = self_attention_forward(x, wq, bq, wv, bv, wk, bk, wy, by)
    out = jax.block_until_ready(out)

    # Pure-JAX reference of the PyTorch forward.
    hp = jax.lax.Precision.HIGHEST

    def conv1x1(inp, w, b):
        return (jnp.einsum("oc,bchw->bohw", w.reshape(C, C), inp, precision=hp)
                + b.reshape(1, C, 1, 1))

    f1r = conv1x1(x, wq, bq)
    f2r = conv1x1(x, wv, bv)
    g1r = conv1x1(x, wk, bk)
    zr = jnp.einsum("bciw,bcjw->bcij", f1r, f2r, precision=hp)   # f1 @ f2^T
    zr = jax.nn.softmax(zr, axis=1)                              # Softmax2d: channels
    z3r = jnp.einsum("bcij,bcjw->bciw", zr, g1r, precision=hp)   # z @ g1
    ref = conv1x1(z3r, wy, by) + x

    assert out.shape == (B, C, H, W)
    # Tolerance covers MXU f32 multi-pass matmuls and the approximate (EUP)
    # reciprocal used for the softmax denominator.
    assert jnp.allclose(out, ref, atol=2e-2, rtol=2e-2), (
        float(jnp.max(jnp.abs(out - ref))))

    print("KERNEL_OK")
</pallas_src>

<mosaic_0001>
module attributes {stable_mosaic.version = 11 : i64} {
  func.func @_fused_self_attention_kernel(%arg0: i32, %arg1: memref<1x4x256xf32, #tpu.memory_space<vmem>>, %arg2: memref<12x4xf32, #tpu.memory_space<vmem>>, %arg3: memref<12x1xf32, #tpu.memory_space<vmem>>, %arg4: memref<4x4xf32, #tpu.memory_space<vmem>>, %arg5: memref<4x1xf32, #tpu.memory_space<vmem>>, %arg6: memref<1x4x256xf32, #tpu.memory_space<vmem>>, %arg7: memref<12x16x16xf32, #tpu.memory_space<vmem>>, %arg8: memref<4x16x16xf32, #tpu.memory_space<vmem>>) attributes {dimension_semantics = [#tpu.dimension_semantics<parallel>], iteration_bounds = array<i64: 2>, scalar_prefetch = 0 : i64, scratch_operands = 2 : i64, tpu.core_type = #tpu.core_type<tc>, window_params = [{transform_indices = @transform_0, window_bounds = array<i64: 1, 4, 256>}, {pipeline_mode = #tpu.pipeline_mode<synchronous>, transform_indices = @transform_1, window_bounds = array<i64: 12, 4>}, {pipeline_mode = #tpu.pipeline_mode<synchronous>, transform_indices = @transform_2, window_bounds = array<i64: 12, 1>}, {pipeline_mode = #tpu.pipeline_mode<synchronous>, transform_indices = @transform_3, window_bounds = array<i64: 4, 4>}, {pipeline_mode = #tpu.pipeline_mode<synchronous>, transform_indices = @transform_4, window_bounds = array<i64: 4, 1>}, {transform_indices = @transform_5, window_bounds = array<i64: 1, 4, 256>}]} {
    %c0 = arith.constant 0 : index
    %c0_0 = arith.constant 0 : index
    %0 = vector.load %arg2[%c0, %c0_0] : memref<12x4xf32, #tpu.memory_space<vmem>>, vector<12x4xf32>
    %c0_1 = arith.constant 0 : index
    %c0_2 = arith.constant 0 : index
    %1 = vector.load %arg3[%c0_1, %c0_2] : memref<12x1xf32, #tpu.memory_space<vmem>>, vector<12x1xf32>
    %c0_3 = arith.constant 0 : index
    %c0_4 = arith.constant 0 : index
    %c0_5 = arith.constant 0 : index
    %2 = vector.load %arg1[%c0_3, %c0_4, %c0_5] : memref<1x4x256xf32, #tpu.memory_space<vmem>>, vector<1x4x16xf32>
    %3 = vector.shape_cast %2 : vector<1x4x16xf32> to vector<4x16xf32>
    %cst = arith.constant dense<0.000000e+00> : vector<12x16xf32>
    %4 = tpu.matmul %0, %3, %cst {dimension_numbers = #tpu.dot_dimension_numbers<[1], [0], [0], [1], [0, 0, 1, 1], [], []>} : vector<12x4xf32>, vector<4x16xf32>, vector<12x16xf32> -> vector<12x16xf32>
    %5 = vector.broadcast %1 : vector<12x1xf32> to vector<12x16xf32>
    %6 = arith.addf %4, %5 : vector<12x16xf32>
    %c0_6 = arith.constant 0 : index
    %c0_7 = arith.constant 0 : index
    %c0_8 = arith.constant 0 : index
    %7 = vector.load %arg7[%c0_6, %c0_7, %c0_8] : memref<12x16x16xf32, #tpu.memory_space<vmem>>, vector<12x1x16xf32>
    %8 = vector.shape_cast %7 : vector<12x1x16xf32> to vector<12x16xf32>
    %9 = vector.shape_cast %6 : vector<12x16xf32> to vector<12x1x16xf32>
    tpu.vector_store %arg7[%c0_6, %c0_7, %c0_8], %9 {strides = array<i32>} : memref<12x16x16xf32, #tpu.memory_space<vmem>>, vector<12x1x16xf32>,
    %c0_9 = arith.constant 0 : index
    %c0_10 = arith.constant 0 : index
    %c16 = arith.constant 16 : index
    %10 = vector.load %arg1[%c0_9, %c0_10, %c16] : memref<1x4x256xf32, #tpu.memory_space<vmem>>, vector<1x4x16xf32>
    %11 = vector.shape_cast %10 : vector<1x4x16xf32> to vector<4x16xf32>
    %cst_11 = arith.constant dense<0.000000e+00> : vector<12x16xf32>
    %12 = tpu.matmul %0, %11, %cst_11 {dimension_numbers = #tpu.dot_dimension_numbers<[1], [0], [0], [1], [0, 0, 1, 1], [], []>} : vector<12x4xf32>, vector<4x16xf32>, vector<12x16xf32> -> vector<12x16xf32>
    %13 = vector.broadcast %1 : vector<12x1xf32> to vector<12x16xf32>
    %14 = arith.addf %12, %13 : vector<12x16xf32>
    %c0_12 = arith.constant 0 : index
    %c1 = arith.constant 1 : index
    %c0_13 = arith.constant 0 : index
    %15 = vector.load %arg7[%c0_12, %c1, %c0_13] : memref<12x16x16xf32, #tpu.memory_space<vmem>>, vector<12x1x16xf32>
    %16 = vector.shape_cast %15 : vector<12x1x16xf32> to vector<12x16xf32>
    %17 = vector.shape_cast %14 : vector<12x16xf32> to vector<12x1x16xf32>
    tpu.vector_store %arg7[%c0_12, %c1, %c0_13], %17 {strides = array<i32>} : memref<12x16x16xf32, #tpu.memory_space<vmem>>, vector<12x1x16xf32>,
    %c0_14 = arith.constant 0 : index
    %c0_15 = arith.constant 0 : index
    %c32 = arith.constant 32 : index
    %18 = vector.load %arg1[%c0_14, %c0_15, %c32] : memref<1x4x256xf32, #tpu.memory_space<vmem>>, vector<1x4x16xf32>
    %19 = vector.shape_cast %18 : vector<1x4x16xf32> to vector<4x16xf32>
    %cst_16 = arith.constant dense<0.000000e+00> : vector<12x16xf32>
    %20 = tpu.matmul %0, %19, %cst_16 {dimension_numbers = #tpu.dot_dimension_numbers<[1], [0], [0], [1], [0, 0, 1, 1], [], []>} : vector<12x4xf32>, vector<4x16xf32>, vector<12x16xf32> -> vector<12x16xf32>
    %21 = vector.broadcast %1 : vector<12x1xf32> to vector<12x16xf32>
    %22 = arith.addf %20, %21 : vector<12x16xf32>
    %c0_17 = arith.constant 0 : index
    %c2 = arith.constant 2 : index
    %c0_18 = arith.constant 0 : index
    %23 = vector.load %arg7[%c0_17, %c2, %c0_18] : memref<12x16x16xf32, #tpu.memory_space<vmem>>, vector<12x1x16xf32>
    %24 = vector.shape_cast %23 : vector<12x1x16xf32> to vector<12x16xf32>
    %25 = vector.shape_cast %22 : vector<12x16xf32> to vector<12x1x16xf32>
    tpu.vector_store %arg7[%c0_17, %c2, %c0_18], %25 {strides = array<i32>} : memref<12x16x16xf32, #tpu.memory_space<vmem>>, vector<12x1x16xf32>,
    %c0_19 = arith.constant 0 : index
    %c0_20 = arith.constant 0 : index
    %c48 = arith.constant 48 : index
    %26 = vector.load %arg1[%c0_19, %c0_20, %c48] : memref<1x4x256xf32, #tpu.memory_space<vmem>>, vector<1x4x16xf32>
    %27 = vector.shape_cast %26 : vector<1x4x16xf32> to vector<4x16xf32>
    %cst_21 = arith.constant dense<0.000000e+00> : vector<12x16xf32>
    %28 = tpu.matmul %0, %27, %cst_21 {dimension_numbers = #tpu.dot_dimension_numbers<[1], [0], [0], [1], [0, 0, 1, 1], [], []>} : vector<12x4xf32>, vector<4x16xf32>, vector<12x16xf32> -> vector<12x16xf32>
    %29 = vector.broadcast %1 : vector<12x1xf32> to vector<12x16xf32>
    %30 = arith.addf %28, %29 : vector<12x16xf32>
    %c0_22 = arith.constant 0 : index
    %c3 = arith.constant 3 : index
    %c0_23 = arith.constant 0 : index
    %31 = vector.load %arg7[%c0_22, %c3, %c0_23] : memref<12x16x16xf32, #tpu.memory_space<vmem>>, vector<12x1x16xf32>
    %32 = vector.shape_cast %31 : vector<12x1x16xf32> to vector<12x16xf32>
    %33 = vector.shape_cast %30 : vector<12x16xf32> to vector<12x1x16xf32>
    tpu.vector_store %arg7[%c0_22, %c3, %c0_23], %33 {strides = array<i32>} : memref<12x16x16xf32, #tpu.memory_space<vmem>>, vector<12x1x16xf32>,
    %c0_24 = arith.constant 0 : index
    %c0_25 = arith.constant 0 : index
    %c64 = arith.constant 64 : index
    %34 = vector.load %arg1[%c0_24, %c0_25, %c64] : memref<1x4x256xf32, #tpu.memory_space<vmem>>, vector<1x4x16xf32>
    %35 = vector.shape_cast %34 : vector<1x4x16xf32> to vector<4x16xf32>
    %cst_26 = arith.constant dense<0.000000e+00> : vector<12x16xf32>
    %36 = tpu.matmul %0, %35, %cst_26 {dimension_numbers = #tpu.dot_dimension_numbers<[1], [0], [0], [1], [0, 0, 1, 1], [], []>} : vector<12x4xf32>, vector<4x16xf32>, vector<12x16xf32> -> vector<12x16xf32>
    %37 = vector.broadcast %1 : vector<12x1xf32> to vector<12x16xf32>
    %38 = arith.addf %36, %37 : vector<12x16xf32>
    %c0_27 = arith.constant 0 : index
    %c4 = arith.constant 4 : index
    %c0_28 = arith.constant 0 : index
    %39 = vector.load %arg7[%c0_27, %c4, %c0_28] : memref<12x16x16xf32, #tpu.memory_space<vmem>>, vector<12x1x16xf32>
    %40 = vector.shape_cast %39 : vector<12x1x16xf32> to vector<12x16xf32>
    %41 = vector.shape_cast %38 : vector<12x16xf32> to vector<12x1x16xf32>
    tpu.vector_store %arg7[%c0_27, %c4, %c0_28], %41 {strides = array<i32>} : memref<12x16x16xf32, #tpu.memory_space<vmem>>, vector<12x1x16xf32>,
    %c0_29 = arith.constant 0 : index
    %c0_30 = arith.constant 0 : index
    %c80 = arith.constant 80 : index
    %42 = vector.load %arg1[%c0_29, %c0_30, %c80] : memref<1x4x256xf32, #tpu.memory_space<vmem>>, vector<1x4x16xf32>
    %43 = vector.shape_cast %42 : vector<1x4x16xf32> to vector<4x16xf32>
    %cst_31 = arith.constant dense<0.000000e+00> : vector<12x16xf32>
    %44 = tpu.matmul %0, %43, %cst_31 {dimension_numbers = #tpu.dot_dimension_numbers<[1], [0], [0], [1], [0, 0, 1, 1], [], []>} : vector<12x4xf32>, vector<4x16xf32>, vector<12x16xf32> -> vector<12x16xf32>
    %45 = vector.broadcast %1 : vector<12x1xf32> to vector<12x16xf32>
    %46 = arith.addf %44, %45 : vector<12x16xf32>
    %c0_32 = arith.constant 0 : index
    %c5 = arith.constant 5 : index
    %c0_33 = arith.constant 0 : index
    %47 = vector.load %arg7[%c0_32, %c5, %c0_33] : memref<12x16x16xf32, #tpu.memory_space<vmem>>, vector<12x1x16xf32>
    %48 = vector.shape_cast %47 : vector<12x1x16xf32> to vector<12x16xf32>
    %49 = vector.shape_cast %46 : vector<12x16xf32> to vector<12x1x16xf32>
    tpu.vector_store %arg7[%c0_32, %c5, %c0_33], %49 {strides = array<i32>} : memref<12x16x16xf32, #tpu.memory_space<vmem>>, vector<12x1x16xf32>,
    %c0_34 = arith.constant 0 : index
    %c0_35 = arith.constant 0 : index
    %c96 = arith.constant 96 : index
    %50 = vector.load %arg1[%c0_34, %c0_35, %c96] : memref<1x4x256xf32, #tpu.memory_space<vmem>>, vector<1x4x16xf32>
    %51 = vector.shape_cast %50 : vector<1x4x16xf32> to vector<4x16xf32>
    %cst_36 = arith.constant dense<0.000000e+00> : vector<12x16xf32>
    %52 = tpu.matmul %0, %51, %cst_36 {dimension_numbers = #tpu.dot_dimension_numbers<[1], [0], [0], [1], [0, 0, 1, 1], [], []>} : vector<12x4xf32>, vector<4x16xf32>, vector<12x16xf32> -> vector<12x16xf32>
    %53 = vector.broadcast %1 : vector<12x1xf32> to vector<12x16xf32>
    %54 = arith.addf %52, %53 : vector<12x16xf32>
    %c0_37 = arith.constant 0 : index
    %c6 = arith.constant 6 : index
    %c0_38 = arith.constant 0 : index
    %55 = vector.load %arg7[%c0_37, %c6, %c0_38] : memref<12x16x16xf32, #tpu.memory_space<vmem>>, vector<12x1x16xf32>
    %56 = vector.shape_cast %55 : vector<12x1x16xf32> to vector<12x16xf32>
    %57 = vector.shape_cast %54 : vector<12x16xf32> to vector<12x1x16xf32>
    tpu.vector_store %arg7[%c0_37, %c6, %c0_38], %57 {strides = array<i32>} : memref<12x16x16xf32, #tpu.memory_space<vmem>>, vector<12x1x16xf32>,
    %c0_39 = arith.constant 0 : index
    %c0_40 = arith.constant 0 : index
    %c112 = arith.constant 112 : index
    %58 = vector.load %arg1[%c0_39, %c0_40, %c112] : memref<1x4x256xf32, #tpu.memory_space<vmem>>, vector<1x4x16xf32>
    %59 = vector.shape_cast %58 : vector<1x4x16xf32> to vector<4x16xf32>
    %cst_41 = arith.constant dense<0.000000e+00> : vector<12x16xf32>
    %60 = tpu.matmul %0, %59, %cst_41 {dimension_numbers = #tpu.dot_dimension_numbers<[1], [0], [0], [1], [0, 0, 1, 1], [], []>} : vector<12x4xf32>, vector<4x16xf32>, vector<12x16xf32> -> vector<12x16xf32>
    %61 = vector.broadcast %1 : vector<12x1xf32> to vector<12x16xf32>
    %62 = arith.addf %60, %61 : vector<12x16xf32>
    %c0_42 = arith.constant 0 : index
    %c7 = arith.constant 7 : index
    %c0_43 = arith.constant 0 : index
    %63 = vector.load %arg7[%c0_42, %c7, %c0_43] : memref<12x16x16xf32, #tpu.memory_space<vmem>>, vector<12x1x16xf32>
    %64 = vector.shape_cast %63 : vector<12x1x16xf32> to vector<12x16xf32>
    %65 = vector.shape_cast %62 : vector<12x16xf32> to vector<12x1x16xf32>
    tpu.vector_store %arg7[%c0_42, %c7, %c0_43], %65 {strides = array<i32>} : memref<12x16x16xf32, #tpu.memory_space<vmem>>, vector<12x1x16xf32>,
    %c0_44 = arith.constant 0 : index
    %c0_45 = arith.constant 0 : index
    %c128 = arith.constant 128 : index
    %66 = vector.load %arg1[%c0_44, %c0_45, %c128] : memref<1x4x256xf32, #tpu.memory_space<vmem>>, vector<1x4x16xf32>
    %67 = vector.shape_cast %66 : vector<1x4x16xf32> to vector<4x16xf32>
    %cst_46 = arith.constant dense<0.000000e+00> : vector<12x16xf32>
    %68 = tpu.matmul %0, %67, %cst_46 {dimension_numbers = #tpu.dot_dimension_numbers<[1], [0], [0], [1], [0, 0, 1, 1], [], []>} : vector<12x4xf32>, vector<4x16xf32>, vector<12x16xf32> -> vector<12x16xf32>
    %69 = vector.broadcast %1 : vector<12x1xf32> to vector<12x16xf32>
    %70 = arith.addf %68, %69 : vector<12x16xf32>
    %c0_47 = arith.constant 0 : index
    %c8 = arith.constant 8 : index
    %c0_48 = arith.constant 0 : index
    %71 = vector.load %arg7[%c0_47, %c8, %c0_48] : memref<12x16x16xf32, #tpu.memory_space<vmem>>, vector<12x1x16xf32>
    %72 = vector.shape_cast %71 : vector<12x1x16xf32> to vector<12x16xf32>
    %73 = vector.shape_cast %70 : vector<12x16xf32> to vector<12x1x16xf32>
    tpu.vector_store %arg7[%c0_47, %c8, %c0_48], %73 {strides = array<i32>} : memref<12x16x16xf32, #tpu.memory_space<vmem>>, vector<12x1x16xf32>,
    %c0_49 = arith.constant 0 : index
    %c0_50 = arith.constant 0 : index
    %c144 = arith.constant 144 : index
    %74 = vector.load %arg1[%c0_49, %c0_50, %c144] : memref<1x4x256xf32, #tpu.memory_space<vmem>>, vector<1x4x16xf32>
    %75 = vector.shape_cast %74 : vector<1x4x16xf32> to vector<4x16xf32>
    %cst_51 = arith.constant dense<0.000000e+00> : vector<12x16xf32>
    %76 = tpu.matmul %0, %75, %cst_51 {dimension_numbers = #tpu.dot_dimension_numbers<[1], [0], [0], [1], [0, 0, 1, 1], [], []>} : vector<12x4xf32>, vector<4x16xf32>, vector<12x16xf32> -> vector<12x16xf32>
    %77 = vector.broadcast %1 : vector<12x1xf32> to vector<12x16xf32>
    %78 = arith.addf %76, %77 : vector<12x16xf32>
    %c0_52 = arith.constant 0 : index
    %c9 = arith.constant 9 : index
    %c0_53 = arith.constant 0 : index
    %79 = vector.load %arg7[%c0_52, %c9, %c0_53] : memref<12x16x16xf32, #tpu.memory_space<vmem>>, vector<12x1x16xf32>
    %80 = vector.shape_cast %79 : vector<12x1x16xf32> to vector<12x16xf32>
    %81 = vector.shape_cast %78 : vector<12x16xf32> to vector<12x1x16xf32>
    tpu.vector_store %arg7[%c0_52, %c9, %c0_53], %81 {strides = array<i32>} : memref<12x16x16xf32, #tpu.memory_space<vmem>>, vector<12x1x16xf32>,
    %c0_54 = arith.constant 0 : index
    %c0_55 = arith.constant 0 : index
    %c160 = arith.constant 160 : index
    %82 = vector.load %arg1[%c0_54, %c0_55, %c160] : memref<1x4x256xf32, #tpu.memory_space<vmem>>, vector<1x4x16xf32>
    %83 = vector.shape_cast %82 : vector<1x4x16xf32> to vector<4x16xf32>
    %cst_56 = arith.constant dense<0.000000e+00> : vector<12x16xf32>
    %84 = tpu.matmul %0, %83, %cst_56 {dimension_numbers = #tpu.dot_dimension_numbers<[1], [0], [0], [1], [0, 0, 1, 1], [], []>} : vector<12x4xf32>, vector<4x16xf32>, vector<12x16xf32> -> vector<12x16xf32>
    %85 = vector.broadcast %1 : vector<12x1xf32> to vector<12x16xf32>
    %86 = arith.addf %84, %85 : vector<12x16xf32>
    %c0_57 = arith.constant 0 : index
    %c10 = arith.constant 10 : index
    %c0_58 = arith.constant 0 : index
    %87 = vector.load %arg7[%c0_57, %c10, %c0_58] : memref<12x16x16xf32, #tpu.memory_space<vmem>>, vector<12x1x16xf32>
    %88 = vector.shape_cast %87 : vector<12x1x16xf32> to vector<12x16xf32>
    %89 = vector.shape_cast %86 : vector<12x16xf32> to vector<12x1x16xf32>
    tpu.vector_store %arg7[%c0_57, %c10, %c0_58], %89 {strides = array<i32>} : memref<12x16x16xf32, #tpu.memory_space<vmem>>, vector<12x1x16xf32>,
    %c0_59 = arith.constant 0 : index
    %c0_60 = arith.constant 0 : index
    %c176 = arith.constant 176 : index
    %90 = vector.load %arg1[%c0_59, %c0_60, %c176] : memref<1x4x256xf32, #tpu.memory_space<vmem>>, vector<1x4x16xf32>
    %91 = vector.shape_cast %90 : vector<1x4x16xf32> to vector<4x16xf32>
    %cst_61 = arith.constant dense<0.000000e+00> : vector<12x16xf32>
    %92 = tpu.matmul %0, %91, %cst_61 {dimension_numbers = #tpu.dot_dimension_numbers<[1], [0], [0], [1], [0, 0, 1, 1], [], []>} : vector<12x4xf32>, vector<4x16xf32>, vector<12x16xf32> -> vector<12x16xf32>
    %93 = vector.broadcast %1 : vector<12x1xf32> to vector<12x16xf32>
    %94 = arith.addf %92, %93 : vector<12x16xf32>
    %c0_62 = arith.constant 0 : index
    %c11 = arith.constant 11 : index
    %c0_63 = arith.constant 0 : index
    %95 = vector.load %arg7[%c0_62, %c11, %c0_63] : memref<12x16x16xf32, #tpu.memory_space<vmem>>, vector<12x1x16xf32>
    %96 = vector.shape_cast %95 : vector<12x1x16xf32> to vector<12x16xf32>
    %97 = vector.shape_cast %94 : vector<12x16xf32> to vector<12x1x16xf32>
    tpu.vector_store %arg7[%c0_62, %c11, %c0_63], %97 {strides = array<i32>} : memref<12x16x16xf32, #tpu.memory_space<vmem>>, vector<12x1x16xf32>,
    %c0_64 = arith.constant 0 : index
    %c0_65 = arith.constant 0 : index
    %c192 = arith.constant 192 : index
    %98 = vector.load %arg1[%c0_64, %c0_65, %c192] : memref<1x4x256xf32, #tpu.memory_space<vmem>>, vector<1x4x16xf32>
    %99 = vector.shape_cast %98 : vector<1x4x16xf32> to vector<4x16xf32>
    %cst_66 = arith.constant dense<0.000000e+00> : vector<12x16xf32>
    %100 = tpu.matmul %0, %99, %cst_66 {dimension_numbers = #tpu.dot_dimension_numbers<[1], [0], [0], [1], [0, 0, 1, 1], [], []>} : vector<12x4xf32>, vector<4x16xf32>, vector<12x16xf32> -> vector<12x16xf32>
    %101 = vector.broadcast %1 : vector<12x1xf32> to vector<12x16xf32>
    %102 = arith.addf %100, %101 : vector<12x16xf32>
    %c0_67 = arith.constant 0 : index
    %c12 = arith.constant 12 : index
    %c0_68 = arith.constant 0 : index
    %103 = vector.load %arg7[%c0_67, %c12, %c0_68] : memref<12x16x16xf32, #tpu.memory_space<vmem>>, vector<12x1x16xf32>
    %104 = vector.shape_cast %103 : vector<12x1x16xf32> to vector<12x16xf32>
    %105 = vector.shape_cast %102 : vector<12x16xf32> to vector<12x1x16xf32>
    tpu.vector_store %arg7[%c0_67, %c12, %c0_68], %105 {strides = array<i32>} : memref<12x16x16xf32, #tpu.memory_space<vmem>>, vector<12x1x16xf32>,
    %c0_69 = arith.constant 0 : index
    %c0_70 = arith.constant 0 : index
    %c208 = arith.constant 208 : index
    %106 = vector.load %arg1[%c0_69, %c0_70, %c208] : memref<1x4x256xf32, #tpu.memory_space<vmem>>, vector<1x4x16xf32>
    %107 = vector.shape_cast %106 : vector<1x4x16xf32> to vector<4x16xf32>
    %cst_71 = arith.constant dense<0.000000e+00> : vector<12x16xf32>
    %108 = tpu.matmul %0, %107, %cst_71 {dimension_numbers = #tpu.dot_dimension_numbers<[1], [0], [0], [1], [0, 0, 1, 1], [], []>} : vector<12x4xf32>, vector<4x16xf32>, vector<12x16xf32> -> vector<12x16xf32>
    %109 = vector.broadcast %1 : vector<12x1xf32> to vector<12x16xf32>
    %110 = arith.addf %108, %109 : vector<12x16xf32>
    %c0_72 = arith.constant 0 : index
    %c13 = arith.constant 13 : index
    %c0_73 = arith.constant 0 : index
    %111 = vector.load %arg7[%c0_72, %c13, %c0_73] : memref<12x16x16xf32, #tpu.memory_space<vmem>>, vector<12x1x16xf32>
    %112 = vector.shape_cast %111 : vector<12x1x16xf32> to vector<12x16xf32>
    %113 = vector.shape_cast %110 : vector<12x16xf32> to vector<12x1x16xf32>
    tpu.vector_store %arg7[%c0_72, %c13, %c0_73], %113 {strides = array<i32>} : memref<12x16x16xf32, #tpu.memory_space<vmem>>, vector<12x1x16xf32>,
    %c0_74 = arith.constant 0 : index
    %c0_75 = arith.constant 0 : index
    %c224 = arith.constant 224 : index
    %114 = vector.load %arg1[%c0_74, %c0_75, %c224] : memref<1x4x256xf32, #tpu.memory_space<vmem>>, vector<1x4x16xf32>
    %115 = vector.shape_cast %114 : vector<1x4x16xf32> to vector<4x16xf32>
    %cst_76 = arith.constant dense<0.000000e+00> : vector<12x16xf32>
    %116 = tpu.matmul %0, %115, %cst_76 {dimension_numbers = #tpu.dot_dimension_numbers<[1], [0], [0], [1], [0, 0, 1, 1], [], []>} : vector<12x4xf32>, vector<4x16xf32>, vector<12x16xf32> -> vector<12x16xf32>
    %117 = vector.broadcast %1 : vector<12x1xf32> to vector<12x16xf32>
    %118 = arith.addf %116, %117 : vector<12x16xf32>
    %c0_77 = arith.constant 0 : index
    %c14 = arith.constant 14 : index
    %c0_78 = arith.constant 0 : index
    %119 = vector.load %arg7[%c0_77, %c14, %c0_78] : memref<12x16x16xf32, #tpu.memory_space<vmem>>, vector<12x1x16xf32>
    %120 = vector.shape_cast %119 : vector<12x1x16xf32> to vector<12x16xf32>
    %121 = vector.shape_cast %118 : vector<12x16xf32> to vector<12x1x16xf32>
    tpu.vector_store %arg7[%c0_77, %c14, %c0_78], %121 {strides = array<i32>} : memref<12x16x16xf32, #tpu.memory_space<vmem>>, vector<12x1x16xf32>,
    %c0_79 = arith.constant 0 : index
    %c0_80 = arith.constant 0 : index
    %c240 = arith.constant 240 : index
    %122 = vector.load %arg1[%c0_79, %c0_80, %c240] : memref<1x4x256xf32, #tpu.memory_space<vmem>>, vector<1x4x16xf32>
    %123 = vector.shape_cast %122 : vector<1x4x16xf32> to vector<4x16xf32>
    %cst_81 = arith.constant dense<0.000000e+00> : vector<12x16xf32>
    %124 = tpu.matmul %0, %123, %cst_81 {dimension_numbers = #tpu.dot_dimension_numbers<[1], [0], [0], [1], [0, 0, 1, 1], [], []>} : vector<12x4xf32>, vector<4x16xf32>, vector<12x16xf32> -> vector<12x16xf32>
    %125 = vector.broadcast %1 : vector<12x1xf32> to vector<12x16xf32>
    %126 = arith.addf %124, %125 : vector<12x16xf32>
    %c0_82 = arith.constant 0 : index
    %c15 = arith.constant 15 : index
    %c0_83 = arith.constant 0 : index
    %127 = vector.load %arg7[%c0_82, %c15, %c0_83] : memref<12x16x16xf32, #tpu.memory_space<vmem>>, vector<12x1x16xf32>
    %128 = vector.shape_cast %127 : vector<12x1x16xf32> to vector<12x16xf32>
    %129 = vector.shape_cast %126 : vector<12x16xf32> to vector<12x1x16xf32>
    tpu.vector_store %arg7[%c0_82, %c15, %c0_83], %129 {strides = array<i32>} : memref<12x16x16xf32, #tpu.memory_space<vmem>>, vector<12x1x16xf32>,
    %c0_84 = arith.constant 0 : index
    %c0_85 = arith.constant 0 : index
    %c0_86 = arith.constant 0 : index
    %130 = vector.load %arg7[%c0_84, %c0_85, %c0_86] : memref<12x16x16xf32, #tpu.memory_space<vmem>>, vector<4x16x16xf32>
    %c4_87 = arith.constant 4 : index
    %c0_88 = arith.constant 0 : index
    %c0_89 = arith.constant 0 : index
    %131 = vector.load %arg7[%c4_87, %c0_88, %c0_89] : memref<12x16x16xf32, #tpu.memory_space<vmem>>, vector<4x16x16xf32>
    %c8_90 = arith.constant 8 : index
    %c0_91 = arith.constant 0 : index
    %c0_92 = arith.constant 0 : index
    %132 = vector.load %arg7[%c8_90, %c0_91, %c0_92] : memref<12x16x16xf32, #tpu.memory_space<vmem>>, vector<4x16x16xf32>
    "tpu.trace_start"() <{level = 10 : i32, message = "ciw,cjw->cij"}> : () -> ()
    %cst_93 = arith.constant dense<0.000000e+00> : vector<4x16x16xf32>
    %133 = tpu.matmul %130, %131, %cst_93 {dimension_numbers = #tpu.dot_dimension_numbers<[2], [2], [1], [1], [0, 0, 0, 1, 1, 1], [0], [0]>} : vector<4x16x16xf32>, vector<4x16x16xf32>, vector<4x16x16xf32> -> vector<4x16x16xf32>
    "tpu.trace_stop"() : () -> ()
    %cst_94 = arith.constant dense<0xFF800000> : vector<16x16xf32>
    %134 = vector.multi_reduction <maximumf>, %133, %cst_94 [0] : vector<4x16x16xf32> to vector<16x16xf32>
    %135 = vector.shape_cast %134 : vector<16x16xf32> to vector<1x16x16xf32>
    %136 = vector.broadcast %135 : vector<1x16x16xf32> to vector<4x16x16xf32>
    %137 = arith.subf %133, %136 : vector<4x16x16xf32>
    %138 = math.exp %137 : vector<4x16x16xf32>
    %cst_95 = arith.constant dense<0.000000e+00> : vector<16x16xf32>
    %139 = vector.multi_reduction <add>, %138, %cst_95 [0] : vector<4x16x16xf32> to vector<16x16xf32>
    %140 = vector.shape_cast %139 : vector<16x16xf32> to vector<1x16x16xf32>
    %141 = tpu.reciprocal %140 {approx = true} : vector<1x16x16xf32> -> vector<1x16x16xf32>
    %142 = vector.broadcast %141 : vector<1x16x16xf32> to vector<4x16x16xf32>
    %143 = arith.mulf %138, %142 : vector<4x16x16xf32>
    "tpu.trace_start"() <{level = 10 : i32, message = "cij,cjw->ciw"}> : () -> ()
    %cst_96 = arith.constant dense<0.000000e+00> : vector<4x16x16xf32>
    %144 = tpu.matmul %143, %132, %cst_96 {dimension_numbers = #tpu.dot_dimension_numbers<[2], [1], [1], [2], [0, 0, 0, 1, 1, 2], [0], [0]>} : vector<4x16x16xf32>, vector<4x16x16xf32>, vector<4x16x16xf32> -> vector<4x16x16xf32>
    "tpu.trace_stop"() : () -> ()
    %c0_97 = arith.constant 0 : index
    %c0_98 = arith.constant 0 : index
    %c0_99 = arith.constant 0 : index
    %145 = vector.load %arg8[%c0_97, %c0_98, %c0_99] : memref<4x16x16xf32, #tpu.memory_space<vmem>>, vector<4x16x16xf32>
    tpu.vector_store %arg8[%c0_97, %c0_98, %c0_99], %144 {strides = array<i32>} : memref<4x16x16xf32, #tpu.memory_space<vmem>>, vector<4x16x16xf32>,
    %c0_100 = arith.constant 0 : index
    %c0_101 = arith.constant 0 : index
    %146 = vector.load %arg4[%c0_100, %c0_101] : memref<4x4xf32, #tpu.memory_space<vmem>>, vector<4x4xf32>
    %c0_102 = arith.constant 0 : index
    %c0_103 = arith.constant 0 : index
    %147 = vector.load %arg5[%c0_102, %c0_103] : memref<4x1xf32, #tpu.memory_space<vmem>>, vector<4x1xf32>
    %c0_104 = arith.constant 0 : index
    %c0_105 = arith.constant 0 : index
    %c0_106 = arith.constant 0 : index
    %148 = vector.load %arg1[%c0_104, %c0_105, %c0_106] : memref<1x4x256xf32, #tpu.memory_space<vmem>>, vector<1x4x16xf32>
    %149 = vector.shape_cast %148 : vector<1x4x16xf32> to vector<4x16xf32>
    %c0_107 = arith.constant 0 : index
    %c0_108 = arith.constant 0 : index
    %c0_109 = arith.constant 0 : index
    %150 = vector.load %arg8[%c0_107, %c0_108, %c0_109] : memref<4x16x16xf32, #tpu.memory_space<vmem>>, vector<4x1x16xf32>
    %151 = vector.shape_cast %150 : vector<4x1x16xf32> to vector<4x16xf32>
    %cst_110 = arith.constant dense<0.000000e+00> : vector<4x16xf32>
    %152 = tpu.matmul %146, %151, %cst_110 {dimension_numbers = #tpu.dot_dimension_numbers<[1], [0], [0], [1], [0, 0, 1, 1], [], []>} : vector<4x4xf32>, vector<4x16xf32>, vector<4x16xf32> -> vector<4x16xf32>
    %153 = vector.broadcast %147 : vector<4x1xf32> to vector<4x16xf32>
    %154 = arith.addf %152, %153 : vector<4x16xf32>
    %155 = arith.addf %154, %149 : vector<4x16xf32>
    %c0_111 = arith.constant 0 : index
    %c0_112 = arith.constant 0 : index
    %c0_113 = arith.constant 0 : index
    %156 = vector.load %arg6[%c0_111, %c0_112, %c0_113] : memref<1x4x256xf32, #tpu.memory_space<vmem>>, vector<1x4x16xf32>
    %157 = vector.shape_cast %156 : vector<1x4x16xf32> to vector<4x16xf32>
    %158 = vector.shape_cast %155 : vector<4x16xf32> to vector<1x4x16xf32>
    tpu.vector_store %arg6[%c0_111, %c0_112, %c0_113], %158 {strides = array<i32>} : memref<1x4x256xf32, #tpu.memory_space<vmem>>, vector<1x4x16xf32>,
    %c0_114 = arith.constant 0 : index
    %c0_115 = arith.constant 0 : index
    %c16_116 = arith.constant 16 : index
    %159 = vector.load %arg1[%c0_114, %c0_115, %c16_116] : memref<1x4x256xf32, #tpu.memory_space<vmem>>, vector<1x4x16xf32>
    %160 = vector.shape_cast %159 : vector<1x4x16xf32> to vector<4x16xf32>
    %c0_117 = arith.constant 0 : index
    %c1_118 = arith.constant 1 : index
    %c0_119 = arith.constant 0 : index
    %161 = vector.load %arg8[%c0_117, %c1_118, %c0_119] : memref<4x16x16xf32, #tpu.memory_space<vmem>>, vector<4x1x16xf32>
    %162 = vector.shape_cast %161 : vector<4x1x16xf32> to vector<4x16xf32>
    %cst_120 = arith.constant dense<0.000000e+00> : vector<4x16xf32>
    %163 = tpu.matmul %146, %162, %cst_120 {dimension_numbers = #tpu.dot_dimension_numbers<[1], [0], [0], [1], [0, 0, 1, 1], [], []>} : vector<4x4xf32>, vector<4x16xf32>, vector<4x16xf32> -> vector<4x16xf32>
    %164 = vector.broadcast %147 : vector<4x1xf32> to vector<4x16xf32>
    %165 = arith.addf %163, %164 : vector<4x16xf32>
    %166 = arith.addf %165, %160 : vector<4x16xf32>
    %c0_121 = arith.constant 0 : index
    %c0_122 = arith.constant 0 : index
    %c16_123 = arith.constant 16 : index
    %167 = vector.load %arg6[%c0_121, %c0_122, %c16_123] : memref<1x4x256xf32, #tpu.memory_space<vmem>>, vector<1x4x16xf32>
    %168 = vector.shape_cast %167 : vector<1x4x16xf32> to vector<4x16xf32>
    %169 = vector.shape_cast %166 : vector<4x16xf32> to vector<1x4x16xf32>
    tpu.vector_store %arg6[%c0_121, %c0_122, %c16_123], %169 {strides = array<i32>} : memref<1x4x256xf32, #tpu.memory_space<vmem>>, vector<1x4x16xf32>,
    %c0_124 = arith.constant 0 : index
    %c0_125 = arith.constant 0 : index
    %c32_126 = arith.constant 32 : index
    %170 = vector.load %arg1[%c0_124, %c0_125, %c32_126] : memref<1x4x256xf32, #tpu.memory_space<vmem>>, vector<1x4x16xf32>
    %171 = vector.shape_cast %170 : vector<1x4x16xf32> to vector<4x16xf32>
    %c0_127 = arith.constant 0 : index
    %c2_128 = arith.constant 2 : index
    %c0_129 = arith.constant 0 : index
    %172 = vector.load %arg8[%c0_127, %c2_128, %c0_129] : memref<4x16x16xf32, #tpu.memory_space<vmem>>, vector<4x1x16xf32>
    %173 = vector.shape_cast %172 : vector<4x1x16xf32> to vector<4x16xf32>
    %cst_130 = arith.constant dense<0.000000e+00> : vector<4x16xf32>
    %174 = tpu.matmul %146, %173, %cst_130 {dimension_numbers = #tpu.dot_dimension_numbers<[1], [0], [0], [1], [0, 0, 1, 1], [], []>} : vector<4x4xf32>, vector<4x16xf32>, vector<4x16xf32> -> vector<4x16xf32>
    %175 = vector.broadcast %147 : vector<4x1xf32> to vector<4x16xf32>
    %176 = arith.addf %174, %175 : vector<4x16xf32>
    %177 = arith.addf %176, %171 : vector<4x16xf32>
    %c0_131 = arith.constant 0 : index
    %c0_132 = arith.constant 0 : index
    %c32_133 = arith.constant 32 : index
    %178 = vector.load %arg6[%c0_131, %c0_132, %c32_133] : memref<1x4x256xf32, #tpu.memory_space<vmem>>, vector<1x4x16xf32>
    %179 = vector.shape_cast %178 : vector<1x4x16xf32> to vector<4x16xf32>
    %180 = vector.shape_cast %177 : vector<4x16xf32> to vector<1x4x16xf32>
    tpu.vector_store %arg6[%c0_131, %c0_132, %c32_133], %180 {strides = array<i32>} : memref<1x4x256xf32, #tpu.memory_space<vmem>>, vector<1x4x16xf32>,
    %c0_134 = arith.constant 0 : index
    %c0_135 = arith.constant 0 : index
    %c48_136 = arith.constant 48 : index
    %181 = vector.load %arg1[%c0_134, %c0_135, %c48_136] : memref<1x4x256xf32, #tpu.memory_space<vmem>>, vector<1x4x16xf32>
    %182 = vector.shape_cast %181 : vector<1x4x16xf32> to vector<4x16xf32>
    %c0_137 = arith.constant 0 : index
    %c3_138 = arith.constant 3 : index
    %c0_139 = arith.constant 0 : index
    %183 = vector.load %arg8[%c0_137, %c3_138, %c0_139] : memref<4x16x16xf32, #tpu.memory_space<vmem>>, vector<4x1x16xf32>
    %184 = vector.shape_cast %183 : vector<4x1x16xf32> to vector<4x16xf32>
    %cst_140 = arith.constant dense<0.000000e+00> : vector<4x16xf32>
    %185 = tpu.matmul %146, %184, %cst_140 {dimension_numbers = #tpu.dot_dimension_numbers<[1], [0], [0], [1], [0, 0, 1, 1], [], []>} : vector<4x4xf32>, vector<4x16xf32>, vector<4x16xf32> -> vector<4x16xf32>
    %186 = vector.broadcast %147 : vector<4x1xf32> to vector<4x16xf32>
    %187 = arith.addf %185, %186 : vector<4x16xf32>
    %188 = arith.addf %187, %182 : vector<4x16xf32>
    %c0_141 = arith.constant 0 : index
    %c0_142 = arith.constant 0 : index
    %c48_143 = arith.constant 48 : index
    %189 = vector.load %arg6[%c0_141, %c0_142, %c48_143] : memref<1x4x256xf32, #tpu.memory_space<vmem>>, vector<1x4x16xf32>
    %190 = vector.shape_cast %189 : vector<1x4x16xf32> to vector<4x16xf32>
    %191 = vector.shape_cast %188 : vector<4x16xf32> to vector<1x4x16xf32>
    tpu.vector_store %arg6[%c0_141, %c0_142, %c48_143], %191 {strides = array<i32>} : memref<1x4x256xf32, #tpu.memory_space<vmem>>, vector<1x4x16xf32>,
    %c0_144 = arith.constant 0 : index
    %c0_145 = arith.constant 0 : index
    %c64_146 = arith.constant 64 : index
    %192 = vector.load %arg1[%c0_144, %c0_145, %c64_146] : memref<1x4x256xf32, #tpu.memory_space<vmem>>, vector<1x4x16xf32>
    %193 = vector.shape_cast %192 : vector<1x4x16xf32> to vector<4x16xf32>
    %c0_147 = arith.constant 0 : index
    %c4_148 = arith.constant 4 : index
    %c0_149 = arith.constant 0 : index
    %194 = vector.load %arg8[%c0_147, %c4_148, %c0_149] : memref<4x16x16xf32, #tpu.memory_space<vmem>>, vector<4x1x16xf32>
    %195 = vector.shape_cast %194 : vector<4x1x16xf32> to vector<4x16xf32>
    %cst_150 = arith.constant dense<0.000000e+00> : vector<4x16xf32>
    %196 = tpu.matmul %146, %195, %cst_150 {dimension_numbers = #tpu.dot_dimension_numbers<[1], [0], [0], [1], [0, 0, 1, 1], [], []>} : vector<4x4xf32>, vector<4x16xf32>, vector<4x16xf32> -> vector<4x16xf32>
    %197 = vector.broadcast %147 : vector<4x1xf32> to vector<4x16xf32>
    %198 = arith.addf %196, %197 : vector<4x16xf32>
    %199 = arith.addf %198, %193 : vector<4x16xf32>
    %c0_151 = arith.constant 0 : index
    %c0_152 = arith.constant 0 : index
    %c64_153 = arith.constant 64 : index
    %200 = vector.load %arg6[%c0_151, %c0_152, %c64_153] : memref<1x4x256xf32, #tpu.memory_space<vmem>>, vector<1x4x16xf32>
    %201 = vector.shape_cast %200 : vector<1x4x16xf32> to vector<4x16xf32>
    %202 = vector.shape_cast %199 : vector<4x16xf32> to vector<1x4x16xf32>
    tpu.vector_store %arg6[%c0_151, %c0_152, %c64_153], %202 {strides = array<i32>} : memref<1x4x256xf32, #tpu.memory_space<vmem>>, vector<1x4x16xf32>,
    %c0_154 = arith.constant 0 : index
    %c0_155 = arith.constant 0 : index
    %c80_156 = arith.constant 80 : index
    %203 = vector.load %arg1[%c0_154, %c0_155, %c80_156] : memref<1x4x256xf32, #tpu.memory_space<vmem>>, vector<1x4x16xf32>
    %204 = vector.shape_cast %203 : vector<1x4x16xf32> to vector<4x16xf32>
    %c0_157 = arith.constant 0 : index
    %c5_158 = arith.constant 5 : index
    %c0_159 = arith.constant 0 : index
    %205 = vector.load %arg8[%c0_157, %c5_158, %c0_159] : memref<4x16x16xf32, #tpu.memory_space<vmem>>, vector<4x1x16xf32>
    %206 = vector.shape_cast %205 : vector<4x1x16xf32> to vector<4x16xf32>
    %cst_160 = arith.constant dense<0.000000e+00> : vector<4x16xf32>
    %207 = tpu.matmul %146, %206, %cst_160 {dimension_numbers = #tpu.dot_dimension_numbers<[1], [0], [0], [1], [0, 0, 1, 1], [], []>} : vector<4x4xf32>, vector<4x16xf32>, vector<4x16xf32> -> vector<4x16xf32>
    %208 = vector.broadcast %147 : vector<4x1xf32> to vector<4x16xf32>
    %209 = arith.addf %207, %208 : vector<4x16xf32>
    %210 = arith.addf %209, %204 : vector<4x16xf32>
    %c0_161 = arith.constant 0 : index
    %c0_162 = arith.constant 0 : index
    %c80_163 = arith.constant 80 : index
    %211 = vector.load %arg6[%c0_161, %c0_162, %c80_163] : memref<1x4x256xf32, #tpu.memory_space<vmem>>, vector<1x4x16xf32>
    %212 = vector.shape_cast %211 : vector<1x4x16xf32> to vector<4x16xf32>
    %213 = vector.shape_cast %210 : vector<4x16xf32> to vector<1x4x16xf32>
    tpu.vector_store %arg6[%c0_161, %c0_162, %c80_163], %213 {strides = array<i32>} : memref<1x4x256xf32, #tpu.memory_space<vmem>>, vector<1x4x16xf32>,
    %c0_164 = arith.constant 0 : index
    %c0_165 = arith.constant 0 : index
    %c96_166 = arith.constant 96 : index
    %214 = vector.load %arg1[%c0_164, %c0_165, %c96_166] : memref<1x4x256xf32, #tpu.memory_space<vmem>>, vector<1x4x16xf32>
    %215 = vector.shape_cast %214 : vector<1x4x16xf32> to vector<4x16xf32>
    %c0_167 = arith.constant 0 : index
    %c6_168 = arith.constant 6 : index
    %c0_169 = arith.constant 0 : index
    %216 = vector.load %arg8[%c0_167, %c6_168, %c0_169] : memref<4x16x16xf32, #tpu.memory_space<vmem>>, vector<4x1x16xf32>
    %217 = vector.shape_cast %216 : vector<4x1x16xf32> to vector<4x16xf32>
    %cst_170 = arith.constant dense<0.000000e+00> : vector<4x16xf32>
    %218 = tpu.matmul %146, %217, %cst_170 {dimension_numbers = #tpu.dot_dimension_numbers<[1], [0], [0], [1], [0, 0, 1, 1], [], []>} : vector<4x4xf32>, vector<4x16xf32>, vector<4x16xf32> -> vector<4x16xf32>
    %219 = vector.broadcast %147 : vector<4x1xf32> to vector<4x16xf32>
    %220 = arith.addf %218, %219 : vector<4x16xf32>
    %221 = arith.addf %220, %215 : vector<4x16xf32>
    %c0_171 = arith.constant 0 : index
    %c0_172 = arith.constant 0 : index
    %c96_173 = arith.constant 96 : index
    %222 = vector.load %arg6[%c0_171, %c0_172, %c96_173] : memref<1x4x256xf32, #tpu.memory_space<vmem>>, vector<1x4x16xf32>
    %223 = vector.shape_cast %222 : vector<1x4x16xf32> to vector<4x16xf32>
    %224 = vector.shape_cast %221 : vector<4x16xf32> to vector<1x4x16xf32>
    tpu.vector_store %arg6[%c0_171, %c0_172, %c96_173], %224 {strides = array<i32>} : memref<1x4x256xf32, #tpu.memory_space<vmem>>, vector<1x4x16xf32>,
    %c0_174 = arith.constant 0 : index
    %c0_175 = arith.constant 0 : index
    %c112_176 = arith.constant 112 : index
    %225 = vector.load %arg1[%c0_174, %c0_175, %c112_176] : memref<1x4x256xf32, #tpu.memory_space<vmem>>, vector<1x4x16xf32>
    %226 = vector.shape_cast %225 : vector<1x4x16xf32> to vector<4x16xf32>
    %c0_177 = arith.constant 0 : index
    %c7_178 = arith.constant 7 : index
    %c0_179 = arith.constant 0 : index
    %227 = vector.load %arg8[%c0_177, %c7_178, %c0_179] : memref<4x16x16xf32, #tpu.memory_space<vmem>>, vector<4x1x16xf32>
    %228 = vector.shape_cast %227 : vector<4x1x16xf32> to vector<4x16xf32>
    %cst_180 = arith.constant dense<0.000000e+00> : vector<4x16xf32>
    %229 = tpu.matmul %146, %228, %cst_180 {dimension_numbers = #tpu.dot_dimension_numbers<[1], [0], [0], [1], [0, 0, 1, 1], [], []>} : vector<4x4xf32>, vector<4x16xf32>, vector<4x16xf32> -> vector<4x16xf32>
    %230 = vector.broadcast %147 : vector<4x1xf32> to vector<4x16xf32>
    %231 = arith.addf %229, %230 : vector<4x16xf32>
    %232 = arith.addf %231, %226 : vector<4x16xf32>
    %c0_181 = arith.constant 0 : index
    %c0_182 = arith.constant 0 : index
    %c112_183 = arith.constant 112 : index
    %233 = vector.load %arg6[%c0_181, %c0_182, %c112_183] : memref<1x4x256xf32, #tpu.memory_space<vmem>>, vector<1x4x16xf32>
    %234 = vector.shape_cast %233 : vector<1x4x16xf32> to vector<4x16xf32>
    %235 = vector.shape_cast %232 : vector<4x16xf32> to vector<1x4x16xf32>
    tpu.vector_store %arg6[%c0_181, %c0_182, %c112_183], %235 {strides = array<i32>} : memref<1x4x256xf32, #tpu.memory_space<vmem>>, vector<1x4x16xf32>,
    %c0_184 = arith.constant 0 : index
    %c0_185 = arith.constant 0 : index
    %c128_186 = arith.constant 128 : index
    %236 = vector.load %arg1[%c0_184, %c0_185, %c128_186] : memref<1x4x256xf32, #tpu.memory_space<vmem>>, vector<1x4x16xf32>
    %237 = vector.shape_cast %236 : vector<1x4x16xf32> to vector<4x16xf32>
    %c0_187 = arith.constant 0 : index
    %c8_188 = arith.constant 8 : index
    %c0_189 = arith.constant 0 : index
    %238 = vector.load %arg8[%c0_187, %c8_188, %c0_189] : memref<4x16x16xf32, #tpu.memory_space<vmem>>, vector<4x1x16xf32>
    %239 = vector.shape_cast %238 : vector<4x1x16xf32> to vector<4x16xf32>
    %cst_190 = arith.constant dense<0.000000e+00> : vector<4x16xf32>
    %240 = tpu.matmul %146, %239, %cst_190 {dimension_numbers = #tpu.dot_dimension_numbers<[1], [0], [0], [1], [0, 0, 1, 1], [], []>} : vector<4x4xf32>, vector<4x16xf32>, vector<4x16xf32> -> vector<4x16xf32>
    %241 = vector.broadcast %147 : vector<4x1xf32> to vector<4x16xf32>
    %242 = arith.addf %240, %241 : vector<4x16xf32>
    %243 = arith.addf %242, %237 : vector<4x16xf32>
    %c0_191 = arith.constant 0 : index
    %c0_192 = arith.constant 0 : index
    %c128_193 = arith.constant 128 : index
    %244 = vector.load %arg6[%c0_191, %c0_192, %c128_193] : memref<1x4x256xf32, #tpu.memory_space<vmem>>, vector<1x4x16xf32>
    %245 = vector.shape_cast %244 : vector<1x4x16xf32> to vector<4x16xf32>
    %246 = vector.shape_cast %243 : vector<4x16xf32> to vector<1x4x16xf32>
    tpu.vector_store %arg6[%c0_191, %c0_192, %c128_193], %246 {strides = array<i32>} : memref<1x4x256xf32, #tpu.memory_space<vmem>>, vector<1x4x16xf32>,
    %c0_194 = arith.constant 0 : index
    %c0_195 = arith.constant 0 : index
    %c144_196 = arith.constant 144 : index
    %247 = vector.load %arg1[%c0_194, %c0_195, %c144_196] : memref<1x4x256xf32, #tpu.memory_space<vmem>>, vector<1x4x16xf32>
    %248 = vector.shape_cast %247 : vector<1x4x16xf32> to vector<4x16xf32>
    %c0_197 = arith.constant 0 : index
    %c9_198 = arith.constant 9 : index
    %c0_199 = arith.constant 0 : index
    %249 = vector.load %arg8[%c0_197, %c9_198, %c0_199] : memref<4x16x16xf32, #tpu.memory_space<vmem>>, vector<4x1x16xf32>
    %250 = vector.shape_cast %249 : vector<4x1x16xf32> to vector<4x16xf32>
    %cst_200 = arith.constant dense<0.000000e+00> : vector<4x16xf32>
    %251 = tpu.matmul %146, %250, %cst_200 {dimension_numbers = #tpu.dot_dimension_numbers<[1], [0], [0], [1], [0, 0, 1, 1], [], []>} : vector<4x4xf32>, vector<4x16xf32>, vector<4x16xf32> -> vector<4x16xf32>
    %252 = vector.broadcast %147 : vector<4x1xf32> to vector<4x16xf32>
    %253 = arith.addf %251, %252 : vector<4x16xf32>
    %254 = arith.addf %253, %248 : vector<4x16xf32>
    %c0_201 = arith.constant 0 : index
    %c0_202 = arith.constant 0 : index
    %c144_203 = arith.constant 144 : index
    %255 = vector.load %arg6[%c0_201, %c0_202, %c144_203] : memref<1x4x256xf32, #tpu.memory_space<vmem>>, vector<1x4x16xf32>
    %256 = vector.shape_cast %255 : vector<1x4x16xf32> to vector<4x16xf32>
    %257 = vector.shape_cast %254 : vector<4x16xf32> to vector<1x4x16xf32>
    tpu.vector_store %arg6[%c0_201, %c0_202, %c144_203], %257 {strides = array<i32>} : memref<1x4x256xf32, #tpu.memory_space<vmem>>, vector<1x4x16xf32>,
    %c0_204 = arith.constant 0 : index
    %c0_205 = arith.constant 0 : index
    %c160_206 = arith.constant 160 : index
    %258 = vector.load %arg1[%c0_204, %c0_205, %c160_206] : memref<1x4x256xf32, #tpu.memory_space<vmem>>, vector<1x4x16xf32>
    %259 = vector.shape_cast %258 : vector<1x4x16xf32> to vector<4x16xf32>
    %c0_207 = arith.constant 0 : index
    %c10_208 = arith.constant 10 : index
    %c0_209 = arith.constant 0 : index
    %260 = vector.load %arg8[%c0_207, %c10_208, %c0_209] : memref<4x16x16xf32, #tpu.memory_space<vmem>>, vector<4x1x16xf32>
    %261 = vector.shape_cast %260 : vector<4x1x16xf32> to vector<4x16xf32>
    %cst_210 = arith.constant dense<0.000000e+00> : vector<4x16xf32>
    %262 = tpu.matmul %146, %261, %cst_210 {dimension_numbers = #tpu.dot_dimension_numbers<[1], [0], [0], [1], [0, 0, 1, 1], [], []>} : vector<4x4xf32>, vector<4x16xf32>, vector<4x16xf32> -> vector<4x16xf32>
    %263 = vector.broadcast %147 : vector<4x1xf32> to vector<4x16xf32>
    %264 = arith.addf %262, %263 : vector<4x16xf32>
    %265 = arith.addf %264, %259 : vector<4x16xf32>
    %c0_211 = arith.constant 0 : index
    %c0_212 = arith.constant 0 : index
    %c160_213 = arith.constant 160 : index
    %266 = vector.load %arg6[%c0_211, %c0_212, %c160_213] : memref<1x4x256xf32, #tpu.memory_space<vmem>>, vector<1x4x16xf32>
    %267 = vector.shape_cast %266 : vector<1x4x16xf32> to vector<4x16xf32>
    %268 = vector.shape_cast %265 : vector<4x16xf32> to vector<1x4x16xf32>
    tpu.vector_store %arg6[%c0_211, %c0_212, %c160_213], %268 {strides = array<i32>} : memref<1x4x256xf32, #tpu.memory_space<vmem>>, vector<1x4x16xf32>,
    %c0_214 = arith.constant 0 : index
    %c0_215 = arith.constant 0 : index
    %c176_216 = arith.constant 176 : index
    %269 = vector.load %arg1[%c0_214, %c0_215, %c176_216] : memref<1x4x256xf32, #tpu.memory_space<vmem>>, vector<1x4x16xf32>
    %270 = vector.shape_cast %269 : vector<1x4x16xf32> to vector<4x16xf32>
    %c0_217 = arith.constant 0 : index
    %c11_218 = arith.constant 11 : index
    %c0_219 = arith.constant 0 : index
    %271 = vector.load %arg8[%c0_217, %c11_218, %c0_219] : memref<4x16x16xf32, #tpu.memory_space<vmem>>, vector<4x1x16xf32>
    %272 = vector.shape_cast %271 : vector<4x1x16xf32> to vector<4x16xf32>
    %cst_220 = arith.constant dense<0.000000e+00> : vector<4x16xf32>
    %273 = tpu.matmul %146, %272, %cst_220 {dimension_numbers = #tpu.dot_dimension_numbers<[1], [0], [0], [1], [0, 0, 1, 1], [], []>} : vector<4x4xf32>, vector<4x16xf32>, vector<4x16xf32> -> vector<4x16xf32>
    %274 = vector.broadcast %147 : vector<4x1xf32> to vector<4x16xf32>
    %275 = arith.addf %273, %274 : vector<4x16xf32>
    %276 = arith.addf %275, %270 : vector<4x16xf32>
    %c0_221 = arith.constant 0 : index
    %c0_222 = arith.constant 0 : index
    %c176_223 = arith.constant 176 : index
    %277 = vector.load %arg6[%c0_221, %c0_222, %c176_223] : memref<1x4x256xf32, #tpu.memory_space<vmem>>, vector<1x4x16xf32>
    %278 = vector.shape_cast %277 : vector<1x4x16xf32> to vector<4x16xf32>
    %279 = vector.shape_cast %276 : vector<4x16xf32> to vector<1x4x16xf32>
    tpu.vector_store %arg6[%c0_221, %c0_222, %c176_223], %279 {strides = array<i32>} : memref<1x4x256xf32, #tpu.memory_space<vmem>>, vector<1x4x16xf32>,
    %c0_224 = arith.constant 0 : index
    %c0_225 = arith.constant 0 : index
    %c192_226 = arith.constant 192 : index
    %280 = vector.load %arg1[%c0_224, %c0_225, %c192_226] : memref<1x4x256xf32, #tpu.memory_space<vmem>>, vector<1x4x16xf32>
    %281 = vector.shape_cast %280 : vector<1x4x16xf32> to vector<4x16xf32>
    %c0_227 = arith.constant 0 : index
    %c12_228 = arith.constant 12 : index
    %c0_229 = arith.constant 0 : index
    %282 = vector.load %arg8[%c0_227, %c12_228, %c0_229] : memref<4x16x16xf32, #tpu.memory_space<vmem>>, vector<4x1x16xf32>
    %283 = vector.shape_cast %282 : vector<4x1x16xf32> to vector<4x16xf32>
    %cst_230 = arith.constant dense<0.000000e+00> : vector<4x16xf32>
    %284 = tpu.matmul %146, %283, %cst_230 {dimension_numbers = #tpu.dot_dimension_numbers<[1], [0], [0], [1], [0, 0, 1, 1], [], []>} : vector<4x4xf32>, vector<4x16xf32>, vector<4x16xf32> -> vector<4x16xf32>
    %285 = vector.broadcast %147 : vector<4x1xf32> to vector<4x16xf32>
    %286 = arith.addf %284, %285 : vector<4x16xf32>
    %287 = arith.addf %286, %281 : vector<4x16xf32>
    %c0_231 = arith.constant 0 : index
    %c0_232 = arith.constant 0 : index
    %c192_233 = arith.constant 192 : index
    %288 = vector.load %arg6[%c0_231, %c0_232, %c192_233] : memref<1x4x256xf32, #tpu.memory_space<vmem>>, vector<1x4x16xf32>
    %289 = vector.shape_cast %288 : vector<1x4x16xf32> to vector<4x16xf32>
    %290 = vector.shape_cast %287 : vector<4x16xf32> to vector<1x4x16xf32>
    tpu.vector_store %arg6[%c0_231, %c0_232, %c192_233], %290 {strides = array<i32>} : memref<1x4x256xf32, #tpu.memory_space<vmem>>, vector<1x4x16xf32>,
    %c0_234 = arith.constant 0 : index
    %c0_235 = arith.constant 0 : index
    %c208_236 = arith.constant 208 : index
    %291 = vector.load %arg1[%c0_234, %c0_235, %c208_236] : memref<1x4x256xf32, #tpu.memory_space<vmem>>, vector<1x4x16xf32>
    %292 = vector.shape_cast %291 : vector<1x4x16xf32> to vector<4x16xf32>
    %c0_237 = arith.constant 0 : index
    %c13_238 = arith.constant 13 : index
    %c0_239 = arith.constant 0 : index
    %293 = vector.load %arg8[%c0_237, %c13_238, %c0_239] : memref<4x16x16xf32, #tpu.memory_space<vmem>>, vector<4x1x16xf32>
    %294 = vector.shape_cast %293 : vector<4x1x16xf32> to vector<4x16xf32>
    %cst_240 = arith.constant dense<0.000000e+00> : vector<4x16xf32>
    %295 = tpu.matmul %146, %294, %cst_240 {dimension_numbers = #tpu.dot_dimension_numbers<[1], [0], [0], [1], [0, 0, 1, 1], [], []>} : vector<4x4xf32>, vector<4x16xf32>, vector<4x16xf32> -> vector<4x16xf32>
    %296 = vector.broadcast %147 : vector<4x1xf32> to vector<4x16xf32>
    %297 = arith.addf %295, %296 : vector<4x16xf32>
    %298 = arith.addf %297, %292 : vector<4x16xf32>
    %c0_241 = arith.constant 0 : index
    %c0_242 = arith.constant 0 : index
    %c208_243 = arith.constant 208 : index
    %299 = vector.load %arg6[%c0_241, %c0_242, %c208_243] : memref<1x4x256xf32, #tpu.memory_space<vmem>>, vector<1x4x16xf32>
    %300 = vector.shape_cast %299 : vector<1x4x16xf32> to vector<4x16xf32>
    %301 = vector.shape_cast %298 : vector<4x16xf32> to vector<1x4x16xf32>
    tpu.vector_store %arg6[%c0_241, %c0_242, %c208_243], %301 {strides = array<i32>} : memref<1x4x256xf32, #tpu.memory_space<vmem>>, vector<1x4x16xf32>,
    %c0_244 = arith.constant 0 : index
    %c0_245 = arith.constant 0 : index
    %c224_246 = arith.constant 224 : index
    %302 = vector.load %arg1[%c0_244, %c0_245, %c224_246] : memref<1x4x256xf32, #tpu.memory_space<vmem>>, vector<1x4x16xf32>
    %303 = vector.shape_cast %302 : vector<1x4x16xf32> to vector<4x16xf32>
    %c0_247 = arith.constant 0 : index
    %c14_248 = arith.constant 14 : index
    %c0_249 = arith.constant 0 : index
    %304 = vector.load %arg8[%c0_247, %c14_248, %c0_249] : memref<4x16x16xf32, #tpu.memory_space<vmem>>, vector<4x1x16xf32>
    %305 = vector.shape_cast %304 : vector<4x1x16xf32> to vector<4x16xf32>
    %cst_250 = arith.constant dense<0.000000e+00> : vector<4x16xf32>
    %306 = tpu.matmul %146, %305, %cst_250 {dimension_numbers = #tpu.dot_dimension_numbers<[1], [0], [0], [1], [0, 0, 1, 1], [], []>} : vector<4x4xf32>, vector<4x16xf32>, vector<4x16xf32> -> vector<4x16xf32>
    %307 = vector.broadcast %147 : vector<4x1xf32> to vector<4x16xf32>
    %308 = arith.addf %306, %307 : vector<4x16xf32>
    %309 = arith.addf %308, %303 : vector<4x16xf32>
    %c0_251 = arith.constant 0 : index
    %c0_252 = arith.constant 0 : index
    %c224_253 = arith.constant 224 : index
    %310 = vector.load %arg6[%c0_251, %c0_252, %c224_253] : memref<1x4x256xf32, #tpu.memory_space<vmem>>, vector<1x4x16xf32>
    %311 = vector.shape_cast %310 : vector<1x4x16xf32> to vector<4x16xf32>
    %312 = vector.shape_cast %309 : vector<4x16xf32> to vector<1x4x16xf32>
    tpu.vector_store %arg6[%c0_251, %c0_252, %c224_253], %312 {strides = array<i32>} : memref<1x4x256xf32, #tpu.memory_space<vmem>>, vector<1x4x16xf32>,
    %c0_254 = arith.constant 0 : index
    %c0_255 = arith.constant 0 : index
    %c240_256 = arith.constant 240 : index
    %313 = vector.load %arg1[%c0_254, %c0_255, %c240_256] : memref<1x4x256xf32, #tpu.memory_space<vmem>>, vector<1x4x16xf32>
    %314 = vector.shape_cast %313 : vector<1x4x16xf32> to vector<4x16xf32>
    %c0_257 = arith.constant 0 : index
    %c15_258 = arith.constant 15 : index
    %c0_259 = arith.constant 0 : index
    %315 = vector.load %arg8[%c0_257, %c15_258, %c0_259] : memref<4x16x16xf32, #tpu.memory_space<vmem>>, vector<4x1x16xf32>
    %316 = vector.shape_cast %315 : vector<4x1x16xf32> to vector<4x16xf32>
    %cst_260 = arith.constant dense<0.000000e+00> : vector<4x16xf32>
    %317 = tpu.matmul %146, %316, %cst_260 {dimension_numbers = #tpu.dot_dimension_numbers<[1], [0], [0], [1], [0, 0, 1, 1], [], []>} : vector<4x4xf32>, vector<4x16xf32>, vector<4x16xf32> -> vector<4x16xf32>
    %318 = vector.broadcast %147 : vector<4x1xf32> to vector<4x16xf32>
    %319 = arith.addf %317, %318 : vector<4x16xf32>
    %320 = arith.addf %319, %314 : vector<4x16xf32>
    %c0_261 = arith.constant 0 : index
    %c0_262 = arith.constant 0 : index
    %c240_263 = arith.constant 240 : index
    %321 = vector.load %arg6[%c0_261, %c0_262, %c240_263] : memref<1x4x256xf32, #tpu.memory_space<vmem>>, vector<1x4x16xf32>
    %322 = vector.shape_cast %321 : vector<1x4x16xf32> to vector<4x16xf32>
    %323 = vector.shape_cast %320 : vector<4x16xf32> to vector<1x4x16xf32>
    tpu.vector_store %arg6[%c0_261, %c0_262, %c240_263], %323 {strides = array<i32>} : memref<1x4x256xf32, #tpu.memory_space<vmem>>, vector<1x4x16xf32>,
    return
  }
  func.func @transform_0(%arg0: i32) -> (i32, i32, i32) {
    %c0_i32 = arith.constant 0 : i32
    %c0_i32_0 = arith.constant 0 : i32
    %c0_i32_1 = arith.constant 0 : i32
    return %arg0, %c0_i32, %c0_i32_0 : i32, i32, i32
  }
  func.func @transform_1(%arg0: i32) -> (i32, i32) {
    %c0_i32 = arith.constant 0 : i32
    %c0_i32_0 = arith.constant 0 : i32
    %c0_i32_1 = arith.constant 0 : i32
    return %c0_i32, %c0_i32_0 : i32, i32
  }
  func.func @transform_2(%arg0: i32) -> (i32, i32) {
    %c0_i32 = arith.constant 0 : i32
    %c0_i32_0 = arith.constant 0 : i32
    %c0_i32_1 = arith.constant 0 : i32
    return %c0_i32, %c0_i32_0 : i32, i32
  }
  func.func @transform_3(%arg0: i32) -> (i32, i32) {
    %c0_i32 = arith.constant 0 : i32
    %c0_i32_0 = arith.constant 0 : i32
    %c0_i32_1 = arith.constant 0 : i32
    return %c0_i32, %c0_i32_0 : i32, i32
  }
  func.func @transform_4(%arg0: i32) -> (i32, i32) {
    %c0_i32 = arith.constant 0 : i32
    %c0_i32_0 = arith.constant 0 : i32
    %c0_i32_1 = arith.constant 0 : i32
    return %c0_i32, %c0_i32_0 : i32, i32
  }
  func.func @transform_5(%arg0: i32) -> (i32, i32, i32) {
    %c0_i32 = arith.constant 0 : i32
    %c0_i32_0 = arith.constant 0 : i32
    %c0_i32_1 = arith.constant 0 : i32
    return %arg0, %c0_i32, %c0_i32_0 : i32, i32, i32
  }
}

</mosaic_0001>

<bundles_post_ra>
// kernel: tpu_custom_call.1
= control target key start
LH: loop header
LB: loop body
LE: loop exit
PB: predicated region body
PF: predicated region fallthrough
CT: control target
= control target key end

     0   :  { %10 = vsyncpa [#allocation5], 0  ;;  %s7194_s0 = inlined_call_operand.vmem [shape: f32[2,4,256], index: 0, kind: input, shape index: {}]   ;;  %s7195_s1 = inlined_call_operand.vmem [shape: f32[12,4], index: 1, kind: input, shape index: {}]   ;;  %s7196_s2 = inlined_call_operand.vmem [shape: f32[12,1], index: 2, kind: input, shape index: {}]   ;;  %s7197_s3 = inlined_call_operand.vmem [shape: f32[4,4], index: 3, kind: input, shape index: {}]   ;;  %s7198_s4 = inlined_call_operand.vmem [shape: f32[4,1], index: 4, kind: input, shape index: {}]   ;;  %s7199_s5 = inlined_call_operand.hbm [shape: f32[2,4,256], index: 5, kind: output, shape index: {}]  }
   0x1   :  { %12 = vsyncpa [#allocation5 + $0x1], 0  ;;  %s6186_s18 = smov 0   ;;  %s6188_s19 = smov 0  }
   0x2   :  { %s6190_s20 = smov 0   ;;  %s6192_s21 = smov 0  }
   0x3 LB: > { %s6207_s22 = sadd.s32 4294967295, %s6142_s21   ;;  %s5522_s23 = sadd.s32 4294967294, %s6142_s21   ;;  %s6142_s21 = sphi %s6192_s21, %s7207_s21   ;;  %s6138_s20 = sphi %s6190_s20, %s7206_s20   ;;  %s6134_s19 = sphi %s6188_s19, %s7205_s19   ;;  %s6130_s18 = sphi %s6186_s18, %s7204_s18  }
   0x4   : > { %s6211_s24 = sadd.s32 1, %s6142_s21   ;;  %s135_s25 = sadd.s32 1, %s6138_s20 }
   0x5   : > { %s132_s26 = ssub.s32 %s6142_s21, %s6211_s24  ;;  %p145_p0 = scmp.ne.s32.totalorder %s6138_s20, %s6134_s19 }
   0x6   : > { %p133_p1 = scmp.eq.s32.totalorder %s132_s26, 0  ;;  %p146_p2 = scmp.eq.s32.totalorder %s6207_s22, 1 }
   0x7   : > { %p151_p3 = scmp.ne.s32.totalorder %s6134_s19, %s6130_s18  ;;  %p152_p4 = scmp.eq.s32.totalorder %s5522_s23, 1 }
   0x8   : > { %s6222_s27 = scalar_select %p133_p1, %s6138_s20, %s135_s25  }
   0x9   : > { %p6224_p5 = por %p146_p2, %p145_p0  ;;  %p6228_p6 = por %p152_p4, %p151_p3 }
   0xa   : > { %p5525_p7 = scmp.ge.s32.totalorder %s6142_s21, 1  ;;  %p190_p8 = scmp.lt.s32.totalorder %s6142_s21, 3 }
   0xc   : > { %p191_p9 = pnand %p5525_p7, %p190_p8 }
   0xd   : > { %p218_p10 = scmp.lt.s32.totalorder (!%p191_p9), %s6207_s22, 1  ;;  %v6238_v0 = vld [vmem:[%s7195_s1] sm:$0xff] (!%p191_p9)  ;;  %vm238_vm0 = vcmask (!%p191_p9), 31744   ;;  %s6144_s12 = smov (!%p191_p9), 112   ;;  %vm245_vm1 = vcmask (!%p191_p9), 1043456   ;;  %v6151_v15 = vmov (!%p191_p9), 0   ;;  %v330_v37 = vlaneseq (!%p191_p9) }
   0xe   : > { %194 = sbr.rel (%p191_p9) target bundleno = 1359 (0x54f), region = 40  ;;  %5754 = vmatprep.mubr.msk.f32.mxu0 (!%p191_p9), %vm238_vm0, %v6238_v0  ;;  %5759 = vmatprep.mubr.msk.f32.mxu1 (!%p191_p9), %vm238_vm0, %v6238_v0  ;;  %s6145_s13 = smov (!%p191_p9), 80   ;;  %v6262_v6 = vld [vmem:[%s7195_s1 + $0x8] sm:$0xf] (!%p191_p9)  ;;  %v225_v19 = vld [vmem:[%s7196_s2] sm:$0xff] (!%p191_p9)  ;;  %vm411_vm2 = vcmask (!%p191_p9), 122880  }
   0xf   : > { %s6146_s14 = smov (!%p191_p9), 96   ;;  %s6147_s15 = smov (!%p191_p9), 64   ;;  %6059 = vset.pattern.permute.xlu1 (!%p191_p9), %v6151_v15  ;;  %6058 = vset.pattern.permute.xlu0 (!%p191_p9), %v6151_v15  ;;  %v226_v18 = vld [vmem:[%s7196_s2 + $0x8] sm:$0xf] (!%p191_p9)  ;;  %v6152_v35 = vmov (!%p191_p9), 1966171168  }
  0x10   : > { %s6148_s23 = smov (!%p191_p9), 48   ;;  %s6149_s25 = smov (!%p191_p9), 32   ;;  %v328_v36 = vunpack.c.l.s4 (!%p191_p9), %v6152_v35  ;;  %v331_v39 = vshrl.u32 (!%p191_p9), %v330_v37, 7  ;;  %vm3148_vm3 = vcmask (!%p191_p9), 130048   ;;  %vm6154_vm5 = vmmov (!%p191_p9), 0  }
  0x11   : > { %s6150_s26 = smov (!%p191_p9), 16   ;;  %vm6830_vm4 = vmpackc.low (!%p191_p9), %vm3148_vm3, %vm3148_vm3  ;;  %vm3908_vm6 = vcmask (!%p191_p9), 1041409   ;;  %vm3911_vm7 = vcmask (!%p191_p9), 1042434   ;;  %vm3914_vm8 = vcmask (!%p191_p9), 1043459   ;;  %s215_s30 = sand.u32 (!%p191_p9), 1, %s6134_s19   ;;  %vm3992_vm9 = vcmask (!%p191_p9), 125952  }
  0x12   : > { %v329_v38 = vunpack.c.0.s8 (!%p191_p9), %v328_v36  ;;  %s5526_s6 = sshll.u32 (!%p191_p9), %s215_s30, 3  ;;  %vm4090_vm10 = vcmask (!%p191_p9), 257152   ;;  %vm4188_vm11 = vcmask (!%p191_p9), 388352   ;;  %vm4286_vm12 = vcmask (!%p191_p9), 519552  }
  0x13   : > { %vm4384_vm13 = vcmask (!%p191_p9), 650752   ;;  %vm4482_vm14 = vcmask (!%p191_p9), 781952   ;;  %vm4580_vm15 = vcmask (!%p191_p9), 913152  }
  0x14   : > { %v6385_v42 = vsub.s32 (!%p191_p9), %v329_v38, %v331_v39 }
  0x15   : > { %s219_s7 = scalar_select %p218_p10, %s6207_s22, 1 }
  0x17   : > { %s5638_s8 = sshll.u32 %s219_s7, 3  ;;  %s7084_s7 = scalar_lea.vmem [#allocation4], %s5526_s6 }
  0x18   : > { %s6248_s11 = scalar_lea.vmem %s7194_s0, %s5638_s8 }
  0x19   : > { %v424_v1 = vld [vmem:[%s6248_s11] sm:$0xf]  ;;  %v1862_v10 = vld [vmem:[%s6248_s11 + $0x4] sm:$0xf] }
  0x1a   : > { %v784_v2 = vld [vmem:[%s6248_s11] sm:$0xf]  ;;  %426 = vrot.lane.b32.xlu0 %v424_v1, %s6144_s12  ;;  %v2222_v11 = vld [vmem:[%s6248_s11 + $0x4] sm:$0xf] }
  0x1b   : > { %786 = vrot.lane.b32.xlu1 %v784_v2, %s6145_s13  ;;  %v604_v3 = vld [vmem:[%s6248_s11] sm:$0xf]  ;;  %v2042_v12 = vld [vmem:[%s6248_s11 + $0x4] sm:$0xf] }
  0x1c   : > { %v964_v4 = vld [vmem:[%s6248_s11] sm:$0xf]  ;;  %v2582_v13 = vld [vmem:[%s6248_s11 + $0x4] sm:$0xf] }
  0x1d   : > { %v227_v5 = vld [vmem:[%s6248_s11] sm:$0xf]  ;;  %v2402_v14 = vld [vmem:[%s6248_s11 + $0x4] sm:$0xf] }
  0x1e   : > { %606 = vrot.lane.b32.xlu0 %v604_v3, %s6146_s14  ;;  %v1144_v7 = vld [vmem:[%s6248_s11] sm:$0xf]  ;;  %5752 = vmatprep.subr.msk.mxu0 %vm245_vm1, %v227_v5  ;;  %v2942_v16 = vld [vmem:[%s6248_s11 + $0x4] sm:$0xf] }
  0x1f   : > { %966 = vrot.lane.b32.xlu1 %v964_v4, %s6147_s15  ;;  %v1324_v8 = vld [vmem:[%s6248_s11] sm:$0xf]  ;;  %5753 = vmatpush3.msk.msra.mxu0 %vm245_vm1, %v227_v5  ;;  %v2762_v17 = vld [vmem:[%s6248_s11 + $0x4] sm:$0xf] }
  0x20   : > { %5755 = vmatmul.mubr.msk.f32.vlgmr.msra.gmra.mrb[0].mxu0 %vm238_vm0, %v6262_v6  ;;  %v1504_v9 = vld [vmem:[%s6248_s11] sm:$0xf]  ;;  %v1684_v28 = vld [vmem:[%s6248_s11 + $0x4] sm:$0xf] }
  0x21   : > { %5764 = vmatprep.mubr.msk.f32.mxu0 %vm238_vm0, %v6238_v0  ;;  %v3892_v2 = vld [vmem:[%s7198_s4] sm:$0xf] }
  0x22   : > { %1146 = vrot.lane.b32.xlu0 %v1144_v7, %s6148_s23 }
  0x23   : > { %1326 = vrot.lane.b32.xlu1 %v1324_v8, %s6149_s25 }
  0x26   : > { %1506 = vrot.lane.b32.xlu0 %v1504_v9, %s6150_s26 }
  0x27   : > { %1864 = vrot.lane.b32.xlu1 %v1862_v10, %s6144_s12 }
  0x2a   : > { %2044 = vrot.lane.b32.xlu0 %v2042_v12, %s6146_s14 }
  0x2b   : > { %2224 = vrot.lane.b32.xlu1 %v2222_v11, %s6145_s13 }
  0x2e   : > { %2404 = vrot.lane.b32.xlu0 %v2402_v14, %s6147_s15 }
  0x2f   : > { %2584 = vrot.lane.b32.xlu1 %v2582_v13, %s6148_s23 }
  0x32   : > { %2764 = vrot.lane.b32.xlu0 %v2762_v17, %s6149_s25 }
  0x33   : > { %2944 = vrot.lane.b32.xlu1 %v2942_v16, %s6150_s26 }
  0x36   : > { %230 = vperm.xlu0 %6058, %v225_v19  }
  0x37   : > { %235 = vperm.xlu1 %6059, %v226_v18  }
  0x3b   : > { %3900 = vperm.xlu1 %6059, %v3892_v2  }
  0x8c   : > { %v427_v20 = vpop.permute.xlu0 %426 }
  0x8d   : > { %v787_v21 = vpop.permute.xlu1 %786  ;;  %5757 = vmatprep.subr.msk.mxu1 %vm245_vm1, %v427_v20 }
  0x8e   : > { %5758 = vmatpush3.msk.msra.mxu1 %vm245_vm1, %v427_v20 }
  0x8f   : > { %5760 = vmatmul.mubr.msk.f32.vlgmr.msra.gmra.mrb[0].mxu1 %vm238_vm0, %v6262_v6  ;;  %5767 = vmatprep.subr.msk.mxu1 %vm245_vm1, %v787_v21 }
  0x90   : > { %v607_v22 = vpop.permute.xlu0 %606  ;;  %5768 = vmatpush3.msk.msra.mxu1 %vm245_vm1, %v787_v21  ;;  %5769 = vmatprep.mubr.msk.f32.mxu1 %vm238_vm0, %v6238_v0 }
  0x91   : > { %v967_v23 = vpop.permute.xlu1 %966  ;;  %5762 = vmatprep.subr.msk.mxu0 %vm245_vm1, %v607_v22 }
  0x92   : > { %5763 = vmatpush3.msk.msra.mxu0 %vm245_vm1, %v607_v22 }
  0x93   : > { %5765 = vmatmul.mubr.msk.f32.vlgmr.msra.gmra.mrb[2].mxu0 %vm238_vm0, %v6262_v6  ;;  %5770 = vmatmul.mubr.msk.f32.vlgmr.msra.gmra.mrb[2].mxu1 %vm238_vm0, %v6262_v6 }
  0x94   : > { %v1147_v24 = vpop.permute.xlu0 %1146  ;;  %5772 = vmatprep.subr.msk.mxu0 %vm245_vm1, %v967_v23  ;;  %5774 = vmatprep.mubr.msk.f32.mxu0 %vm238_vm0, %v6238_v0 }
  0x95   : > { %v1327_v25 = vpop.permute.xlu1 %1326  ;;  %5773 = vmatpush3.msk.msra.mxu0 %vm245_vm1, %v967_v23  ;;  %5777 = vmatprep.subr.msk.mxu1 %vm245_vm1, %v1147_v24 }
  0x96   : > { %5778 = vmatpush3.msk.msra.mxu1 %vm245_vm1, %v1147_v24  ;;  %5779 = vmatprep.mubr.msk.f32.mxu1 %vm238_vm0, %v6238_v0 }
  0x97   : > { %5775 = vmatmul.mubr.msk.f32.vlgmr.msra.gmra.mrb[4].mxu0 %vm238_vm0, %v6262_v6  ;;  %5780 = vmatmul.mubr.msk.f32.vlgmr.msra.gmra.mrb[4].mxu1 %vm238_vm0, %v6262_v6 }
  0x98   : > { %v1507_v26 = vpop.permute.xlu0 %1506  ;;  %5782 = vmatprep.subr.msk.mxu0 %vm245_vm1, %v1327_v25  ;;  %5784 = vmatprep.mubr.msk.f32.mxu0 %vm238_vm0, %v6238_v0 }
  0x99   : > { %v1865_v27 = vpop.permute.xlu1 %1864  ;;  %5783 = vmatpush3.msk.msra.mxu0 %vm245_vm1, %v1327_v25  ;;  %5787 = vmatprep.subr.msk.mxu1 %vm245_vm1, %v1507_v26 }
  0x9a   : > { %5788 = vmatpush3.msk.msra.mxu1 %vm245_vm1, %v1507_v26  ;;  %5789 = vmatprep.mubr.msk.f32.mxu1 %vm238_vm0, %v6238_v0 }
  0x9b   : > { %5785 = vmatmul.mubr.msk.f32.vlgmr.msra.gmra.mrb[6].mxu0 %vm238_vm0, %v6262_v6  ;;  %5790 = vmatmul.mubr.msk.f32.vlgmr.msra.gmra.mrb[6].mxu1 %vm238_vm0, %v6262_v6 }
  0x9c   : > { %5797 = vmatprep.subr.msk.mxu1 %vm245_vm1, %v1865_v27  ;;  %5792 = vmatprep.subr.msk.mxu0 %vm245_vm1, %v1684_v28  ;;  %v2045_v30 = vpop.permute.xlu0 %2044 }
  0x9d   : > { %v2225_v29 = vpop.permute.xlu1 %2224  ;;  %5798 = vmatpush3.msk.msra.mxu1 %vm245_vm1, %v1865_v27  ;;  %5793 = vmatpush3.msk.msra.mxu0 %vm245_vm1, %v1684_v28 }
  0x9e   : > { %5794 = vmatprep.mubr.msk.f32.mxu0 %vm238_vm0, %v6238_v0  ;;  %5799 = vmatprep.mubr.msk.f32.mxu1 %vm238_vm0, %v6238_v0 }
  0x9f   : > { %5800 = vmatmul.mubr.msk.f32.vlgmr.msra.gmra.mrb[8].mxu1 %vm238_vm0, %v6262_v6  ;;  %5795 = vmatmul.mubr.msk.f32.vlgmr.msra.gmra.mrb[8].mxu0 %vm238_vm0, %v6262_v6 }
  0xa0   : > { %5802 = vmatprep.subr.msk.mxu0 %vm245_vm1, %v2045_v30  ;;  %5807 = vmatprep.subr.msk.mxu1 %vm245_vm1, %v2225_v29  ;;  %v2405_v32 = vpop.permute.xlu0 %2404 }
  0xa1   : > { %v2585_v31 = vpop.permute.xlu1 %2584  ;;  %5803 = vmatpush3.msk.msra.mxu0 %vm245_vm1, %v2045_v30  ;;  %5808 = vmatpush3.msk.msra.mxu1 %vm245_vm1, %v2225_v29 }
  0xa2   : > { %5804 = vmatprep.mubr.msk.f32.mxu0 %vm238_vm0, %v6238_v0  ;;  %5809 = vmatprep.mubr.msk.f32.mxu1 %vm238_vm0, %v6238_v0 }
  0xa3   : > { %5810 = vmatmul.mubr.msk.f32.vlgmr.msra.gmra.mrb[10].mxu1 %vm238_vm0, %v6262_v6  ;;  %5805 = vmatmul.mubr.msk.f32.vlgmr.msra.gmra.mrb[10].mxu0 %vm238_vm0, %v6262_v6 }
  0xa4   : > { %5812 = vmatprep.subr.msk.mxu0 %vm245_vm1, %v2405_v32  ;;  %5817 = vmatprep.subr.msk.mxu1 %vm245_vm1, %v2585_v31  ;;  %v2765_v34 = vpop.permute.xlu0 %2764 }
  0xa5   : > { %5813 = vmatpush3.msk.msra.mxu0 %vm245_vm1, %v2405_v32  ;;  %5818 = vmatpush3.msk.msra.mxu1 %vm245_vm1, %v2585_v31  ;;  %v2945_v33 = vpop.permute.xlu1 %2944 }
  0xa6   : > { %5814 = vmatprep.mubr.msk.f32.mxu0 %vm238_vm0, %v6238_v0  ;;  %5819 = vmatprep.mubr.msk.f32.mxu1 %vm238_vm0, %v6238_v0 }
  0xa7   : > { %5820 = vmatmul.mubr.msk.f32.vlgmr.msra.gmra.mrb[12].mxu1 %vm238_vm0, %v6262_v6  ;;  %5815 = vmatmul.mubr.msk.f32.vlgmr.msra.gmra.mrb[12].mxu0 %vm238_vm0, %v6262_v6 }
  0xa8   : > { %5822 = vmatprep.subr.msk.mxu0 %vm245_vm1, %v2765_v34  ;;  %5827 = vmatprep.subr.msk.mxu1 %vm245_vm1, %v2945_v33 }
  0xa9   : > { %5823 = vmatpush3.msk.msra.mxu0 %vm245_vm1, %v2765_v34  ;;  %5828 = vmatpush3.msk.msra.mxu1 %vm245_vm1, %v2945_v33 }
  0xaa   : > { %5824 = vmatprep.mubr.msk.f32.mxu0 %vm238_vm0, %v6238_v0  ;;  %5829 = vmatprep.mubr.msk.f32.mxu1 %vm238_vm0, %v6238_v0 }
  0xab   : > { %5825 = vmatmul.mubr.msk.f32.vlgmr.msra.gmra.mrb[14].mxu0 %vm238_vm0, %v6262_v6  ;;  %5830 = vmatmul.mubr.msk.f32.vlgmr.msra.gmra.mrb[14].mxu1 %vm238_vm0, %v6262_v6 }
  0xb5   : > { %v6383_v40 = vpop.permute.xlu0 %230 }
  0xb6   : > { %v6402_v58 = vpop.permute.xlu1 %235 }
  0xf3   : > { %v5756_v41 = vpop.f32.mrb[0].mxu0 }
  0xf4   : > { %v315_v43 = vpop.f32.mrb[1].mxu0  ;;  %v321_v59 = vadd.f32 %v5756_v41, %v6402_v58 }
  0xf5   : > { %v316_v44 = vadd.f32 %v315_v43, %v6383_v40 }
  0xf6   : > { %v381_v60 = vrot.slane %v321_v59, %v6385_v42 }
  0xf7   : > { %v326_v45 = vcombine.high %v316_v44, %v316_v44  ;;  %v333_v46 = vrot.slane %v316_v44, %v6385_v42 }
  0xf8   : > { %v389_v61 = vrot.slane %v381_v60, %v6385_v42  ;;  %v382_v62 = vcombine.high %v381_v60, %v381_v60 }
  0xf9   : > { %v340_v47 = vrot.slane %v326_v45, %v6385_v42  ;;  %v341_v48 = vcombine.high %v333_v46, %v333_v46  ;;  %v349_v49 = vrot.slane %v333_v46, %v6385_v42 }
  0xfa   : > { %420 = vst.msk [vmem:[#allocation2 + $0x80] sm:$0x1] %vm411_vm2, %v389_v61  ;;  %v396_v63 = vrot.slane %v382_v62, %v6385_v42  ;;  %v397_v0 = vcombine.high %v389_v61, %v389_v61 }
  0xfb   : > { %v342_v50 = vcombine.high %v340_v47, %v340_v47  ;;  %v356_v51 = vrot.slane %v340_v47, %v6385_v42  ;;  %v363_v52 = vrot.slane %v341_v48, %v6385_v42  ;;  %v371_v53 = vcombine.high %v349_v49, %v349_v49  ;;  %412 = vst.msk [vmem:[#allocation2] sm:$0x1] %vm411_vm2, %v349_v49 }
  0xfc   : > { %421 = vst.msk [vmem:[#allocation2 + $0x90] sm:$0x1] %vm411_vm2, %v396_v63  ;;  %422 = vst.msk [vmem:[#allocation2 + $0xa0] sm:$0x1] %vm411_vm2, %v397_v0  ;;  %v398_v1 = vcombine.high %v396_v63, %v396_v63 }
  0xfd   : > { %v370_v54 = vrot.slane %v342_v50, %v6385_v42  ;;  %v372_v55 = vcombine.high %v356_v51, %v356_v51  ;;  %v373_v56 = vcombine.high %v363_v52, %v363_v52  ;;  %413 = vst.msk [vmem:[#allocation2 + $0x10] sm:$0x1] %vm411_vm2, %v363_v52  ;;  %414 = vst.msk [vmem:[#allocation2 + $0x20] sm:$0x1] %vm411_vm2, %v371_v53 }
  0xfe   : > { %416 = vst.msk [vmem:[#allocation2 + $0x40] sm:$0x1] %vm411_vm2, %v356_v51  ;;  %423 = vst.msk [vmem:[#allocation2 + $0xb0] sm:$0x1] %vm411_vm2, %v398_v1 }
  0xff   : > { %v374_v57 = vcombine.high %v370_v54, %v370_v54  ;;  %415 = vst.msk [vmem:[#allocation2 + $0x30] sm:$0x1] %vm411_vm2, %v373_v56  ;;  %417 = vst.msk [vmem:[#allocation2 + $0x50] sm:$0x1] %vm411_vm2, %v370_v54 }
 0x100   : > { %418 = vst.msk [vmem:[#allocation2 + $0x60] sm:$0x1] %vm411_vm2, %v372_v55 }
 0x101   : > { %419 = vst.msk [vmem:[#allocation2 + $0x70] sm:$0x1] %vm411_vm2, %v374_v57 }
 0x162   : > { %v5761_v3 = vpop.f32.mrb[0].mxu1 }
 0x163   : > { %v502_v4 = vadd.f32 %v5761_v3, %v6402_v58  ;;  %v496_v5 = vpop.f32.mrb[1].mxu1 }
 0x164   : > { %v497_v6 = vadd.f32 %v496_v5, %v6383_v40 }
 0x165   : > { %v562_v7 = vrot.slane %v502_v4, %v6385_v42 }
 0x166   : > { %v507_v8 = vcombine.high %v497_v6, %v497_v6  ;;  %v514_v9 = vrot.slane %v497_v6, %v6385_v42  ;;  %v5766_v10 = vpop.f32.mrb[2].mxu0  ;;  %v5771_v11 = vpop.f32.mrb[2].mxu1 }
 0x167   : > { %v563_v12 = vcombine.high %v562_v7, %v562_v7  ;;  %v570_v13 = vrot.slane %v562_v7, %v6385_v42  ;;  %v682_v14 = vadd.f32 %v5766_v10, %v6402_v58  ;;  %v862_v15 = vadd.f32 %v5771_v11, %v6402_v58  ;;  %v676_v16 = vpop.f32.mrb[3].mxu0  ;;  %v856_v17 = vpop.f32.mrb[3].mxu1 }
 0x168   : > { %v521_v18 = vrot.slane %v507_v8, %v6385_v42  ;;  %v522_v19 = vcombine.high %v514_v9, %v514_v9  ;;  %v530_v20 = vrot.slane %v514_v9, %v6385_v42  ;;  %v677_v21 = vadd.f32 %v676_v16, %v6383_v40 }
 0x169   : > { %v577_v22 = vrot.slane %v563_v12, %v6385_v42  ;;  %v578_v23 = vcombine.high %v570_v13, %v570_v13  ;;  %600 = vst.msk [vmem:[#allocation2 + $0x81] sm:$0x1] %vm411_vm2, %v570_v13  ;;  %v742_v24 = vrot.slane %v682_v14, %v6385_v42  ;;  %v922_v25 = vrot.slane %v862_v15, %v6385_v42 }
 0x16a   : > { %v523_v26 = vcombine.high %v521_v18, %v521_v18  ;;  %v537_v27 = vrot.slane %v521_v18, %v6385_v42  ;;  %v544_v28 = vrot.slane %v522_v19, %v6385_v42  ;;  %v552_v29 = vcombine.high %v530_v20, %v530_v20  ;;  %592 = vst.msk [vmem:[#allocation2 + $0x1] sm:$0x1] %vm411_vm2, %v530_v20  ;;  %v5776_v30 = vpop.f32.mrb[4].mxu0  ;;  %v5781_v31 = vpop.f32.mrb[4].mxu1 }
 0x16b   : > { %v579_v32 = vcombine.high %v577_v22, %v577_v22  ;;  %601 = vst.msk [vmem:[#allocation2 + $0x91] sm:$0x1] %vm411_vm2, %v577_v22  ;;  %602 = vst.msk [vmem:[#allocation2 + $0xa1] sm:$0x1] %vm411_vm2, %v578_v23  ;;  %v743_v33 = vcombine.high %v742_v24, %v742_v24  ;;  %v750_v34 = vrot.slane %v742_v24, %v6385_v42  ;;  %v6435_v36 = vpop.f32.mrb[5].mxu0  ;;  %v6437_v37 = vpop.f32.mrb[5].mxu1 }
 0x16c   : > { %v923_v35 = vcombine.high %v922_v25, %v922_v25  ;;  %v551_v38 = vrot.slane %v523_v26, %v6385_v42  ;;  %v553_v39 = vcombine.high %v537_v27, %v537_v27  ;;  %v554_v41 = vcombine.high %v544_v28, %v544_v28  ;;  %593 = vst.msk [vmem:[#allocation2 + $0x11] sm:$0x1] %vm411_vm2, %v544_v28 }
 0x16d   : > { %594 = vst.msk [vmem:[#allocation2 + $0x21] sm:$0x1] %vm411_vm2, %v552_v29  ;;  %596 = vst.msk [vmem:[#allocation2 + $0x41] sm:$0x1] %vm411_vm2, %v537_v27  ;;  %v930_v43 = vrot.slane %v922_v25, %v6385_v42  ;;  %v757_v44 = vrot.slane %v743_v33, %v6385_v42  ;;  %v758_v45 = vcombine.high %v750_v34, %v750_v34 }
 0x16e   : > { %603 = vst.msk [vmem:[#allocation2 + $0xb1] sm:$0x1] %vm411_vm2, %v579_v32  ;;  %780 = vst.msk [vmem:[#allocation2 + $0x82] sm:$0x1] %vm411_vm2, %v750_v34  ;;  %v937_v46 = vrot.slane %v923_v35, %v6385_v42  ;;  %v687_v47 = vcombine.high %v677_v21, %v677_v21  ;;  %v555_v48 = vcombine.high %v551_v38, %v551_v38  ;;  %v6454_v52 = vpop.f32.mrb[6].mxu0  ;;  %v6456_v53 = vpop.f32.mrb[6].mxu1 }
 0x16f   : > { %595 = vst.msk [vmem:[#allocation2 + $0x31] sm:$0x1] %vm411_vm2, %v554_v41  ;;  %597 = vst.msk [vmem:[#allocation2 + $0x51] sm:$0x1] %vm411_vm2, %v551_v38  ;;  %v938_v49 = vcombine.high %v930_v43, %v930_v43  ;;  %v694_v50 = vrot.slane %v677_v21, %v6385_v42  ;;  %v857_v51 = vadd.f32 %v856_v17, %v6383_v40  ;;  %v6463_v59 = vpop.f32.mrb[7].mxu0  ;;  %v6465_v60 = vpop.f32.mrb[7].mxu1 }
 0x170   : > { %598 = vst.msk [vmem:[#allocation2 + $0x61] sm:$0x1] %vm411_vm2, %v553_v39  ;;  %960 = vst.msk [vmem:[#allocation2 + $0x83] sm:$0x1] %vm411_vm2, %v930_v43  ;;  %v759_v54 = vcombine.high %v757_v44, %v757_v44  ;;  %v939_v55 = vcombine.high %v937_v46, %v937_v46  ;;  %v701_v56 = vrot.slane %v687_v47, %v6385_v42 }
 0x171   : > { %781 = vst.msk [vmem:[#allocation2 + $0x92] sm:$0x1] %vm411_vm2, %v757_v44  ;;  %782 = vst.msk [vmem:[#allocation2 + $0xa2] sm:$0x1] %vm411_vm2, %v758_v45  ;;  %v1042_v57 = vadd.f32 %v5776_v30, %v6402_v58  ;;  %v702_v61 = vcombine.high %v694_v50, %v694_v50  ;;  %v710_v62 = vrot.slane %v694_v50, %v6385_v42 }
 0x172   : > { %961 = vst.msk [vmem:[#allocation2 + $0x93] sm:$0x1] %vm411_vm2, %v937_v46  ;;  %599 = vst.msk [vmem:[#allocation2 + $0x71] sm:$0x1] %vm411_vm2, %v555_v48  ;;  %v867_v63 = vcombine.high %v857_v51, %v857_v51  ;;  %v874_v0 = vrot.slane %v857_v51, %v6385_v42  ;;  %v703_v1 = vcombine.high %v701_v56, %v701_v56  ;;  %v6479_v9 = vpop.f32.mrb[8].mxu0  ;;  %v6481_v10 = vpop.f32.mrb[8].mxu1 }
 0x173   : > { %962 = vst.msk [vmem:[#allocation2 + $0xa3] sm:$0x1] %vm411_vm2, %v938_v49  ;;  %783 = vst.msk [vmem:[#allocation2 + $0xb2] sm:$0x1] %vm411_vm2, %v759_v54  ;;  %v717_v2 = vrot.slane %v701_v56, %v6385_v42  ;;  %v1102_v3 = vrot.slane %v1042_v57, %v6385_v42  ;;  %v1222_v4 = vadd.f32 %v5781_v31, %v6402_v58  ;;  %v6486_v15 = vpop.f32.mrb[9].mxu0  ;;  %v6488_v16 = vpop.f32.mrb[9].mxu1 }
 0x174   : > { %963 = vst.msk [vmem:[#allocation2 + $0xb3] sm:$0x1] %vm411_vm2, %v939_v55  ;;  %v724_v5 = vrot.slane %v702_v61, %v6385_v42  ;;  %v732_v6 = vcombine.high %v710_v62, %v710_v62  ;;  %772 = vst.msk [vmem:[#allocation2 + $0x2] sm:$0x1] %vm411_vm2, %v710_v62  ;;  %v881_v7 = vrot.slane %v867_v63, %v6385_v42 }
 0x175   : > { %v882_v8 = vcombine.high %v874_v0, %v874_v0  ;;  %v731_v11 = vrot.slane %v703_v1, %v6385_v42  ;;  %v733_v12 = vcombine.high %v717_v2, %v717_v2  ;;  %776 = vst.msk [vmem:[#allocation2 + $0x42] sm:$0x1] %vm411_vm2, %v717_v2  ;;  %v890_v13 = vrot.slane %v874_v0, %v6385_v42 }
 0x176   : > { %v1103_v14 = vcombine.high %v1102_v3, %v1102_v3  ;;  %v734_v17 = vcombine.high %v724_v5, %v724_v5  ;;  %773 = vst.msk [vmem:[#allocation2 + $0x12] sm:$0x1] %vm411_vm2, %v724_v5  ;;  %774 = vst.msk [vmem:[#allocation2 + $0x22] sm:$0x1] %vm411_vm2, %v732_v6  ;;  %v883_v18 = vcombine.high %v881_v7, %v881_v7  ;;  %v6504_v29 = vpop.f32.mrb[10].mxu0  ;;  %v6506_v30 = vpop.f32.mrb[10].mxu1 }
 0x177   : > { %v897_v19 = vrot.slane %v881_v7, %v6385_v42  ;;  %v904_v20 = vrot.slane %v882_v8, %v6385_v42  ;;  %v735_v21 = vcombine.high %v731_v11, %v731_v11  ;;  %777 = vst.msk [vmem:[#allocation2 + $0x52] sm:$0x1] %vm411_vm2, %v731_v11  ;;  %778 = vst.msk [vmem:[#allocation2 + $0x62] sm:$0x1] %vm411_vm2, %v733_v12  ;;  %v6516_v35 = vpop.f32.mrb[11].mxu0  ;;  %v6518_v38 = vpop.f32.mrb[11].mxu1 }
 0x178   : > { %v912_v22 = vcombine.high %v890_v13, %v890_v13  ;;  %952 = vst.msk [vmem:[#allocation2 + $0x3] sm:$0x1] %vm411_vm2, %v890_v13  ;;  %v1110_v23 = vrot.slane %v1102_v3, %v6385_v42  ;;  %v1117_v24 = vrot.slane %v1103_v14, %v6385_v42  ;;  %775 = vst.msk [vmem:[#allocation2 + $0x32] sm:$0x1] %vm411_vm2, %v734_v17 }
 0x179   : > { %v911_v25 = vrot.slane %v883_v18, %v6385_v42  ;;  %v913_v26 = vcombine.high %v897_v19, %v897_v19  ;;  %v914_v27 = vcombine.high %v904_v20, %v904_v20  ;;  %953 = vst.msk [vmem:[#allocation2 + $0x13] sm:$0x1] %vm411_vm2, %v904_v20  ;;  %956 = vst.msk [vmem:[#allocation2 + $0x43] sm:$0x1] %vm411_vm2, %v897_v19 }
 0x17a   : > { %v1282_v28 = vrot.slane %v1222_v4, %v6385_v42  ;;  %779 = vst.msk [vmem:[#allocation2 + $0x72] sm:$0x1] %vm411_vm2, %v735_v21  ;;  %954 = vst.msk [vmem:[#allocation2 + $0x23] sm:$0x1] %vm411_vm2, %v912_v22  ;;  %v1118_v31 = vcombine.high %v1110_v23, %v1110_v23  ;;  %v1119_v32 = vcombine.high %v1117_v24, %v1117_v24  ;;  %v6536_v51 = vpop.f32.mrb[12].mxu0 }
 0x17b   : > { %1140 = vst.msk [vmem:[#allocation2 + $0x84] sm:$0x1] %vm411_vm2, %v1110_v23  ;;  %1141 = vst.msk [vmem:[#allocation2 + $0x94] sm:$0x1] %vm411_vm2, %v1117_v24  ;;  %v1037_v33 = vadd.f32 %v6435_v36, %v6383_v40  ;;  %v1217_v34 = vadd.f32 %v6437_v37, %v6383_v40  ;;  %v915_v39 = vcombine.high %v911_v25, %v911_v25  ;;  %v6543_v61 = vpop.f32.mrb[13].mxu0 }
 0x17c   : > { %955 = vst.msk [vmem:[#allocation2 + $0x33] sm:$0x1] %vm411_vm2, %v914_v27  ;;  %957 = vst.msk [vmem:[#allocation2 + $0x53] sm:$0x1] %vm411_vm2, %v911_v25  ;;  %v1283_v41 = vcombine.high %v1282_v28, %v1282_v28  ;;  %v1290_v43 = vrot.slane %v1282_v28, %v6385_v42  ;;  %v1402_v36 = vadd.f32 %v6454_v52, %v6402_v58  ;;  %v6538_v52 = vpop.f32.mrb[12].mxu1 }
 0x17d   : > { %958 = vst.msk [vmem:[#allocation2 + $0x63] sm:$0x1] %vm411_vm2, %v913_v26  ;;  %1142 = vst.msk [vmem:[#allocation2 + $0xa4] sm:$0x1] %vm411_vm2, %v1118_v31  ;;  %v1047_v37 = vcombine.high %v1037_v33, %v1037_v33  ;;  %v1054_v44 = vrot.slane %v1037_v33, %v6385_v42  ;;  %v1227_v45 = vcombine.high %v1217_v34, %v1217_v34  ;;  %v6545_v62 = vpop.f32.mrb[13].mxu1 }
 0x17e   : > { %1143 = vst.msk [vmem:[#allocation2 + $0xb4] sm:$0x1] %vm411_vm2, %v1119_v32  ;;  %v1234_v46 = vrot.slane %v1217_v34, %v6385_v42  ;;  %959 = vst.msk [vmem:[#allocation2 + $0x73] sm:$0x1] %vm411_vm2, %v915_v39  ;;  %v1297_v47 = vrot.slane %v1283_v41, %v6385_v42  ;;  %v1298_v48 = vcombine.high %v1290_v43, %v1290_v43  ;;  %v6557_v12 = vpop.f32.mrb[14].mxu0  ;;  %v6559_v13 = vpop.f32.mrb[14].mxu1 }
 0x17f   : > { %1320 = vst.msk [vmem:[#allocation2 + $0x85] sm:$0x1] %vm411_vm2, %v1290_v43  ;;  %v1462_v49 = vrot.slane %v1402_v36, %v6385_v42  ;;  %v1582_v50 = vadd.f32 %v6456_v53, %v6402_v58  ;;  %v1061_v54 = vrot.slane %v1047_v37, %v6385_v42  ;;  %v1062_v55 = vcombine.high %v1054_v44, %v1054_v44  ;;  %v6566_v20 = vpop.f32.mrb[15].mxu0  ;;  %v6568_v21 = vpop.f32.mrb[15].mxu1 }
 0x180   : > { %v1070_v56 = vrot.slane %v1054_v44, %v6385_v42  ;;  %v1241_v57 = vrot.slane %v1227_v45, %v6385_v42  ;;  %v1299_v63 = vcombine.high %v1297_v47, %v1297_v47  ;;  %1321 = vst.msk [vmem:[#allocation2 + $0x95] sm:$0x1] %vm411_vm2, %v1297_v47  ;;  %1322 = vst.msk [vmem:[#allocation2 + $0xa5] sm:$0x1] %vm411_vm2, %v1298_v48 }
 0x181   : > { %v1242_v53 = vcombine.high %v1234_v46, %v1234_v46  ;;  %v1250_v0 = vrot.slane %v1234_v46, %v6385_v42  ;;  %v1463_v1 = vcombine.high %v1462_v49, %v1462_v49  ;;  %v1063_v2 = vcombine.high %v1061_v54, %v1061_v54 }
 0x182   : > { %v1077_v3 = vrot.slane %v1061_v54, %v6385_v42  ;;  %v1084_v4 = vrot.slane %v1062_v55, %v6385_v42  ;;  %v1092_v5 = vcombine.high %v1070_v56, %v1070_v56  ;;  %1132 = vst.msk [vmem:[#allocation2 + $0x4] sm:$0x1] %vm411_vm2, %v1070_v56  ;;  %1323 = vst.msk [vmem:[#allocation2 + $0xb5] sm:$0x1] %vm411_vm2, %v1299_v63 }
 0x183   : > { %v1243_v6 = vcombine.high %v1241_v57, %v1241_v57  ;;  %v1257_v7 = vrot.slane %v1241_v57, %v6385_v42  ;;  %v1264_v8 = vrot.slane %v1242_v53, %v6385_v42  ;;  %v1272_v11 = vcombine.high %v1250_v0, %v1250_v0  ;;  %1312 = vst.msk [vmem:[#allocation2 + $0x5] sm:$0x1] %vm411_vm2, %v1250_v0 }
 0x184   : > { %v1091_v14 = vrot.slane %v1063_v2, %v6385_v42  ;;  %v1093_v17 = vcombine.high %v1077_v3, %v1077_v3  ;;  %v1094_v18 = vcombine.high %v1084_v4, %v1084_v4  ;;  %1133 = vst.msk [vmem:[#allocation2 + $0x14] sm:$0x1] %vm411_vm2, %v1084_v4  ;;  %1134 = vst.msk [vmem:[#allocation2 + $0x24] sm:$0x1] %vm411_vm2, %v1092_v5 }
 0x185   : > { %1136 = vst.msk [vmem:[#allocation2 + $0x44] sm:$0x1] %vm411_vm2, %v1077_v3  ;;  %v1470_v19 = vrot.slane %v1462_v49, %v6385_v42  ;;  %v1271_v22 = vrot.slane %v1243_v6, %v6385_v42  ;;  %v1273_v23 = vcombine.high %v1257_v7, %v1257_v7  ;;  %v1274_v24 = vcombine.high %v1264_v8, %v1264_v8 }
 0x186   : > { %1313 = vst.msk [vmem:[#allocation2 + $0x15] sm:$0x1] %vm411_vm2, %v1264_v8  ;;  %1314 = vst.msk [vmem:[#allocation2 + $0x25] sm:$0x1] %vm411_vm2, %v1272_v11  ;;  %v1477_v25 = vrot.slane %v1463_v1, %v6385_v42  ;;  %v1095_v26 = vcombine.high %v1091_v14, %v1091_v14  ;;  %v1642_v28 = vrot.slane %v1582_v50, %v6385_v42 }
 0x187   : > { %1316 = vst.msk [vmem:[#allocation2 + $0x45] sm:$0x1] %vm411_vm2, %v1257_v7  ;;  %1135 = vst.msk [vmem:[#allocation2 + $0x34] sm:$0x1] %vm411_vm2, %v1094_v18  ;;  %v1478_v27 = vcombine.high %v1470_v19, %v1470_v19  ;;  %v1397_v31 = vadd.f32 %v6463_v59, %v6383_v40  ;;  %v1275_v32 = vcombine.high %v1271_v22, %v1271_v22 }
 0x188   : > { %1137 = vst.msk [vmem:[#allocation2 + $0x54] sm:$0x1] %vm411_vm2, %v1091_v14  ;;  %1138 = vst.msk [vmem:[#allocation2 + $0x64] sm:$0x1] %vm411_vm2, %v1093_v17  ;;  %v1479_v33 = vcombine.high %v1477_v25, %v1477_v25  ;;  %v1577_v34 = vadd.f32 %v6465_v60, %v6383_v40  ;;  %v1760_v39 = vadd.f32 %v6479_v9, %v6402_v58 }
 0x189   : > { %1500 = vst.msk [vmem:[#allocation2 + $0x86] sm:$0x1] %vm411_vm2, %v1470_v19  ;;  %1315 = vst.msk [vmem:[#allocation2 + $0x35] sm:$0x1] %vm411_vm2, %v1274_v24  ;;  %v1643_v59 = vcombine.high %v1642_v28, %v1642_v28  ;;  %v1650_v41 = vrot.slane %v1642_v28, %v6385_v42  ;;  %v1407_v43 = vcombine.high %v1397_v31, %v1397_v31 }
 0x18a   : > { %1317 = vst.msk [vmem:[#allocation2 + $0x55] sm:$0x1] %vm411_vm2, %v1271_v22  ;;  %1318 = vst.msk [vmem:[#allocation2 + $0x65] sm:$0x1] %vm411_vm2, %v1273_v23  ;;  %v1414_v36 = vrot.slane %v1397_v31, %v6385_v42  ;;  %v1587_v37 = vcombine.high %v1577_v34, %v1577_v34  ;;  %v1594_v60 = vrot.slane %v1577_v34, %v6385_v42 }
 0x18b   : > { %1501 = vst.msk [vmem:[#allocation2 + $0x96] sm:$0x1] %vm411_vm2, %v1477_v25  ;;  %1139 = vst.msk [vmem:[#allocation2 + $0x74] sm:$0x1] %vm411_vm2, %v1095_v26  ;;  %v1820_v44 = vrot.slane %v1760_v39, %v6385_v42  ;;  %v1940_v9 = vadd.f32 %v6481_v10, %v6402_v58  ;;  %v1657_v45 = vrot.slane %v1643_v59, %v6385_v42 }
 0x18c   : > { %1502 = vst.msk [vmem:[#allocation2 + $0xa6] sm:$0x1] %vm411_vm2, %v1478_v27  ;;  %1319 = vst.msk [vmem:[#allocation2 + $0x75] sm:$0x1] %vm411_vm2, %v1275_v32  ;;  %v1658_v46 = vcombine.high %v1650_v41, %v1650_v41  ;;  %v1421_v47 = vrot.slane %v1407_v43, %v6385_v42  ;;  %v1422_v48 = vcombine.high %v1414_v36, %v1414_v36 }
 0x18d   : > { %1503 = vst.msk [vmem:[#allocation2 + $0xb6] sm:$0x1] %vm411_vm2, %v1479_v33  ;;  %1680 = vst.msk [vmem:[#allocation2 + $0x87] sm:$0x1] %vm411_vm2, %v1650_v41  ;;  %v1430_v49 = vrot.slane %v1414_v36, %v6385_v42  ;;  %v1601_v50 = vrot.slane %v1587_v37, %v6385_v42  ;;  %v1602_v54 = vcombine.high %v1594_v60, %v1594_v60 }
 0x18e   : > { %v1610_v55 = vrot.slane %v1594_v60, %v6385_v42  ;;  %v1659_v56 = vcombine.high %v1657_v45, %v1657_v45  ;;  %1681 = vst.msk [vmem:[#allocation2 + $0x97] sm:$0x1] %vm411_vm2, %v1657_v45  ;;  %1682 = vst.msk [vmem:[#allocation2 + $0xa7] sm:$0x1] %vm411_vm2, %v1658_v46  ;;  %v1423_v10 = vcombine.high %v1421_v47, %v1421_v47 }
 0x18f   : > { %v1437_v57 = vrot.slane %v1421_v47, %v6385_v42  ;;  %v1444_v63 = vrot.slane %v1422_v48, %v6385_v42  ;;  %v1452_v53 = vcombine.high %v1430_v49, %v1430_v49  ;;  %1492 = vst.msk [vmem:[#allocation2 + $0x6] sm:$0x1] %vm411_vm2, %v1430_v49  ;;  %v1603_v0 = vcombine.high %v1601_v50, %v1601_v50 }
 0x190   : > { %v1617_v1 = vrot.slane %v1601_v50, %v6385_v42  ;;  %v1624_v2 = vrot.slane %v1602_v54, %v6385_v42  ;;  %1672 = vst.msk [vmem:[#allocation2 + $0x7] sm:$0x1] %vm411_vm2, %v1610_v55  ;;  %1683 = vst.msk [vmem:[#allocation2 + $0xb7] sm:$0x1] %vm411_vm2, %v1659_v56  ;;  %v1451_v3 = vrot.slane %v1423_v10, %v6385_v42 }
 0x191   : > { %v1453_v4 = vcombine.high %v1437_v57, %v1437_v57  ;;  %v1454_v5 = vcombine.high %v1444_v63, %v1444_v63  ;;  %1493 = vst.msk [vmem:[#allocation2 + $0x16] sm:$0x1] %vm411_vm2, %v1444_v63  ;;  %1496 = vst.msk [vmem:[#allocation2 + $0x46] sm:$0x1] %vm411_vm2, %v1437_v57  ;;  %v1632_v6 = vcombine.high %v1610_v55, %v1610_v55 }
 0x192   : > { %1494 = vst.msk [vmem:[#allocation2 + $0x26] sm:$0x1] %vm411_vm2, %v1452_v53  ;;  %v1631_v7 = vrot.slane %v1603_v0, %v6385_v42  ;;  %v1633_v8 = vcombine.high %v1617_v1, %v1617_v1  ;;  %v1634_v11 = vcombine.high %v1624_v2, %v1624_v2  ;;  %1673 = vst.msk [vmem:[#allocation2 + $0x17] sm:$0x1] %vm411_vm2, %v1624_v2 }
 0x193   : > { %1676 = vst.msk [vmem:[#allocation2 + $0x47] sm:$0x1] %vm411_vm2, %v1617_v1  ;;  %v1821_v14 = vcombine.high %v1820_v44, %v1820_v44  ;;  %v1455_v17 = vcombine.high %v1451_v3, %v1451_v3  ;;  %1495 = vst.msk [vmem:[#allocation2 + $0x36] sm:$0x1] %vm411_vm2, %v1454_v5  ;;  %v1828_v18 = vrot.slane %v1820_v44, %v6385_v42 }
 0x194   : > { %1497 = vst.msk [vmem:[#allocation2 + $0x56] sm:$0x1] %vm411_vm2, %v1451_v3  ;;  %1498 = vst.msk [vmem:[#allocation2 + $0x66] sm:$0x1] %vm411_vm2, %v1453_v4  ;;  %v2000_v19 = vrot.slane %v1940_v9, %v6385_v42  ;;  %v1755_v22 = vadd.f32 %v6486_v15, %v6383_v40  ;;  %v1635_v23 = vcombine.high %v1631_v7, %v1631_v7 }
 0x195   : > { %1674 = vst.msk [vmem:[#allocation2 + $0x27] sm:$0x1] %vm411_vm2, %v1632_v6  ;;  %1675 = vst.msk [vmem:[#allocation2 + $0x37] sm:$0x1] %vm411_vm2, %v1634_v11  ;;  %v1835_v24 = vrot.slane %v1821_v14, %v6385_v42  ;;  %v1935_v25 = vadd.f32 %v6488_v16, %v6383_v40  ;;  %v2120_v26 = vadd.f32 %v6504_v29, %v6402_v58 }
 0x196   : > { %1677 = vst.msk [vmem:[#allocation2 + $0x57] sm:$0x1] %vm411_vm2, %v1631_v7  ;;  %1678 = vst.msk [vmem:[#allocation2 + $0x67] sm:$0x1] %vm411_vm2, %v1633_v8  ;;  %v1836_v27 = vcombine.high %v1828_v18, %v1828_v18  ;;  %v2001_v15 = vcombine.high %v2000_v19, %v2000_v19  ;;  %v2008_v28 = vrot.slane %v2000_v19, %v6385_v42 }
 0x197   : > { %1499 = vst.msk [vmem:[#allocation2 + $0x76] sm:$0x1] %vm411_vm2, %v1455_v17  ;;  %1858 = vst.msk [vmem:[#allocation2 + $0x88] sm:$0x1] %vm411_vm2, %v1828_v18  ;;  %v1765_v31 = vcombine.high %v1755_v22, %v1755_v22  ;;  %v1837_v32 = vcombine.high %v1835_v24, %v1835_v24  ;;  %v1772_v33 = vrot.slane %v1755_v22, %v6385_v42  ;;  %v3122_v43 = vld [vmem:[#allocation2] sm:$0xff] }
 0x198   : > { %1679 = vst.msk [vmem:[#allocation2 + $0x77] sm:$0x1] %vm411_vm2, %v1635_v23  ;;  %1859 = vst.msk [vmem:[#allocation2 + $0x98] sm:$0x1] %vm411_vm2, %v1835_v24  ;;  %v1945_v16 = vcombine.high %v1935_v25, %v1935_v25  ;;  %v1952_v34 = vrot.slane %v1935_v25, %v6385_v42  ;;  %v2015_v29 = vrot.slane %v2001_v15, %v6385_v42  ;;  %5836 = vmatprep.mubr.msk.f32.mxu0 %vm3148_vm3, %v3122_v43 }
 0x199   : > { %1860 = vst.msk [vmem:[#allocation2 + $0xa8] sm:$0x1] %vm411_vm2, %v1836_v27  ;;  %v2016_v39 = vcombine.high %v2008_v28, %v2008_v28  ;;  %2038 = vst.msk [vmem:[#allocation2 + $0x89] sm:$0x1] %vm411_vm2, %v2008_v28  ;;  %v1779_v59 = vrot.slane %v1765_v31, %v6385_v42  ;;  %v2180_v41 = vrot.slane %v2120_v26, %v6385_v42  ;;  %v3124_v48 = vld [vmem:[#allocation2 + $0x10] sm:$0xff] }
 0x19a   : > { %1861 = vst.msk [vmem:[#allocation2 + $0xb8] sm:$0x1] %vm411_vm2, %v1837_v32  ;;  %v1780_v36 = vcombine.high %v1772_v33, %v1772_v33  ;;  %v1788_v37 = vrot.slane %v1772_v33, %v6385_v42  ;;  %v1959_v60 = vrot.slane %v1945_v16, %v6385_v42  ;;  %v1960_v44 = vcombine.high %v1952_v34, %v1952_v34 }
 0x19b   : > { %v2017_v9 = vcombine.high %v2015_v29, %v2015_v29  ;;  %2039 = vst.msk [vmem:[#allocation2 + $0x99] sm:$0x1] %vm411_vm2, %v2015_v29  ;;  %2040 = vst.msk [vmem:[#allocation2 + $0xa9] sm:$0x1] %vm411_vm2, %v2016_v39  ;;  %v1781_v45 = vcombine.high %v1779_v59, %v1779_v59  ;;  %v1795_v46 = vrot.slane %v1779_v59, %v6385_v42  ;;  %5843 = vmatprep.mubr.msk.f32.mxu1 %vm3148_vm3, %v3124_v48 }
 0x19c   : > { %v1968_v47 = vrot.slane %v1952_v34, %v6385_v42  ;;  %v1802_v49 = vrot.slane %v1780_v36, %v6385_v42  ;;  %v1810_v50 = vcombine.high %v1788_v37, %v1788_v37  ;;  %1850 = vst.msk [vmem:[#allocation2 + $0x8] sm:$0x1] %vm411_vm2, %v1788_v37  ;;  %v1961_v54 = vcombine.high %v1959_v60, %v1959_v60 }
 0x19d   : > { %v1975_v55 = vrot.slane %v1959_v60, %v6385_v42  ;;  %2041 = vst.msk [vmem:[#allocation2 + $0xb9] sm:$0x1] %vm411_vm2, %v2017_v9  ;;  %v1809_v56 = vrot.slane %v1781_v45, %v6385_v42  ;;  %v1811_v10 = vcombine.high %v1795_v46, %v1795_v46  ;;  %1854 = vst.msk [vmem:[#allocation2 + $0x48] sm:$0x1] %vm411_vm2, %v1795_v46 }
 0x19e   : > { %v1982_v57 = vrot.slane %v1960_v44, %v6385_v42  ;;  %v1990_v63 = vcombine.high %v1968_v47, %v1968_v47  ;;  %2030 = vst.msk [vmem:[#allocation2 + $0x9] sm:$0x1] %vm411_vm2, %v1968_v47  ;;  %v1812_v53 = vcombine.high %v1802_v49, %v1802_v49  ;;  %1851 = vst.msk [vmem:[#allocation2 + $0x18] sm:$0x1] %vm411_vm2, %v1802_v49 }
 0x19f   : > { %1852 = vst.msk [vmem:[#allocation2 + $0x28] sm:$0x1] %vm411_vm2, %v1810_v50  ;;  %v1989_v0 = vrot.slane %v1961_v54, %v6385_v42  ;;  %v1991_v1 = vcombine.high %v1975_v55, %v1975_v55  ;;  %2034 = vst.msk [vmem:[#allocation2 + $0x49] sm:$0x1] %vm411_vm2, %v1975_v55  ;;  %v2181_v2 = vcombine.high %v2180_v41, %v2180_v41 }
 0x1a0   : > { %v1813_v3 = vcombine.high %v1809_v56, %v1809_v56  ;;  %1855 = vst.msk [vmem:[#allocation2 + $0x58] sm:$0x1] %vm411_vm2, %v1809_v56  ;;  %1856 = vst.msk [vmem:[#allocation2 + $0x68] sm:$0x1] %vm411_vm2, %v1811_v10  ;;  %v1992_v4 = vcombine.high %v1982_v57, %v1982_v57  ;;  %v2188_v5 = vrot.slane %v2180_v41, %v6385_v42 }
 0x1a1   : > { %2031 = vst.msk [vmem:[#allocation2 + $0x19] sm:$0x1] %vm411_vm2, %v1982_v57  ;;  %2032 = vst.msk [vmem:[#allocation2 + $0x29] sm:$0x1] %vm411_vm2, %v1990_v63  ;;  %v2300_v6 = vadd.f32 %v6506_v30, %v6402_v58  ;;  %v1993_v7 = vcombine.high %v1989_v0, %v1989_v0  ;;  %v2195_v8 = vrot.slane %v2181_v2, %v6385_v42 }
 0x1a2   : > { %1853 = vst.msk [vmem:[#allocation2 + $0x38] sm:$0x1] %vm411_vm2, %v1812_v53  ;;  %2035 = vst.msk [vmem:[#allocation2 + $0x59] sm:$0x1] %vm411_vm2, %v1989_v0  ;;  %v2115_v11 = vadd.f32 %v6516_v35, %v6383_v40  ;;  %v2295_v14 = vadd.f32 %v6518_v38, %v6383_v40  ;;  %v2196_v30 = vcombine.high %v2188_v5, %v2188_v5 }
 0x1a3   : > { %2036 = vst.msk [vmem:[#allocation2 + $0x69] sm:$0x1] %vm411_vm2, %v1991_v1  ;;  %1857 = vst.msk [vmem:[#allocation2 + $0x78] sm:$0x1] %vm411_vm2, %v1813_v3  ;;  %v2360_v17 = vrot.slane %v2300_v6, %v6385_v42  ;;  %v2480_v18 = vadd.f32 %v6536_v51, %v6402_v58  ;;  %v2660_v19 = vadd.f32 %v6538_v52, %v6402_v58 }
 0x1a4   : > { %2033 = vst.msk [vmem:[#allocation2 + $0x39] sm:$0x1] %vm411_vm2, %v1992_v4  ;;  %2218 = vst.msk [vmem:[#allocation2 + $0x8a] sm:$0x1] %vm411_vm2, %v2188_v5  ;;  %v2197_v35 = vcombine.high %v2195_v8, %v2195_v8  ;;  %v2125_v38 = vcombine.high %v2115_v11, %v2115_v11  ;;  %v2132_v22 = vrot.slane %v2115_v11, %v6385_v42 }
 0x1a5   : > { %2037 = vst.msk [vmem:[#allocation2 + $0x79] sm:$0x1] %vm411_vm2, %v1993_v7  ;;  %2219 = vst.msk [vmem:[#allocation2 + $0x9a] sm:$0x1] %vm411_vm2, %v2195_v8  ;;  %v2305_v23 = vcombine.high %v2295_v14, %v2295_v14  ;;  %v2361_v24 = vcombine.high %v2360_v17, %v2360_v17  ;;  %v2368_v25 = vrot.slane %v2360_v17, %v6385_v42 }
 0x1a6   : > { %2220 = vst.msk [vmem:[#allocation2 + $0xaa] sm:$0x1] %vm411_vm2, %v2196_v30  ;;  %v2312_v26 = vrot.slane %v2295_v14, %v6385_v42  ;;  %v2540_v51 = vrot.slane %v2480_v18, %v6385_v42  ;;  %2221 = vst.msk [vmem:[#allocation2 + $0xba] sm:$0x1] %vm411_vm2, %v2197_v35  ;;  %v2139_v52 = vrot.slane %v2125_v38, %v6385_v42 }
 0x1a7   : > { %v2140_v27 = vcombine.high %v2132_v22, %v2132_v22  ;;  %v2148_v15 = vrot.slane %v2132_v22, %v6385_v42  ;;  %v2319_v28 = vrot.slane %v2305_v23, %v6385_v42  ;;  %v2375_v31 = vrot.slane %v2361_v24, %v6385_v42  ;;  %2398 = vst.msk [vmem:[#allocation2 + $0x8b] sm:$0x1] %vm411_vm2, %v2368_v25 }
 0x1a8   : > { %v2376_v32 = vcombine.high %v2368_v25, %v2368_v25  ;;  %v2320_v33 = vcombine.high %v2312_v26, %v2312_v26  ;;  %v2328_v16 = vrot.slane %v2312_v26, %v6385_v42  ;;  %v2141_v34 = vcombine.high %v2139_v52, %v2139_v52 }
 0x1a9   : > { %v2155_v29 = vrot.slane %v2139_v52, %v6385_v42  ;;  %v2162_v39 = vrot.slane %v2140_v27, %v6385_v42  ;;  %v2170_v59 = vcombine.high %v2148_v15, %v2148_v15  ;;  %2210 = vst.msk [vmem:[#allocation2 + $0xa] sm:$0x1] %vm411_vm2, %v2148_v15  ;;  %v2377_v41 = vcombine.high %v2375_v31, %v2375_v31 }
 0x1aa   : > { %2399 = vst.msk [vmem:[#allocation2 + $0x9b] sm:$0x1] %vm411_vm2, %v2375_v31  ;;  %2400 = vst.msk [vmem:[#allocation2 + $0xab] sm:$0x1] %vm411_vm2, %v2376_v32  ;;  %v2321_v43 = vcombine.high %v2319_v28, %v2319_v28  ;;  %v2335_v36 = vrot.slane %v2319_v28, %v6385_v42  ;;  %v2342_v37 = vrot.slane %v2320_v33, %v6385_v42 }
 0x1ab   : > { %2390 = vst.msk [vmem:[#allocation2 + $0xb] sm:$0x1] %vm411_vm2, %v2328_v16  ;;  %v2169_v60 = vrot.slane %v2141_v34, %v6385_v42  ;;  %v2171_v44 = vcombine.high %v2155_v29, %v2155_v29  ;;  %v2172_v9 = vcombine.high %v2162_v39, %v2162_v39  ;;  %2211 = vst.msk [vmem:[#allocation2 + $0x1a] sm:$0x1] %vm411_vm2, %v2162_v39 }
 0x1ac   : > { %2212 = vst.msk [vmem:[#allocation2 + $0x2a] sm:$0x1] %vm411_vm2, %v2170_v59  ;;  %2214 = vst.msk [vmem:[#allocation2 + $0x4a] sm:$0x1] %vm411_vm2, %v2155_v29  ;;  %v2350_v45 = vcombine.high %v2328_v16, %v2328_v16  ;;  %v2349_v46 = vrot.slane %v2321_v43, %v6385_v42  ;;  %v2351_v47 = vcombine.high %v2335_v36, %v2335_v36 }
 0x1ad   : > { %2401 = vst.msk [vmem:[#allocation2 + $0xbb] sm:$0x1] %vm411_vm2, %v2377_v41  ;;  %v2352_v48 = vcombine.high %v2342_v37, %v2342_v37  ;;  %2391 = vst.msk [vmem:[#allocation2 + $0x1b] sm:$0x1] %vm411_vm2, %v2342_v37  ;;  %v2541_v49 = vcombine.high %v2540_v51, %v2540_v51  ;;  %v2173_v50 = vcombine.high %v2169_v60, %v2169_v60 }
 0x1ae   : > { %2394 = vst.msk [vmem:[#allocation2 + $0x4b] sm:$0x1] %vm411_vm2, %v2335_v36  ;;  %2213 = vst.msk [vmem:[#allocation2 + $0x3a] sm:$0x1] %vm411_vm2, %v2172_v9  ;;  %v2548_v54 = vrot.slane %v2540_v51, %v6385_v42  ;;  %v2720_v55 = vrot.slane %v2660_v19, %v6385_v42  ;;  %v2475_v56 = vadd.f32 %v6543_v61, %v6383_v40 }
 0x1af   : > { %2215 = vst.msk [vmem:[#allocation2 + $0x5a] sm:$0x1] %vm411_vm2, %v2169_v60  ;;  %2216 = vst.msk [vmem:[#allocation2 + $0x6a] sm:$0x1] %vm411_vm2, %v2171_v44  ;;  %v2353_v10 = vcombine.high %v2349_v46, %v2349_v46  ;;  %v2555_v57 = vrot.slane %v2541_v49, %v6385_v42  ;;  %v2655_v63 = vadd.f32 %v6545_v62, %v6383_v40 }
 0x1b0   : > { %2392 = vst.msk [vmem:[#allocation2 + $0x2b] sm:$0x1] %vm411_vm2, %v2350_v45  ;;  %2393 = vst.msk [vmem:[#allocation2 + $0x3b] sm:$0x1] %vm411_vm2, %v2352_v48  ;;  %v2840_v53 = vadd.f32 %v6557_v12, %v6402_v58  ;;  %v2556_v0 = vcombine.high %v2548_v54, %v2548_v54  ;;  %v2721_v61 = vcombine.high %v2720_v55, %v2720_v55 }
 0x1b1   : > { %2395 = vst.msk [vmem:[#allocation2 + $0x5b] sm:$0x1] %vm411_vm2, %v2349_v46  ;;  %2396 = vst.msk [vmem:[#allocation2 + $0x6b] sm:$0x1] %vm411_vm2, %v2351_v47  ;;  %v2728_v1 = vrot.slane %v2720_v55, %v6385_v42  ;;  %v2485_v2 = vcombine.high %v2475_v56, %v2475_v56  ;;  %v2557_v3 = vcombine.high %v2555_v57, %v2555_v57 }
 0x1b2   : > { %2217 = vst.msk [vmem:[#allocation2 + $0x7a] sm:$0x1] %vm411_vm2, %v2173_v50  ;;  %2578 = vst.msk [vmem:[#allocation2 + $0x8c] sm:$0x1] %vm411_vm2, %v2548_v54  ;;  %v2492_v4 = vrot.slane %v2475_v56, %v6385_v42  ;;  %v2665_v62 = vcombine.high %v2655_v63, %v2655_v63  ;;  %v2672_v5 = vrot.slane %v2655_v63, %v6385_v42 }
 0x1b3   : > { %2397 = vst.msk [vmem:[#allocation2 + $0x7b] sm:$0x1] %vm411_vm2, %v2353_v10  ;;  %2579 = vst.msk [vmem:[#allocation2 + $0x9c] sm:$0x1] %vm411_vm2, %v2555_v57  ;;  %v2735_v12 = vrot.slane %v2721_v61, %v6385_v42  ;;  %v2736_v6 = vcombine.high %v2728_v1, %v2728_v1  ;;  %v2499_v7 = vrot.slane %v2485_v2, %v6385_v42 }
 0x1b4   : > { %2580 = vst.msk [vmem:[#allocation2 + $0xac] sm:$0x1] %vm411_vm2, %v2556_v0  ;;  %2758 = vst.msk [vmem:[#allocation2 + $0x8d] sm:$0x1] %vm411_vm2, %v2728_v1  ;;  %v2900_v8 = vrot.slane %v2840_v53, %v6385_v42  ;;  %v2500_v11 = vcombine.high %v2492_v4, %v2492_v4  ;;  %v2508_v14 = vrot.slane %v2492_v4, %v6385_v42 }
 0x1b5   : > { %2581 = vst.msk [vmem:[#allocation2 + $0xbc] sm:$0x1] %vm411_vm2, %v2557_v3  ;;  %v2679_v30 = vrot.slane %v2665_v62, %v6385_v42  ;;  %v2680_v17 = vcombine.high %v2672_v5, %v2672_v5  ;;  %v2737_v18 = vcombine.high %v2735_v12, %v2735_v12  ;;  %2759 = vst.msk [vmem:[#allocation2 + $0x9d] sm:$0x1] %vm411_vm2, %v2735_v12 }
 0x1b6   : > { %2760 = vst.msk [vmem:[#allocation2 + $0xad] sm:$0x1] %vm411_vm2, %v2736_v6  ;;  %v2501_v19 = vcombine.high %v2499_v7, %v2499_v7  ;;  %v2515_v35 = vrot.slane %v2499_v7, %v6385_v42  ;;  %v2688_v38 = vrot.slane %v2672_v5, %v6385_v42  ;;  %v2522_v22 = vrot.slane %v2500_v11, %v6385_v42 }
 0x1b7   : > { %v2530_v23 = vcombine.high %v2508_v14, %v2508_v14  ;;  %2570 = vst.msk [vmem:[#allocation2 + $0xc] sm:$0x1] %vm411_vm2, %v2508_v14  ;;  %v2681_v24 = vcombine.high %v2679_v30, %v2679_v30  ;;  %v2695_v25 = vrot.slane %v2679_v30, %v6385_v42  ;;  %2761 = vst.msk [vmem:[#allocation2 + $0xbd] sm:$0x1] %vm411_vm2, %v2737_v18  ;;  %v3133_v30 = vld [vmem:[#allocation2 + $0x50] sm:$0xff]  ;;  %v3135_v18 = vld [vmem:[#allocation2 + $0x60] sm:$0xff] }
 0x1b8   : > { %v2529_v26 = vrot.slane %v2501_v19, %v6385_v42  ;;  %v2531_v51 = vcombine.high %v2515_v35, %v2515_v35  ;;  %2574 = vst.msk [vmem:[#allocation2 + $0x4c] sm:$0x1] %vm411_vm2, %v2515_v35  ;;  %v2702_v52 = vrot.slane %v2680_v17, %v6385_v42  ;;  %v2710_v27 = vcombine.high %v2688_v38, %v2688_v38 }
 0x1b9   : > { %2750 = vst.msk [vmem:[#allocation2 + $0xd] sm:$0x1] %vm411_vm2, %v2688_v38  ;;  %v2532_v15 = vcombine.high %v2522_v22, %v2522_v22  ;;  %2571 = vst.msk [vmem:[#allocation2 + $0x1c] sm:$0x1] %vm411_vm2, %v2522_v22  ;;  %v2709_v28 = vrot.slane %v2681_v24, %v6385_v42  ;;  %v2711_v31 = vcombine.high %v2695_v25, %v2695_v25  ;;  %v3137_v22 = vld [vmem:[#allocation2 + $0x70] sm:$0xff] }
 0x1ba   : > { %2572 = vst.msk [vmem:[#allocation2 + $0x2c] sm:$0x1] %vm411_vm2, %v2530_v23  ;;  %2754 = vst.msk [vmem:[#allocation2 + $0x4d] sm:$0x1] %vm411_vm2, %v2695_v25  ;;  %v2901_v32 = vcombine.high %v2900_v8, %v2900_v8  ;;  %v2533_v33 = vcombine.high %v2529_v26, %v2529_v26  ;;  %v2712_v16 = vcombine.high %v2702_v52, %v2702_v52 }
 0x1bb   : > { %2575 = vst.msk [vmem:[#allocation2 + $0x5c] sm:$0x1] %vm411_vm2, %v2529_v26  ;;  %2576 = vst.msk [vmem:[#allocation2 + $0x6c] sm:$0x1] %vm411_vm2, %v2531_v51  ;;  %v2908_v34 = vrot.slane %v2900_v8, %v6385_v42  ;;  %v3020_v29 = vadd.f32 %v6559_v13, %v6402_v58  ;;  %v2713_v39 = vcombine.high %v2709_v28, %v2709_v28  ;;  %v3140_v51 = vld [vmem:[#allocation2 + $0x80] sm:$0xff] }
 0x1bc   : > { %2751 = vst.msk [vmem:[#allocation2 + $0x1d] sm:$0x1] %vm411_vm2, %v2702_v52  ;;  %2752 = vst.msk [vmem:[#allocation2 + $0x2d] sm:$0x1] %vm411_vm2, %v2710_v27  ;;  %v2915_v59 = vrot.slane %v2901_v32, %v6385_v42  ;;  %v2835_v41 = vadd.f32 %v6566_v20, %v6383_v40  ;;  %v3015_v43 = vadd.f32 %v6568_v21, %v6383_v40  ;;  %v3126_v27 = vld [vmem:[#allocation2 + $0x20] sm:$0xff]  ;;  %v3128_v32 = vld [vmem:[#allocation2 + $0x30] sm:$0xff] }
 0x1bd   : > { %2573 = vst.msk [vmem:[#allocation2 + $0x3c] sm:$0x1] %vm411_vm2, %v2532_v15  ;;  %2755 = vst.msk [vmem:[#allocation2 + $0x5d] sm:$0x1] %vm411_vm2, %v2709_v28  ;;  %v2916_v58 = vcombine.high %v2908_v34, %v2908_v34  ;;  %v3080_v13 = vrot.slane %v3020_v29, %v6385_v42  ;;  %v3144_v29 = vld [vmem:[#allocation2 + $0xa0] sm:$0xff] }
 0x1be   : > { %2756 = vst.msk [vmem:[#allocation2 + $0x6d] sm:$0x1] %vm411_vm2, %v2711_v31  ;;  %2577 = vst.msk [vmem:[#allocation2 + $0x7c] sm:$0x1] %vm411_vm2, %v2533_v33  ;;  %v2917_v36 = vcombine.high %v2915_v59, %v2915_v59  ;;  %v2845_v37 = vcombine.high %v2835_v41, %v2835_v41  ;;  %v2852_v20 = vrot.slane %v2835_v41, %v6385_v42  ;;  %v3142_v31 = vld [vmem:[#allocation2 + $0x90] sm:$0xff] }
 0x1bf   : > { %2753 = vst.msk [vmem:[#allocation2 + $0x3d] sm:$0x1] %vm411_vm2, %v2712_v16  ;;  %2938 = vst.msk [vmem:[#allocation2 + $0x8e] sm:$0x1] %vm411_vm2, %v2908_v34  ;;  %v3025_v60 = vcombine.high %v3015_v43, %v3015_v43  ;;  %v3081_v40 = vcombine.high %v3080_v13, %v3080_v13  ;;  %v3088_v21 = vrot.slane %v3080_v13, %v6385_v42 }
 0x1c0   : > { %2757 = vst.msk [vmem:[#allocation2 + $0x7d] sm:$0x1] %vm411_vm2, %v2713_v39  ;;  %2939 = vst.msk [vmem:[#allocation2 + $0x9e] sm:$0x1] %vm411_vm2, %v2915_v59  ;;  %v3032_v44 = vrot.slane %v3015_v43, %v6385_v42  ;;  %v2859_v9 = vrot.slane %v2845_v37, %v6385_v42  ;;  %v2860_v45 = vcombine.high %v2852_v20, %v2852_v20  ;;  %v3146_v43 = vld [vmem:[#allocation2 + $0xb0] sm:$0xff] }
 0x1c1   : > { %2940 = vst.msk [vmem:[#allocation2 + $0xae] sm:$0x1] %vm411_vm2, %v2916_v58  ;;  %2941 = vst.msk [vmem:[#allocation2 + $0xbe] sm:$0x1] %vm411_vm2, %v2917_v36  ;;  %v2868_v46 = vrot.slane %v2852_v20, %v6385_v42  ;;  %v3039_v47 = vrot.slane %v3025_v60, %v6385_v42  ;;  %v3095_v48 = vrot.slane %v3081_v40, %v6385_v42 }
 0x1c2   : > { %v3096_v49 = vcombine.high %v3088_v21, %v3088_v21  ;;  %3118 = vst.msk [vmem:[#allocation2 + $0x8f] sm:$0x1] %vm411_vm2, %v3088_v21  ;;  %v3040_v50 = vcombine.high %v3032_v44, %v3032_v44  ;;  %v3048_v54 = vrot.slane %v3032_v44, %v6385_v42  ;;  %v2861_v55 = vcombine.high %v2859_v9, %v2859_v9 }
 0x1c3   : > { %v2875_v56 = vrot.slane %v2859_v9, %v6385_v42  ;;  %v2882_v10 = vrot.slane %v2860_v45, %v6385_v42  ;;  %v2890_v57 = vcombine.high %v2868_v46, %v2868_v46  ;;  %2930 = vst.msk [vmem:[#allocation2 + $0xe] sm:$0x1] %vm411_vm2, %v2868_v46  ;;  %v3097_v63 = vcombine.high %v3095_v48, %v3095_v48 }
 0x1c4   : > { %3119 = vst.msk [vmem:[#allocation2 + $0x9f] sm:$0x1] %vm411_vm2, %v3095_v48  ;;  %3120 = vst.msk [vmem:[#allocation2 + $0xaf] sm:$0x1] %vm411_vm2, %v3096_v49  ;;  %v3041_v53 = vcombine.high %v3039_v47, %v3039_v47  ;;  %v3055_v0 = vrot.slane %v3039_v47, %v6385_v42  ;;  %v3062_v61 = vrot.slane %v3040_v50, %v6385_v42 }
 0x1c5   : > { %3110 = vst.msk [vmem:[#allocation2 + $0xf] sm:$0x1] %vm411_vm2, %v3048_v54  ;;  %v2889_v1 = vrot.slane %v2861_v55, %v6385_v42  ;;  %v2891_v2 = vcombine.high %v2875_v56, %v2875_v56  ;;  %v2892_v3 = vcombine.high %v2882_v10, %v2882_v10  ;;  %2931 = vst.msk [vmem:[#allocation2 + $0x1e] sm:$0x1] %vm411_vm2, %v2882_v10 }
 0x1c6   : > { %2932 = vst.msk [vmem:[#allocation2 + $0x2e] sm:$0x1] %vm411_vm2, %v2890_v57  ;;  %2934 = vst.msk [vmem:[#allocation2 + $0x4e] sm:$0x1] %vm411_vm2, %v2875_v56  ;;  %v3070_v4 = vcombine.high %v3048_v54, %v3048_v54  ;;  %v3069_v62 = vrot.slane %v3041_v53, %v6385_v42  ;;  %v3071_v5 = vcombine.high %v3055_v0, %v3055_v0  ;;  %v3131_v42 = vld [vmem:[#allocation2 + $0x40] sm:$0xff] }
 0x1c7   : > { %3121 = vst.msk [vmem:[#allocation2 + $0xbf] sm:$0x1] %vm411_vm2, %v3097_v63  ;;  %v3072_v12 = vcombine.high %v3062_v61, %v3062_v61  ;;  %3111 = vst.msk [vmem:[#allocation2 + $0x1f] sm:$0x1] %vm411_vm2, %v3062_v61  ;;  %v2893_v6 = vcombine.high %v2889_v1, %v2889_v1 }
 0x1c8   : > { %3114 = vst.msk [vmem:[#allocation2 + $0x4f] sm:$0x1] %vm411_vm2, %v3055_v0  ;;  %2933 = vst.msk [vmem:[#allocation2 + $0x3e] sm:$0x1] %vm411_vm2, %v2892_v3  ;;  %v3073_v7 = vcombine.high %v3069_v62, %v3069_v62 }
 0x1c9   : > { %2935 = vst.msk [vmem:[#allocation2 + $0x5e] sm:$0x1] %vm411_vm2, %v2889_v1  ;;  %2936 = vst.msk [vmem:[#allocation2 + $0x6e] sm:$0x1] %vm411_vm2, %v2891_v2  ;;  %v3141_v25 = vld [vmem:[#allocation2 + $0x88] sm:$0xff] }
 0x1ca   : > { %3112 = vst.msk [vmem:[#allocation2 + $0x2f] sm:$0x1] %vm411_vm2, %v3070_v4  ;;  %3113 = vst.msk [vmem:[#allocation2 + $0x3f] sm:$0x1] %vm411_vm2, %v3072_v12  ;;  %v5992_v15 = vpack.c.bf16 %v3141_v25, %v3140_v51 }
 0x1cb   : > { %3115 = vst.msk [vmem:[#allocation2 + $0x5f] sm:$0x1] %vm411_vm2, %v3069_v62  ;;  %3116 = vst.msk [vmem:[#allocation2 + $0x6f] sm:$0x1] %vm411_vm2, %v3071_v5  ;;  %v3143_v52 = vld [vmem:[#allocation2 + $0x98] sm:$0xff]  ;;  %v3145_v16 = vld [vmem:[#allocation2 + $0xa8] sm:$0xff] }
 0x1cc   : > { %2937 = vst.msk [vmem:[#allocation2 + $0x7e] sm:$0x1] %vm411_vm2, %v2893_v6  ;;  %3117 = vst.msk [vmem:[#allocation2 + $0x7f] sm:$0x1] %vm411_vm2, %v3073_v7  ;;  %v3123_v26 = vld [vmem:[#allocation2 + $0x8] sm:$0xff]  ;;  %v5996_v33 = vpack.c.bf16 %v3143_v52, %v3142_v31  ;;  %v6855_v59 = vpack.c.bf16 %v3145_v16, %v3144_v29 }
 0x1ce   : > { %v3125_v28 = vld [vmem:[#allocation2 + $0x18] sm:$0xff] }
 0x1cf   : > { %v3132_v8 = vld [vmem:[#allocation2 + $0x48] sm:$0xff]  ;;  %v3147_v39 = vld [vmem:[#allocation2 + $0xb8] sm:$0xff] }
 0x1d0   : > { %v5968_v14 = vpack.c.bf16 %v3132_v8, %v3131_v42  ;;  %v6859_v58 = vpack.c.bf16 %v3147_v39, %v3146_v43 }
 0x1d1   : > { %v3127_v34 = vld [vmem:[#allocation2 + $0x28] sm:$0xff]  ;;  %v3129_v41 = vld [vmem:[#allocation2 + $0x38] sm:$0xff] }
 0x1d2   : > { %v3134_v17 = vld [vmem:[#allocation2 + $0x58] sm:$0xff]  ;;  %v3136_v19 = vld [vmem:[#allocation2 + $0x68] sm:$0xff]  ;;  %5970 = vmatprep.subr.msk.bf16.mxu0 %vm6830_vm4, %v5968_v14 }
 0x1d3   : > { %v5974_v35 = vpack.c.bf16 %v3134_v17, %v3133_v30  ;;  %v5980_v38 = vpack.c.bf16 %v3136_v19, %v3135_v18  ;;  %5973 = vmatpush3.bf16.xpose.msk.msra.mxu0 %vm6830_vm4, %v5968_v14  ;;  %v3138_v23 = vld [vmem:[#allocation2 + $0x78] sm:$0xff] }
 0x1d4   : > { %v5986_v24 = vpack.c.bf16 %v3138_v23, %v3137_v22 }
 0x1d5   : > { %5976 = vmatprep.subr.msk.bf16.mxu1 %vm6830_vm4, %v5974_v35  ;;  %5982 = vmatprep.subr.msk.bf16.mxu0 %vm6830_vm4, %v5980_v38 }
 0x1d6   : > { %5979 = vmatpush3.bf16.xpose.msk.msra.mxu1 %vm6830_vm4, %v5974_v35 }
 0x1d7   : > { %5988 = vmatprep.subr.msk.bf16.mxu1 %vm6830_vm4, %v5986_v24 }
 0x1da   : > { %5837 = vmatmul.mubr.msk.f32.vlgmr.msra.gmra.mrb[16].mxu0 %vm3148_vm3, %v3123_v26 }
 0x1db   : > { %5985 = vmatpush3.bf16.xpose.msk.msra.mxu0 %vm6830_vm4, %v5980_v38  ;;  %5850 = vmatprep.mubr.msk.f32.mxu0 %vm3148_vm3, %v3126_v27 }
 0x1dc   : > { %5993 = vmatprep.subr.bf16.mxu0 %v5992_v15 }
 0x1dd   : > { %5844 = vmatmul.mubr.msk.f32.vlgmr.msra.gmra.mrb[16].mxu1 %vm3148_vm3, %v3125_v28 }
 0x1de   : > { %5991 = vmatpush3.bf16.xpose.msk.msra.mxu1 %vm6830_vm4, %v5986_v24  ;;  %5857 = vmatprep.mubr.msk.f32.mxu1 %vm3148_vm3, %v3128_v32 }
 0x1df   : > { %5997 = vmatprep.subr.bf16.mxu1 %v5996_v33 }
 0x1e2   : > { %5851 = vmatmul.mubr.msk.f32.vlgmr.msra.gmra.mrb[18].mxu0 %vm3148_vm3, %v3127_v34 }
 0x1e3   : > { %5995 = vmatpush3.bf16.msra.mxu0 %v5992_v15 }
 0x1e4   : > { %6001 = vmatprep.subr.bf16.mxu0 %v6855_v59 }
 0x1e5   : > { %5858 = vmatmul.mubr.msk.f32.vlgmr.msra.gmra.mrb[18].mxu1 %vm3148_vm3, %v3129_v41 }
 0x1e6   : > { %5999 = vmatpush3.bf16.msra.mxu1 %v5996_v33 }
 0x1e7   : > { %6005 = vmatprep.subr.bf16.mxu1 %v6859_v58 }
 0x2ad   : > { %v5838_v13 = vpop.f32.mrb[16].mxu0 }
 0x2ae   : > { %v3227_v36 = vpop.f32.mrb[17].mxu0  ;;  %v3504_v40 = vsel %vm3148_vm3, %v5838_v13, -inf }
 0x2af   : > { %v3497_v9 = vsel %vm3148_vm3, %v3227_v36, -inf }
 0x2b0   : > { %v5845_v37 = vpop.f32.mrb[16].mxu1 }
 0x2b1   : > { %v3314_v20 = vpop.f32.mrb[17].mxu1  ;;  %v3505_v48 = vsel %vm3148_vm3, %v5845_v37, -inf }
 0x2b2   : > { %v3498_v55 = vsel %vm3148_vm3, %v3314_v20, -inf }
 0x2b5   : > { %v5852_v60 = vpop.f32.mrb[18].mxu0 }
 0x2b6   : > { %v3506_v21 = vsel %vm3148_vm3, %v5852_v60, -inf  ;;  %v3401_v44 = vpop.f32.mrb[19].mxu0 }
 0x2b7   : > { %v3507_v45 = vmax.f32 %v3504_v40, %v3506_v21  ;;  %v3499_v46 = vsel %vm3148_vm3, %v3401_v44, -inf }
 0x2b8   : > { %v5859_v47 = vpop.f32.mrb[18].mxu1  ;;  %v3500_v49 = vmax.f32 %v3497_v9, %v3499_v46  ;;  %v6153_v9 = vmov 0.0   ;;  %v4866_v46 = vld [vmem:[%s6248_s11 + $0x4] sm:$0xf] }
 0x2b9   : > { %v3508_v50 = vsel %vm3148_vm3, %v5859_v47, -inf  ;;  %v3488_v54 = vpop.f32.mrb[19].mxu1 }
 0x2ba   : > { %v3509_v56 = vmax.f32 %v3505_v48, %v3508_v50  ;;  %v3501_v10 = vsel %vm3148_vm3, %v3488_v54, -inf  ;;  %v4963_v48 = vld [vmem:[%s6248_s11 + $0x4] sm:$0xf] }
 0x2bb   : > { %v3502_v57 = vmax.f32 %v3498_v55, %v3501_v10  ;;  %v5060_v50 = vld [vmem:[%s6248_s11 + $0x4] sm:$0xf] }
 0x2bc   : > { %v3510_v63 = vmax.f32 %v3507_v45, %v3509_v56  ;;  %v4092_v45 = vld [vmem:[%s6248_s11] sm:$0xf]  ;;  %v5157_v55 = vld [vmem:[%s6248_s11 + $0x4] sm:$0xf] }
 0x2bd   : > { %v3503_v53 = vmax.f32 %v3500_v49, %v3502_v57  ;;  %v4288_v49 = vld [vmem:[%s6248_s11] sm:$0xf]  ;;  %v5254_v10 = vld [vmem:[%s6248_s11 + $0x4] sm:$0xf] }
 0x2be   : > { %v3512_v0 = vsub.f32 %v5838_v13, %v3510_v63  ;;  %v3514_v61 = vsub.f32 %v5845_v37, %v3510_v63  ;;  %v3516_v1 = vsub.f32 %v5852_v60, %v3510_v63  ;;  %v3518_v2 = vsub.f32 %v5859_v47, %v3510_v63  ;;  %v4190_v47 = vld [vmem:[%s6248_s11] sm:$0xf]  ;;  %v5351_v63 = vld [vmem:[%s6248_s11 + $0x4] sm:$0xf] }
 0x2bf   : > { %v3511_v3 = vsub.f32 %v3227_v36, %v3503_v53  ;;  %v3513_v4 = vsub.f32 %v3314_v20, %v3503_v53  ;;  %v3515_v62 = vsub.f32 %v3401_v44, %v3503_v53  ;;  %v3517_v5 = vsub.f32 %v3488_v54, %v3503_v53  ;;  %v4386_v54 = vld [vmem:[%s6248_s11] sm:$0xf] }
 0x2c0   : > { %v3521_v12 = vmul.f32 1.442695, %v3512_v0  ;;  %v3525_v6 = vmul.f32 1.442695, %v3514_v61  ;;  %v3529_v7 = vmul.f32 1.442695, %v3516_v1 }
 0x2c1   : > { %v3533_v42 = vmul.f32 1.442695, %v3518_v2  ;;  %v3519_v8 = vmul.f32 1.442695, %v3511_v3  ;;  %v3523_v11 = vmul.f32 1.442695, %v3513_v4 }
 0x2c2   : > { %6060 = vpow2.f32 %v3521_v12  ;;  %v3527_v14 = vmul.f32 1.442695, %v3515_v62  ;;  %v3531_v30 = vmul.f32 1.442695, %v3517_v5  ;;  %v4484_v56 = vld [vmem:[%s6248_s11] sm:$0xf] }
 0x2c3   : > { %6062 = vpow2.f32 %v3525_v6  ;;  %v4582_v57 = vld [vmem:[%s6248_s11] sm:$0xf] }
 0x2c4   : > { %6064 = vpow2.f32 %v3529_v7 }
 0x2c5   : > { %6066 = vpow2.f32 %v3533_v42 }
 0x2c6   : > { %6068 = vpow2.f32 %v3519_v8 }
 0x2c7   : > { %6070 = vpow2.f32 %v3523_v11 }
 0x2c8   : > { %6072 = vpow2.f32 %v3527_v14 }
 0x2c9   : > { %6074 = vpow2.f32 %v3531_v30 }
 0x2cc   : > { %v6061_v17 = vpop.eup %6060 }
 0x2cd   : > { %v6063_v18 = vpop.eup %6062  ;;  %v3542_v19 = vsel %vm3148_vm3, %v6061_v17, 0.0 }
 0x2ce   : > { %v6065_v35 = vpop.eup %6064  ;;  %v3543_v38 = vsel %vm3148_vm3, %v6063_v18, 0.0 }
 0x2cf   : > { %v6067_v22 = vpop.eup %6066  ;;  %v3544_v23 = vadd.f32 %v3543_v38, %v3542_v19  ;;  %v3545_v25 = vsel %vm3148_vm3, %v6065_v35, 0.0 }
 0x2d0   : > { %v6069_v24 = vpop.eup %6068  ;;  %v3547_v15 = vsel %vm3148_vm3, %v6067_v22, 0.0 }
 0x2d1   : > { %v6071_v26 = vpop.eup %6070  ;;  %v3546_v51 = vadd.f32 %v3545_v25, %v3544_v23  ;;  %v3535_v52 = vsel %vm3148_vm3, %v6069_v24, 0.0 }
 0x2d2   : > { %v6073_v27 = vpop.eup %6072  ;;  %v3536_v28 = vsel %vm3148_vm3, %v6071_v26, 0.0 }
 0x2d3   : > { %v6075_v31 = vpop.eup %6074  ;;  %v3548_v32 = vadd.f32 %v3547_v15, %v3546_v51  ;;  %v3537_v33 = vadd.f32 %v3536_v28, %v3535_v52  ;;  %v3538_v16 = vsel %vm3148_vm3, %v6073_v27, 0.0 }
 0x2d4   : > { %v3540_v29 = vsel %vm3148_vm3, %v6075_v31, 0.0 }
 0x2d5   : > { %6076 = vrcp.f32 %v3548_v32  ;;  %v3539_v34 = vadd.f32 %v3538_v16, %v3537_v33 }
 0x2d7   : > { %v3541_v39 = vadd.f32 %v3540_v29, %v3539_v34 }
 0x2d9   : > { %6078 = vrcp.f32 %v3541_v39 }
 0x2df   : > { %v6077_v41 = vpop.eup %6076 }
 0x2e0   : > { %v3552_v43 = vmul.f32 %v6077_v41, %v6061_v17  ;;  %v3554_v13 = vmul.f32 %v6077_v41, %v6063_v18  ;;  %v3556_v36 = vmul.f32 %v6077_v41, %v6065_v35  ;;  %v3558_v37 = vmul.f32 %v6077_v41, %v6067_v22 }
 0x2e3   : > { %v6079_v20 = vpop.eup %6078 }
 0x2e4   : > { %v3551_v60 = vmul.f32 %v6079_v20, %v6069_v24  ;;  %v3553_v40 = vmul.f32 %v6079_v20, %v6071_v26  ;;  %v3555_v21 = vmul.f32 %v6079_v20, %v6073_v27  ;;  %v3557_v44 = vmul.f32 %v6079_v20, %v6075_v31  ;;  %v6934_v26 = vld [vmem:[%s7197_s3] sm:$0xf] }
 0x2e6   : > { %5864 = vmatprep.mubr.msk.f32.mxu0 %vm3148_vm3, %v3551_v60  ;;  %5871 = vmatprep.mubr.msk.f32.mxu1 %vm3148_vm3, %v3553_v40 }
 0x2e7   : > { %5865 = vmatmul.mubr.msk.f32.vlgmr.msra.gmra.mrb[20].mxu0 %vm3148_vm3, %v3552_v43  ;;  %5872 = vmatmul.mubr.msk.f32.vlgmr.msra.gmra.mrb[20].mxu1 %vm3148_vm3, %v3554_v13 }
 0x2e8   : > { %6003 = vmatpush3.bf16.msra.mxu0 %v6855_v59  ;;  %6007 = vmatpush3.bf16.msra.mxu1 %v6859_v58  ;;  %v3994_v59 = vld [vmem:[%s6248_s11] sm:$0xf]  ;;  %v4769_v58 = vld [vmem:[%s6248_s11 + $0x4] sm:$0xf] }
 0x2e9   : > { %5878 = vmatprep.mubr.msk.f32.mxu0 %vm3148_vm3, %v3555_v21  ;;  %5885 = vmatprep.mubr.msk.f32.mxu1 %vm3148_vm3, %v3557_v44 }
 0x2ea   : > { %5888 = vmatprep.subr.mxu0 %v6153_v9  ;;  %5893 = vmatprep.subr.mxu1 %v6153_v9 }
 0x2eb   : > { %5879 = vmatmul.mubr.msk.f32.vlgmr.msra.gmra.mrb[22].mxu0 %vm3148_vm3, %v3556_v36  ;;  %5886 = vmatmul.mubr.msk.f32.vlgmr.msra.gmra.mrb[22].mxu1 %vm3148_vm3, %v3558_v37 }
 0x2ec   : > { %5890 = vmatprep.mubr.msk.f32.mxu0 %vm6154_vm5, %v6153_v9  ;;  %5895 = vmatprep.mubr.msk.f32.mxu1 %vm6154_vm5, %v6153_v9 }
 0x2ed   : > { %4082 = vrot.lane.b32.xlu0 %v3994_v59, %s6144_s12  ;;  %4857 = vrot.lane.b32.xlu1 %v4769_v58, %s6144_s12 }
 0x2f1   : > { %4180 = vrot.lane.b32.xlu0 %v4092_v45, %s6146_s14  ;;  %4954 = vrot.lane.b32.xlu1 %v4866_v46, %s6146_s14 }
 0x2f5   : > { %4278 = vrot.lane.b32.xlu0 %v4190_v47, %s6145_s13  ;;  %5051 = vrot.lane.b32.xlu1 %v4963_v48, %s6145_s13 }
 0x2f9   : > { %4376 = vrot.lane.b32.xlu0 %v4288_v49, %s6147_s15  ;;  %5148 = vrot.lane.b32.xlu1 %v5060_v50, %s6147_s15 }
 0x2fd   : > { %4474 = vrot.lane.b32.xlu0 %v4386_v54, %s6148_s23  ;;  %5245 = vrot.lane.b32.xlu1 %v5157_v55, %s6148_s23 }
 0x301   : > { %4572 = vrot.lane.b32.xlu0 %v4484_v56, %s6149_s25  ;;  %5342 = vrot.lane.b32.xlu1 %v5254_v10, %s6149_s25 }
 0x305   : > { %4670 = vrot.lane.b32.xlu0 %v4582_v57, %s6150_s26  ;;  %5439 = vrot.lane.b32.xlu1 %v5351_v63, %s6150_s26 }
 0x3ba   : > { %v5866_v53 = vpop.f32.mrb[20].mxu0  ;;  %v5873_v0 = vpop.f32.mrb[20].mxu1 }
 0x3bb   : > { %3884 = vst.msk [vmem:[#allocation3 + $0x8] sm:$0xff] %vm3148_vm3, %v5866_v53  ;;  %3886 = vst.msk [vmem:[#allocation3 + $0x18] sm:$0xff] %vm3148_vm3, %v5873_v0  ;;  %v3631_v61 = vpop.f32.mrb[21].mxu0  ;;  %v3712_v1 = vpop.f32.mrb[21].mxu1 }
 0x3bc   : > { %3883 = vst.msk [vmem:[#allocation3] sm:$0xff] %vm3148_vm3, %v3631_v61  ;;  %3885 = vst.msk [vmem:[#allocation3 + $0x10] sm:$0xff] %vm3148_vm3, %v3712_v1 }
 0x3be   : > { %v5880_v2 = vpop.f32.mrb[22].mxu0  ;;  %v5887_v3 = vpop.f32.mrb[22].mxu1 }
 0x3bf   : > { %3888 = vst.msk [vmem:[#allocation3 + $0x28] sm:$0xff] %vm3148_vm3, %v5880_v2  ;;  %3890 = vst.msk [vmem:[#allocation3 + $0x38] sm:$0xff] %vm3148_vm3, %v5887_v3  ;;  %v3793_v4 = vpop.f32.mrb[23].mxu0  ;;  %v3874_v62 = vpop.f32.mrb[23].mxu1 }
 0x3c0   : > { %3887 = vst.msk [vmem:[#allocation3 + $0x20] sm:$0xff] %vm3148_vm3, %v3793_v4  ;;  %3889 = vst.msk [vmem:[#allocation3 + $0x30] sm:$0xff] %vm3148_vm3, %v3874_v62 }
 0x3c2   : > { %v6943_v21 = vld [vmem:[#allocation3 + $0x18] sm:$0x1] }
 0x3c3   : > { %v3895_v5 = vld [vmem:[#allocation3 + $0x10] sm:$0x1]  ;;  %v3996_v6 = vld [vmem:[#allocation3 + $0x11] sm:$0x1]  ;;  %v3894_v7 = vld [vmem:[#allocation3] sm:$0x1] }
 0x3c4   : > { %v3907_v12 = vrot.slane %v3895_v5, 7  ;;  %v4003_v42 = vrot.slane %v3996_v6, 7  ;;  %v4094_v8 = vld [vmem:[#allocation3 + $0x12] sm:$0x1]  ;;  %v3995_v11 = vld [vmem:[#allocation3 + $0x1] sm:$0x1] }
 0x3c5   : > { %v4093_v14 = vld [vmem:[#allocation3 + $0x2] sm:$0x1]  ;;  %v4101_v30 = vrot.slane %v4094_v8, 7  ;;  %v4192_v17 = vld [vmem:[#allocation3 + $0x13] sm:$0x1] }
 0x3c6   : > { %v3909_v38 = vsel %vm3908_vm6, %v3907_v12, %v3894_v7  ;;  %v4191_v51 = vld [vmem:[#allocation3 + $0x3] sm:$0x1]  ;;  %v4004_v52 = vsel %vm3908_vm6, %v4003_v42, %v3995_v11  ;;  %v4199_v32 = vrot.slane %v4192_v17, 7  ;;  %v4289_v20 = vld [vmem:[#allocation3 + $0x4] sm:$0x1]  ;;  %v4689_v12 = vrot.slane %v6943_v21, 7 }
 0x3c7   : > { %v3896_v18 = vld [vmem:[#allocation3 + $0x20] sm:$0x1]  ;;  %v3897_v19 = vld [vmem:[#allocation3 + $0x30] sm:$0x1]  ;;  %v3997_v35 = vld [vmem:[#allocation3 + $0x21] sm:$0x1]  ;;  %v4102_v31 = vsel %vm3908_vm6, %v4101_v30, %v4093_v14 }
 0x3c8   : > { %v3910_v22 = vrot.slane %v3896_v18, 6  ;;  %v3913_v23 = vrot.slane %v3897_v19, 5  ;;  %v3998_v24 = vld [vmem:[#allocation3 + $0x31] sm:$0x1]  ;;  %v4005_v25 = vrot.slane %v3997_v35, 6  ;;  %v4200_v36 = vsel %vm3908_vm6, %v4199_v32, %v4191_v51 }
 0x3c9   : > { %v4007_v27 = vrot.slane %v3998_v24, 5  ;;  %v4095_v15 = vld [vmem:[#allocation3 + $0x22] sm:$0x1]  ;;  %v4096_v28 = vld [vmem:[#allocation3 + $0x32] sm:$0x1] }
 0x3ca   : > { %v3912_v33 = vsel %vm3911_vm7, %v3910_v22, %v3909_v38  ;;  %v4006_v16 = vsel %vm3911_vm7, %v4005_v25, %v4004_v52  ;;  %v4103_v34 = vrot.slane %v4095_v15, 6  ;;  %v4105_v29 = vrot.slane %v4096_v28, 5  ;;  %v4193_v39 = vld [vmem:[#allocation3 + $0x23] sm:$0x1]  ;;  %v4194_v41 = vld [vmem:[#allocation3 + $0x33] sm:$0x1] }
 0x3cb   : > { %v3915_v43 = vsel %vm3914_vm8, %v3913_v23, %v3912_v33  ;;  %v4008_v13 = vsel %vm3914_vm8, %v4007_v27, %v4006_v16  ;;  %v4201_v37 = vrot.slane %v4193_v39, 6  ;;  %v4290_v60 = vld [vmem:[#allocation3 + $0x14] sm:$0x1]  ;;  %v4291_v40 = vld [vmem:[#allocation3 + $0x24] sm:$0x1]  ;;  %v4203_v59 = vrot.slane %v4194_v41, 5 }
 0x3cc   : > { %5889 = vmatpush3.msk.msra.mxu0 %vm245_vm1, %v3915_v43  ;;  %5894 = vmatpush3.msk.msra.mxu1 %vm245_vm1, %v4008_v13  ;;  %v4104_v44 = vsel %vm3911_vm7, %v4103_v34, %v4102_v31  ;;  %v4292_v58 = vld [vmem:[#allocation3 + $0x34] sm:$0x1]  ;;  %v4297_v45 = vrot.slane %v4290_v60, 7  ;;  %v4299_v46 = vrot.slane %v4291_v40, 6  ;;  %v4387_v49 = vld [vmem:[#allocation3 + $0x5] sm:$0x1] }
 0x3cd   : > { %5891 = vmatmul.mubr.msk.f32.vlgmr.msra.gmra.mrb[24].mxu0 %vm238_vm0, %v6934_v26  ;;  %5896 = vmatmul.mubr.msk.f32.vlgmr.msra.gmra.mrb[24].mxu1 %vm238_vm0, %v6934_v26  ;;  %v4202_v47 = vsel %vm3911_vm7, %v4201_v37, %v4200_v36  ;;  %v4301_v48 = vrot.slane %v4292_v58, 5  ;;  %v4388_v50 = vld [vmem:[#allocation3 + $0x15] sm:$0x1]  ;;  %v4106_v54 = vsel %vm3914_vm8, %v4105_v29, %v4104_v44  ;;  %v4389_v10 = vld [vmem:[#allocation3 + $0x25] sm:$0x1] }
 0x3ce   : > { %5898 = vmatprep.subr.mxu0 %v6153_v9  ;;  %5903 = vmatprep.subr.mxu1 %v6153_v9  ;;  %v4204_v55 = vsel %vm3914_vm8, %v4203_v59, %v4202_v47  ;;  %v4298_v56 = vsel %vm3908_vm6, %v4297_v45, %v4289_v20  ;;  %v4390_v57 = vld [vmem:[#allocation3 + $0x35] sm:$0x1]  ;;  %v4395_v63 = vrot.slane %v4388_v50, 7  ;;  %v4397_v0 = vrot.slane %v4389_v10, 6  ;;  %v4485_v1 = vld [vmem:[#allocation3 + $0x6] sm:$0x1] }
 0x3cf   : > { %5899 = vmatpush3.msk.msra.mxu0 %vm245_vm1, %v4106_v54  ;;  %5904 = vmatpush3.msk.msra.mxu1 %vm245_vm1, %v4204_v55  ;;  %v4300_v53 = vsel %vm3911_vm7, %v4299_v46, %v4298_v56  ;;  %v4399_v61 = vrot.slane %v4390_v57, 5  ;;  %v4486_v2 = vld [vmem:[#allocation3 + $0x16] sm:$0x1]  ;;  %v4487_v4 = vld [vmem:[#allocation3 + $0x26] sm:$0x1] }
 0x3d0   : > { %5900 = vmatprep.mubr.msk.f32.mxu0 %vm6154_vm5, %v6153_v9  ;;  %5905 = vmatprep.mubr.msk.f32.mxu1 %vm6154_vm5, %v6153_v9  ;;  %v4396_v3 = vsel %vm3908_vm6, %v4395_v63, %v4387_v49  ;;  %v4488_v62 = vld [vmem:[#allocation3 + $0x36] sm:$0x1]  ;;  %v4493_v5 = vrot.slane %v4486_v2, 7  ;;  %v4302_v6 = vsel %vm3914_vm8, %v4301_v48, %v4300_v53  ;;  %v4495_v42 = vrot.slane %v4487_v4, 6  ;;  %v4583_v8 = vld [vmem:[#allocation3 + $0x7] sm:$0x1] }
 0x3d1   : > { %5908 = vmatprep.subr.mxu0 %v6153_v9  ;;  %5913 = vmatprep.subr.mxu1 %v6153_v9  ;;  %v4398_v7 = vsel %vm3911_vm7, %v4397_v0, %v4396_v3  ;;  %v4584_v11 = vld [vmem:[#allocation3 + $0x17] sm:$0x1]  ;;  %v4681_v14 = vld [vmem:[#allocation3 + $0x8] sm:$0x1]  ;;  %v4497_v18 = vrot.slane %v4488_v62, 5 }
 0x3d2   : > { %5901 = vmatmul.mubr.msk.f32.vlgmr.msra.gmra.mrb[26].mxu0 %vm238_vm0, %v6934_v26  ;;  %5906 = vmatmul.mubr.msk.f32.vlgmr.msra.gmra.mrb[26].mxu1 %vm238_vm0, %v6934_v26  ;;  %v4400_v30 = vsel %vm3914_vm8, %v4399_v61, %v4398_v7  ;;  %v4494_v17 = vsel %vm3908_vm6, %v4493_v5, %v4485_v1  ;;  %v4585_v19 = vld [vmem:[#allocation3 + $0x27] sm:$0x1]  ;;  %v4586_v35 = vld [vmem:[#allocation3 + $0x37] sm:$0x1]  ;;  %v4591_v38 = vrot.slane %v4584_v11, 7  ;;  %v4690_v27 = vsel %vm3908_vm6, %v4689_v12, %v4681_v14 }
 0x3d3   : > { %5909 = vmatpush3.msk.msra.mxu0 %vm245_vm1, %v4302_v6  ;;  %5914 = vmatpush3.msk.msra.mxu1 %vm245_vm1, %v4400_v30  ;;  %v4496_v22 = vsel %vm3911_vm7, %v4495_v42, %v4494_v17  ;;  %v4593_v23 = vrot.slane %v4585_v19, 6  ;;  %v4595_v24 = vrot.slane %v4586_v35, 5  ;;  %v4683_v25 = vld [vmem:[#allocation3 + $0x28] sm:$0x1]  ;;  %v4684_v51 = vld [vmem:[#allocation3 + $0x38] sm:$0x1] }
 0x3d4   : > { %5910 = vmatprep.mubr.msk.f32.mxu0 %vm6154_vm5, %v6153_v9  ;;  %5915 = vmatprep.mubr.msk.f32.mxu1 %vm6154_vm5, %v6153_v9  ;;  %v4592_v52 = vsel %vm3908_vm6, %v4591_v38, %v4583_v8  ;;  %v4691_v15 = vrot.slane %v4683_v25, 6  ;;  %v4770_v28 = vld [vmem:[#allocation3 + $0x9] sm:$0x1]  ;;  %v4771_v31 = vld [vmem:[#allocation3 + $0x19] sm:$0x1]  ;;  %v4693_v16 = vrot.slane %v4684_v51, 5  ;;  %v4498_v41 = vsel %vm3914_vm8, %v4497_v18, %v4496_v22 }
 0x3d5   : > { %v4772_v32 = vld [vmem:[#allocation3 + $0x29] sm:$0x1]  ;;  %5918 = vmatprep.subr.mxu0 %v6153_v9  ;;  %5923 = vmatprep.subr.mxu1 %v6153_v9  ;;  %v4594_v33 = vsel %vm3911_vm7, %v4593_v23, %v4592_v52  ;;  %v4773_v34 = vld [vmem:[#allocation3 + $0x39] sm:$0x1]  ;;  %v4778_v29 = vrot.slane %v4771_v31, 7 }
 0x3d6   : > { %v4780_v39 = vrot.slane %v4772_v32, 6  ;;  %5911 = vmatmul.mubr.msk.f32.vlgmr.msra.gmra.mrb[28].mxu0 %vm238_vm0, %v6934_v26  ;;  %5916 = vmatmul.mubr.msk.f32.vlgmr.msra.gmra.mrb[28].mxu1 %vm238_vm0, %v6934_v26  ;;  %v4596_v43 = vsel %vm3914_vm8, %v4595_v24, %v4594_v33  ;;  %v4692_v13 = vsel %vm3911_vm7, %v4691_v15, %v4690_v27  ;;  %v4782_v36 = vrot.slane %v4773_v34, 5  ;;  %v4868_v37 = vld [vmem:[#allocation3 + $0x1a] sm:$0x1]  ;;  %v4869_v20 = vld [vmem:[#allocation3 + $0x2a] sm:$0x1] }
 0x3d7   : > { %5919 = vmatpush3.msk.msra.mxu0 %vm245_vm1, %v4498_v41  ;;  %5924 = vmatpush3.msk.msra.mxu1 %vm245_vm1, %v4596_v43  ;;  %v4779_v60 = vsel %vm3908_vm6, %v4778_v29, %v4770_v28  ;;  %v4870_v40 = vld [vmem:[#allocation3 + $0x3a] sm:$0x1]  ;;  %v4875_v21 = vrot.slane %v4868_v37, 7  ;;  %v4877_v44 = vrot.slane %v4869_v20, 6  ;;  %v4867_v58 = vld [vmem:[#allocation3 + $0xa] sm:$0x1]  ;;  %v4694_v47 = vsel %vm3914_vm8, %v4693_v16, %v4692_v13 }
 0x3d8   : > { %5920 = vmatprep.mubr.msk.f32.mxu0 %vm6154_vm5, %v6153_v9  ;;  %5925 = vmatprep.mubr.msk.f32.mxu1 %vm6154_vm5, %v6153_v9  ;;  %v4781_v59 = vsel %vm3911_vm7, %v4780_v39, %v4779_v60  ;;  %v4965_v45 = vld [vmem:[#allocation3 + $0x1b] sm:$0x1]  ;;  %v4966_v46 = vld [vmem:[#allocation3 + $0x2b] sm:$0x1]  ;;  %v4879_v10 = vrot.slane %v4870_v40, 5  ;;  %v4083_v60 = vpop.permute.xlu0 %4082 }
 0x3d9   : > { %5928 = vmatprep.subr.mxu0 %v6153_v9  ;;  %5933 = vmatprep.subr.mxu1 %v6153_v9  ;;  %v4964_v48 = vld [vmem:[#allocation3 + $0xb] sm:$0x1]  ;;  %v4967_v49 = vld [vmem:[#allocation3 + $0x3b] sm:$0x1]  ;;  %v4972_v50 = vrot.slane %v4965_v45, 7  ;;  %v4974_v54 = vrot.slane %v4966_v46, 6  ;;  %v4783_v55 = vsel %vm3914_vm8, %v4782_v36, %v4781_v59  ;;  %v4876_v56 = vsel %vm3908_vm6, %v4875_v21, %v4867_v58  ;;  %v7076_v21 = vpop.permute.xlu1 %3900 }
 0x3da   : > { %5921 = vmatmul.mubr.msk.f32.vlgmr.msra.gmra.mrb[30].mxu0 %vm238_vm0, %v6934_v26  ;;  %5926 = vmatmul.mubr.msk.f32.vlgmr.msra.gmra.mrb[30].mxu1 %vm238_vm0, %v6934_v26  ;;  %v4976_v57 = vrot.slane %v4967_v49, 5  ;;  %v5062_v63 = vld [vmem:[#allocation3 + $0x1c] sm:$0x1]  ;;  %v5063_v53 = vld [vmem:[#allocation3 + $0x2c] sm:$0x1]  ;;  %v4878_v0 = vsel %vm3911_vm7, %v4877_v44, %v4876_v56 }
 0x3db   : > { %5929 = vmatpush3.msk.msra.mxu0 %vm245_vm1, %v4694_v47  ;;  %5934 = vmatpush3.msk.msra.mxu1 %vm245_vm1, %v4783_v55  ;;  %v4973_v61 = vsel %vm3908_vm6, %v4972_v50, %v4964_v48  ;;  %v5061_v1 = vld [vmem:[#allocation3 + $0xc] sm:$0x1]  ;;  %v5064_v2 = vld [vmem:[#allocation3 + $0x3c] sm:$0x1]  ;;  %v5069_v3 = vrot.slane %v5062_v63, 7  ;;  %v5071_v4 = vrot.slane %v5063_v53, 6  ;;  %v4880_v30 = vsel %vm3914_vm8, %v4879_v10, %v4878_v0 }
 0x3dc   : > { %5930 = vmatprep.mubr.msk.f32.mxu0 %vm6154_vm5, %v6153_v9  ;;  %5935 = vmatprep.mubr.msk.f32.mxu1 %vm6154_vm5, %v6153_v9  ;;  %v4975_v62 = vsel %vm3911_vm7, %v4974_v54, %v4973_v61  ;;  %v5158_v5 = vld [vmem:[#allocation3 + $0xd] sm:$0x1]  ;;  %v5159_v12 = vld [vmem:[#allocation3 + $0x1d] sm:$0x1]  ;;  %v5073_v42 = vrot.slane %v5064_v2, 5  ;;  %v4181_v40 = vpop.permute.xlu0 %4180 }
 0x3dd   : > { %v5160_v6 = vld [vmem:[#allocation3 + $0x2d] sm:$0x1]  ;;  %5938 = vmatprep.subr.mxu0 %v6153_v9  ;;  %5943 = vmatprep.subr.mxu1 %v6153_v9  ;;  %v5070_v7 = vsel %vm3908_vm6, %v5069_v3, %v5061_v1  ;;  %v5161_v8 = vld [vmem:[#allocation3 + $0x3d] sm:$0x1]  ;;  %v5166_v11 = vrot.slane %v5159_v12, 7  ;;  %v4977_v17 = vsel %vm3914_vm8, %v4976_v57, %v4975_v62  ;;  %v4858_v59 = vpop.permute.xlu1 %4857 }
 0x3de   : > { %v5168_v14 = vrot.slane %v5160_v6, 6  ;;  %5931 = vmatmul.mubr.msk.f32.vlgmr.msra.gmra.mrb[32].mxu0 %vm238_vm0, %v6934_v26  ;;  %5936 = vmatmul.mubr.msk.f32.vlgmr.msra.gmra.mrb[32].mxu1 %vm238_vm0, %v6934_v26  ;;  %v5072_v18 = vsel %vm3911_vm7, %v5071_v4, %v5070_v7  ;;  %v5170_v19 = vrot.slane %v5161_v8, 5  ;;  %v5256_v35 = vld [vmem:[#allocation3 + $0x1e] sm:$0x1]  ;;  %v5257_v38 = vld [vmem:[#allocation3 + $0x2e] sm:$0x1] }
 0x3df   : > { %5939 = vmatpush3.msk.msra.mxu0 %vm245_vm1, %v4880_v30  ;;  %5944 = vmatpush3.msk.msra.mxu1 %vm245_vm1, %v4977_v17  ;;  %v5167_v22 = vsel %vm3908_vm6, %v5166_v11, %v5158_v5  ;;  %v5258_v23 = vld [vmem:[#allocation3 + $0x3e] sm:$0x1]  ;;  %v5263_v24 = vrot.slane %v5256_v35, 7  ;;  %v5265_v25 = vrot.slane %v5257_v38, 6  ;;  %v5353_v52 = vld [vmem:[#allocation3 + $0x1f] sm:$0x1]  ;;  %v5074_v15 = vsel %vm3914_vm8, %v5073_v42, %v5072_v18 }
 0x3e0   : > { %5940 = vmatprep.mubr.msk.f32.mxu0 %vm6154_vm5, %v6153_v9  ;;  %5945 = vmatprep.mubr.msk.f32.mxu1 %vm6154_vm5, %v6153_v9  ;;  %v5169_v51 = vsel %vm3911_vm7, %v5168_v14, %v5167_v22  ;;  %v5354_v27 = vld [vmem:[#allocation3 + $0x2f] sm:$0x1]  ;;  %v5255_v28 = vld [vmem:[#allocation3 + $0xe] sm:$0x1]  ;;  %v5355_v31 = vld [vmem:[#allocation3 + $0x3f] sm:$0x1]  ;;  %v4279_v44 = vpop.permute.xlu0 %4278 }
 0x3e1   : > { %5948 = vmatprep.subr.mxu0 %v6153_v9  ;;  %5953 = vmatprep.subr.mxu1 %v6153_v9  ;;  %v5360_v32 = vrot.slane %v5353_v52, 7  ;;  %v5362_v33 = vrot.slane %v5354_v27, 6  ;;  %v5171_v16 = vsel %vm3914_vm8, %v5170_v19, %v5169_v51  ;;  %v5264_v34 = vsel %vm3908_vm6, %v5263_v24, %v5255_v28  ;;  %v5352_v39 = vld [vmem:[#allocation3 + $0xf] sm:$0x1]  ;;  %v3893_v58 = vld [vmem:[%s6248_s11] sm:$0xf]  ;;  %v4955_v55 = vpop.permute.xlu1 %4954 }
 0x3e2   : > { %5941 = vmatmul.mubr.msk.f32.vlgmr.msra.gmra.mrb[34].mxu0 %vm238_vm0, %v6934_v26  ;;  %5946 = vmatmul.mubr.msk.f32.vlgmr.msra.gmra.mrb[34].mxu1 %vm238_vm0, %v6934_v26  ;;  %v5267_v29 = vrot.slane %v5258_v23, 5  ;;  %v5364_v41 = vrot.slane %v5355_v31, 5  ;;  %v5266_v43 = vsel %vm3911_vm7, %v5265_v25, %v5264_v34  ;;  %v4680_v18 = vld [vmem:[%s6248_s11 + $0x4] sm:$0xf]  ;;  %s5639_s11 = sshll.u32 %s6207_s22, 7  ;;  %s6155_s22 = smov [#allocation4]  }
 0x3e3   : > { %5949 = vmatpush3.msk.msra.mxu0 %vm245_vm1, %v5074_v15  ;;  %5954 = vmatpush3.msk.msra.mxu1 %vm245_vm1, %v5171_v16  ;;  %v5361_v13 = vsel %vm3908_vm6, %v5360_v32, %v5352_v39 }
 0x3e4   : > { %5950 = vmatprep.mubr.msk.f32.mxu0 %vm6154_vm5, %v6153_v9  ;;  %5955 = vmatprep.mubr.msk.f32.mxu1 %vm6154_vm5, %v6153_v9  ;;  %v5363_v36 = vsel %vm3911_vm7, %v5362_v33, %v5361_v13  ;;  %v5268_v37 = vsel %vm3914_vm8, %v5267_v29, %v5266_v43 }
 0x3e5   : > { %5958 = vmatprep.subr.mxu0 %v6153_v9  ;;  %5963 = vmatprep.subr.mxu1 %v6153_v9  ;;  %v5365_v20 = vsel %vm3914_vm8, %v5364_v41, %v5363_v36  ;;  %v5052_v6 = vpop.permute.xlu1 %5051 }
 0x3e6   : > { %5951 = vmatmul.mubr.msk.f32.vlgmr.msra.gmra.mrb[36].mxu0 %vm238_vm0, %v6934_v26  ;;  %5956 = vmatmul.mubr.msk.f32.vlgmr.msra.gmra.mrb[36].mxu1 %vm238_vm0, %v6934_v26 }
 0x3e7   : > { %5959 = vmatpush3.msk.msra.mxu0 %vm245_vm1, %v5268_v37  ;;  %5964 = vmatpush3.msk.msra.mxu1 %vm245_vm1, %v5365_v20 }
 0x3e8   : > { %5960 = vmatprep.mubr.msk.f32.mxu0 %vm6154_vm5, %v6153_v9  ;;  %5965 = vmatprep.mubr.msk.f32.mxu1 %vm6154_vm5, %v6153_v9 }
 0x3e9   : > { %v5149_v15 = vpop.permute.xlu1 %5148 }
 0x3ea   : > { %5961 = vmatmul.mubr.msk.f32.vlgmr.msra.gmra.mrb[38].mxu0 %vm238_vm0, %v6934_v26  ;;  %5966 = vmatmul.mubr.msk.f32.vlgmr.msra.gmra.mrb[38].mxu1 %vm238_vm0, %v6934_v26  ;;  %v4377_v26 = vpop.permute.xlu0 %4376  ;;  %vm4678_vm0 = vcmask 1044352  }
 0x3ee   : > { %v4475_v1 = vpop.permute.xlu0 %4474 }
 0x3f2   : > { %v4573_v17 = vpop.permute.xlu0 %4572 }
 0x3f6   : > { %v4671_v39 = vpop.permute.xlu0 %4670 }
 0x4a0   : > { %v3987_v45 = vpop.f32.mrb[24].mxu0  ;;  %v4077_v46 = vpop.f32.mrb[24].mxu1 }
 0x4a1   : > { %v3988_v9 = vadd.f32 %v3987_v45, %v7076_v21  ;;  %v4078_v47 = vadd.f32 %v4077_v46, %v7076_v21  ;;  %v5892_v48 = vpop.f32.mrb[25].mxu0  ;;  %v5897_v49 = vpop.f32.mrb[25].mxu1 }
 0x4a3   : > { %v3991_v50 = vadd.f32 %v3988_v9, %v3893_v58  ;;  %v4085_v54 = vadd.f32 %v4083_v60, %v4078_v47 }
 0x4a5   : > { %3993 = vst.msk [vmem:[%s7084_s7] sm:$0xf] %vm3992_vm9, %v3991_v50  ;;  %v4175_v56 = vpop.f32.mrb[26].mxu0  ;;  %v4273_v10 = vpop.f32.mrb[26].mxu1  ;;  %4087 = vrot.lane.b32.xlu0 %v4085_v54, %s6150_s26 }
 0x4a6   : > { %v4176_v57 = vadd.f32 %v4175_v56, %v7076_v21  ;;  %v5902_v63 = vpop.f32.mrb[27].mxu0  ;;  %v5907_v53 = vpop.f32.mrb[27].mxu1  ;;  %v4274_v61 = vadd.f32 %v4273_v10, %v7076_v21 }
 0x4a8   : > { %v4183_v0 = vadd.f32 %v4181_v40, %v4176_v57  ;;  %v4281_v5 = vadd.f32 %v4279_v44, %v4274_v61  ;;  %v5246_v44 = vpop.permute.xlu1 %5245 }
 0x4a9   : > { %v4371_v2 = vpop.f32.mrb[28].mxu0  ;;  %v4469_v3 = vpop.f32.mrb[28].mxu1 }
 0x4aa   : > { %4185 = vrot.lane.b32.xlu0 %v4183_v0, %s6149_s25  ;;  %v5912_v4 = vpop.f32.mrb[29].mxu0  ;;  %v5917_v62 = vpop.f32.mrb[29].mxu1  ;;  %v4372_v12 = vadd.f32 %v4371_v2, %v7076_v21  ;;  %v4470_v30 = vadd.f32 %v4469_v3, %v7076_v21 }
 0x4ac   : > { %v4379_v14 = vadd.f32 %v4377_v26, %v4372_v12  ;;  %v4477_v25 = vadd.f32 %v4475_v1, %v4470_v30  ;;  %v5343_v49 = vpop.permute.xlu1 %5342 }
 0x4ad   : > { %v4567_v7 = vpop.f32.mrb[30].mxu0  ;;  %v4665_v42 = vpop.f32.mrb[30].mxu1 }
 0x4ae   : > { %4283 = vrot.lane.b32.xlu0 %v4281_v5, %s6148_s23  ;;  %v5922_v8 = vpop.f32.mrb[31].mxu0  ;;  %v5927_v11 = vpop.f32.mrb[31].mxu1  ;;  %v4568_v51 = vadd.f32 %v4567_v7, %v7076_v21  ;;  %v4666_v29 = vadd.f32 %v4665_v42, %v7076_v21 }
 0x4b0   : > { %v4575_v34 = vadd.f32 %v4573_v17, %v4568_v51  ;;  %v4673_v60 = vadd.f32 %v4671_v39, %v4666_v29  ;;  %v5440_v56 = vpop.permute.xlu1 %5439 }
 0x4b1   : > { %v4763_v19 = vpop.f32.mrb[32].mxu0  ;;  %v4852_v35 = vpop.f32.mrb[32].mxu1 }
 0x4b2   : > { %v4764_v38 = vadd.f32 %v4763_v19, %v7076_v21  ;;  %v4853_v22 = vadd.f32 %v4852_v35, %v7076_v21  ;;  %4381 = vrot.lane.b32.xlu0 %v4379_v14, %s6147_s15  ;;  %v5932_v23 = vpop.f32.mrb[33].mxu0  ;;  %v5937_v24 = vpop.f32.mrb[33].mxu1 }
 0x4b4   : > { %v4767_v52 = vadd.f32 %v4764_v38, %v4680_v18  ;;  %v4860_v27 = vadd.f32 %v4858_v59, %v4853_v22 }
 0x4b5   : > { %v4949_v28 = vpop.f32.mrb[34].mxu0  ;;  %v5046_v31 = vpop.f32.mrb[34].mxu1 }
 0x4b6   : > { %4768 = vst.msk [vmem:[%s7084_s7 + $0x4] sm:$0xf] %vm3992_vm9, %v4767_v52  ;;  %v4950_v32 = vadd.f32 %v4949_v28, %v7076_v21  ;;  %4862 = vrot.lane.b32.xlu1 %v4860_v27, %s6150_s26  ;;  %4479 = vrot.lane.b32.xlu0 %v4477_v25, %s6145_s13  ;;  %v5942_v33 = vpop.f32.mrb[35].mxu0  ;;  %v5947_v16 = vpop.f32.mrb[35].mxu1  ;;  %v5047_v43 = vadd.f32 %v5046_v31, %v7076_v21  ;;  %s6084_s26 = sshll.u32 %s6155_s22, 4  ;;  %s6085_s26 = int_to_ptr.vmem [resolvable:$false] %s6084_s26 }
 0x4b7   : > { %s6086_s8 = scalar_lea.vmem %s6085_s26, 256 }
 0x4b8   : > { %v4957_v41 = vadd.f32 %v4955_v55, %v4950_v32  ;;  %v5054_v40 = vadd.f32 %v5052_v6, %v5047_v43 }
 0x4b9   : > { %v5143_v13 = vpop.f32.mrb[36].mxu0  ;;  %v5240_v36 = vpop.f32.mrb[36].mxu1 }
 0x4ba   : > { %4577 = vrot.lane.b32.xlu0 %v4575_v34, %s6146_s14  ;;  %4959 = vrot.lane.b32.xlu1 %v4957_v41, %s6149_s25  ;;  %v5952_v37 = vpop.f32.mrb[37].mxu0  ;;  %v5957_v20 = vpop.f32.mrb[37].mxu1  ;;  %v5144_v59 = vadd.f32 %v5143_v13, %v7076_v21  ;;  %v5241_v48 = vadd.f32 %v5240_v36, %v7076_v21 }
 0x4bc   : > { %v5151_v47 = vadd.f32 %v5149_v15, %v5144_v59  ;;  %v5248_v26 = vadd.f32 %v5246_v44, %v5241_v48 }
 0x4bd   : > { %v5337_v58 = vpop.f32.mrb[38].mxu0  ;;  %v5434_v45 = vpop.f32.mrb[38].mxu1 }
 0x4be   : > { %4675 = vrot.lane.b32.xlu0 %v4673_v60, %s6144_s12  ;;  %5056 = vrot.lane.b32.xlu1 %v5054_v40, %s6148_s23  ;;  %v5962_v46 = vpop.f32.mrb[39].mxu0  ;;  %v5967_v9 = vpop.f32.mrb[39].mxu1  ;;  %v5338_v50 = vadd.f32 %v5337_v58, %v7076_v21  ;;  %v5435_v55 = vadd.f32 %v5434_v45, %v7076_v21  ;;  %s5449_s23 = scalar_lea.sflag [#allocation5], %s215_s30 }
 0x4c0   : > { %v5345_v54 = vadd.f32 %v5343_v49, %v5338_v50  ;;  %v5442_v10 = vadd.f32 %v5440_v56, %v5435_v55 }
 0x4c2   : > { %5153 = vrot.lane.b32.xlu1 %v5151_v47, %s6147_s15  ;;  %s7148_s15 = scalar_lea.hbm %s7199_s5, %s5639_s11 }
 0x4c6   : > { %5250 = vrot.lane.b32.xlu1 %v5248_v26, %s6145_s13 }
 0x4ca   : > { %5347 = vrot.lane.b32.xlu1 %v5345_v54, %s6146_s14 }
 0x4ce   : > { %5444 = vrot.lane.b32.xlu1 %v5442_v10, %s6144_s12  ;;  %s5463_s12 = sshll.u32 %s7084_s7, 4  ;;  %s7150_s12 = int_to_ptr.vmem [resolvable:$true] %s5463_s12 }
 0x4cf   : > { %s6080_s25 = scalar_lea.vmem %s7150_s12, 128  ;;  %p6087_p0 = scmp.lt.s32.totalorder %s7150_s12, %s6085_s26 }
 0x4d0   : > { %p6081_p11 = scmp.ne.s32.totalorder %s7150_s12, %s6080_s25  ;;  %p6088_p1 = scmp.lt.s32.totalorder %s6086_s8, %s6080_s25 }
 0x4d2   : > { %p6082_p12 = pnand %p6081_p11, %p6224_p5  ;;  %p6089_p2 = por %p6088_p1, %p6087_p0 }
 0x4d4   : > { %p6083_p13 = pneg %p6082_p12 }
 0x4d6   : > { %p6090_p3 = pnand %p6089_p2, %p6083_p13 }
 0x517   : > { %v4088_v57 = vpop.permute.xlu0 %4087 }
 0x518   : > { %4091 = vst.msk [vmem:[%s7084_s7] sm:$0xf] %vm4090_vm10, %v4088_v57 }
 0x51c   : > { %v4186_v63 = vpop.permute.xlu0 %4185 }
 0x51d   : > { %4189 = vst.msk [vmem:[%s7084_s7] sm:$0xf] %vm4188_vm11, %v4186_v63 }
 0x520   : > { %v4284_v21 = vpop.permute.xlu0 %4283 }
 0x521   : > { %4287 = vst.msk [vmem:[%s7084_s7] sm:$0xf] %vm4286_vm12, %v4284_v21 }
 0x524   : > { %v4382_v53 = vpop.permute.xlu0 %4381 }
 0x525   : > { %4385 = vst.msk [vmem:[%s7084_s7] sm:$0xf] %vm4384_vm13, %v4382_v53 }
 0x528   : > { %v4863_v0 = vpop.permute.xlu1 %4862  ;;  %v4480_v61 = vpop.permute.xlu0 %4479 }
 0x529   : > { %4865 = vst.msk [vmem:[%s7084_s7 + $0x4] sm:$0xf] %vm4090_vm10, %v4863_v0 }
 0x52a   : > { %4483 = vst.msk [vmem:[%s7084_s7] sm:$0xf] %vm4482_vm14, %v4480_v61 }
 0x52c   : > { %v4578_v1 = vpop.permute.xlu0 %4577  ;;  %v4960_v2 = vpop.permute.xlu1 %4959 }
 0x52d   : > { %4581 = vst.msk [vmem:[%s7084_s7] sm:$0xf] %vm4580_vm15, %v4578_v1 }
 0x52e   : > { %4962 = vst.msk [vmem:[%s7084_s7 + $0x4] sm:$0xf] %vm4188_vm11, %v4960_v2 }
 0x530   : > { %v4676_v3 = vpop.permute.xlu0 %4675  ;;  %v5057_v4 = vpop.permute.xlu1 %5056 }
 0x531   : > { %4679 = vst.msk [vmem:[%s7084_s7] sm:$0xf] %vm4678_vm0, %v4676_v3 }
 0x532   : > { %5059 = vst.msk [vmem:[%s7084_s7 + $0x4] sm:$0xf] %vm4286_vm12, %v5057_v4 }
 0x534   : > { %v5154_v62 = vpop.permute.xlu1 %5153 }
 0x535   : > { %5156 = vst.msk [vmem:[%s7084_s7 + $0x4] sm:$0xf] %vm4384_vm13, %v5154_v62 }
 0x538   : > { %v5251_v5 = vpop.permute.xlu1 %5250 }
 0x539   : > { %5253 = vst.msk [vmem:[%s7084_s7 + $0x4] sm:$0xf] %vm4482_vm14, %v5251_v5 }
 0x53c   : > { %v5348_v12 = vpop.permute.xlu1 %5347 }
 0x53d   : > { %5350 = vst.msk [vmem:[%s7084_s7 + $0x4] sm:$0xf] %vm4580_vm15, %v5348_v12 }
 0x540   : > { %v5445_v6 = vpop.permute.xlu1 %5444 }
 0x541   : > { %5447 = vst.msk [vmem:[%s7084_s7 + $0x4] sm:$0xf] %vm4678_vm0, %v5445_v6 }
 0x542   : > { %6093 = shalt.err (!%p6090_p3)
}
 0x543   : > { %s6094_s9 = scalar_lea.hbm %s7148_s15, 128  ;;  %s6098_s17 = scalar_lea.hbm %s7199_s5, 256 }
 0x544   : > { %p6095_p4 = scmp.ne.s32.totalorder %s7148_s15, %s6094_s9  ;;  %p6099_p9 = scmp.lt.u32.totalorder %s7148_s15, %s7199_s5 }
 0x545   : > { %p6100_p10 = scmp.lt.u32.totalorder %s6098_s17, %s6094_s9  ;;  %p6102_p12 = scmp.lt.u32.totalorder %s6094_s9, %s7148_s15 }
 0x546   : > { %p6096_p7 = pnand %p6095_p4, %p6224_p5 }
 0x547   : > { %p6101_p11 = por %p6100_p10, %p6099_p9 }
 0x548   : > { %p6097_p8 = pneg %p6096_p7 }
 0x549   : > { %p6103_p13 = por %p6102_p12, %p6101_p11 }
 0x54b   : > { %p6104_p0 = pnand %p6103_p13, %p6097_p8 }
 0x54d   : > { %6107 = shalt.err (!%p6104_p0)
}
 0x54e   : > { %6008 = dma.vmem_to_hbm [thread:$0]  (%p6224_p5), %s7150_s12, 128, %s7148_s15, %s5449_s23  }
 0x54f PF: > { %p6014_p1 = scmp.ge.s32.totalorder %s6142_s21, 2  ;;  %s5475_s7 = sand.u32 1, %s6130_s18  }
 0x550   : > { %s5476_s11 = scalar_lea.sflag [#allocation5], %s5475_s7 }
 0x551   : > { %p6011_p2 = pnand %p6014_p1, %p6228_p6 }
 0x553   : > { %6125 = dma.done.wait (!%p6011_p2), %s5476_s11, 128  }
 0x554   : > { %6127 = vsyncadd (!%p6011_p2), %s5476_s11, 4294967168  ;;  %p15_p3 = scmp.ge.s32.totalorder %s6211_s24, 4   ;;  %s7204_s18 = smov %s6134_s19 }
 0x555   : > { %s7205_s19 = smov %s6138_s20  ;;  %s7206_s20 = smov %s6222_s27 }
 0x556   : > { %s7207_s21 = smov %s6211_s24  ;;  %17 = sbr.rel (!%p15_p3) target bundleno = 3 (0x3), region = 77 }
 0x55d   :  { %5481 = vsyncpa [#allocation5], 1 }
 0x55e   :  { %5483 = vsyncpa [#allocation5 + $0x1], 1 }

</bundles_post_ra>
